<compile_context>
chip_gen: v5e
topology: v5e:2x2
jax: 0.10.0
libtpu: 0.0.40
codegen_flags: <defaults>
</compile_context>

<pallas_src>
import functools

import jax
import jax.numpy as jnp
from jax.experimental import pallas as pl
from jax.experimental.pallas import tpu as pltpu

# ---------------------------------------------------------------------------
# Module hyper-parameters (small, but consistent with BoxDecoder.__init__).
# ---------------------------------------------------------------------------
TRANSFORMER_DIM = 256                 # forward hardcodes reshape(1, -1, 256)
NUM_BOXES = 8                         # num_box_tokens (default 200, kept small)
NUM_CLASSES = 1                       # -> class head outputs num_classes + 1 = 2
BOX_HEAD_HIDDEN = 256
CLASS_HEAD_HIDDEN = 256
H = W = 8
IN_CHANNELS = TRANSFORMER_DIM * 2     # != transformer_dim -> exercises reduce_image_embedding CNN
CNN_HIDDEN = IN_CHANNELS * 2          # conv1 output channels
CNN_K_BLOCK = 256                     # streaming block over the CNN hidden (reduction) axis
HEAD_CAT = BOX_HEAD_HIDDEN + CLASS_HEAD_HIDDEN   # merged-head hidden width (512)
OUT_PAD = 128                         # lane-dense padded width of the merged head output


def _full_spec(shape):
    """Whole-array BlockSpec (block index 0 on every grid step)."""
    return pl.BlockSpec(shape, lambda *_: (0,) * len(shape))


# ---------------------------------------------------------------------------
# Kernel bodies
# ---------------------------------------------------------------------------
def _attention_and_heads(img, pe, tok, hw1, hb1, hw2, hb2, hw3, hb3, out_ref,
                         *, dim, num_box):
    """Stand-in transformer (tokens cross-attend to image+PE, residual) + merged heads."""
    # TODO(synk): `self.transformer` is an externally injected nn.Module (e.g. SAM's
    # TwoWayTransformer) not defined in the reference source; replaced here by a
    # deterministic single cross-attention block.
    q = tok                                                    # (T, D) f32
    kmat = (img + pe).astype(jnp.bfloat16)                     # (HW, D)
    # Contract over the shared feature dim (no materialized transpose of K).
    s = jax.lax.dot_general(q.astype(jnp.bfloat16), kmat,
                            dimension_numbers=(((1,), (1,)), ((), ())),
                            preferred_element_type=jnp.float32)
    s = s * (1.0 / (dim ** 0.5))                               # (T, HW) f32
    m = jnp.max(s, axis=-1, keepdims=True)
    p = jnp.exp(s - m)
    p = p * pl.reciprocal(jnp.sum(p, axis=-1, keepdims=True), approx=True)
    attn = jnp.dot(p.astype(jnp.bfloat16), img.astype(jnp.bfloat16),
                   preferred_element_type=jnp.float32)         # (T, D)
    hs = q + attn                                              # residual, f32

    box_tok = hs[:num_box].astype(jnp.bfloat16)                # (num_box, D) static slice

    # Merged box/class MLP heads (layer1 concat, layer2 block-diag, layer3 padded to 128 lanes).
    h1 = jnp.maximum(
        jnp.dot(box_tok, hw1, preferred_element_type=jnp.float32) + hb1, 0.0)
    h2 = jnp.maximum(
        jnp.dot(h1.astype(jnp.bfloat16), hw2, preferred_element_type=jnp.float32) + hb2, 0.0)
    raw = jnp.dot(h2.astype(jnp.bfloat16), hw3, preferred_element_type=jnp.float32) + hb3
    col = jax.lax.broadcasted_iota(jnp.int32, raw.shape, 1)
    out = jnp.where(col < 4, jax.nn.sigmoid(raw), raw)         # sigmoid only on box cols 0:4
    out_ref[...] = out.astype(out_ref.dtype)


def fused_cnn_kernel(x_ref, w1_ref, b1_ref, w2_ref, b2_ref, pe_ref, tok_ref,
                     hw1_ref, hb1_ref, hw2_ref, hb2_ref, hw3_ref, hb3_ref,
                     out_ref, img_acc, *, dim, num_box):
    """Grid axis streams the CNN hidden dim; attention + heads run on the last step."""
    k = pl.program_id(0)

    @pl.when(k == 0)
    def _():
        img_acc[...] = jnp.zeros_like(img_acc)

    # conv1 (1x1) block of hidden units + relu, then conv2 (1x1) partial accumulation.
    h = jnp.dot(x_ref[...], w1_ref[...], preferred_element_type=jnp.float32) + b1_ref[...]
    h = jnp.maximum(h, 0.0)
    img_acc[...] += jnp.dot(h.astype(jnp.bfloat16), w2_ref[...],
                            preferred_element_type=jnp.float32)

    @pl.when(k == pl.num_programs(0) - 1)
    def _():
        img = img_acc[...] + b2_ref[...]                       # (HW, D) f32
        _attention_and_heads(img, pe_ref[...], tok_ref[...],
                             hw1_ref[...], hb1_ref[...], hw2_ref[...], hb2_ref[...],
                             hw3_ref[...], hb3_ref[...], out_ref,
                             dim=dim, num_box=num_box)


def fused_plain_kernel(img_ref, pe_ref, tok_ref,
                       hw1_ref, hb1_ref, hw2_ref, hb2_ref, hw3_ref, hb3_ref,
                       out_ref, *, dim, num_box):
    """Path taken when image channels == transformer_dim (no reduce_image_embedding CNN)."""
    _attention_and_heads(img_ref[...], pe_ref[...], tok_ref[...],
                         hw1_ref[...], hb1_ref[...], hw2_ref[...], hb2_ref[...],
                         hw3_ref[...], hb3_ref[...], out_ref,
                         dim=dim, num_box=num_box)


# ---------------------------------------------------------------------------
# Pallas wrappers
# ---------------------------------------------------------------------------
def _run_fused_cnn(p, x, pe, tokens):
    hw, cin = x.shape
    T = tokens.shape[0]
    d = TRANSFORMER_DIM
    hid = p["cnn_w1"].shape[1]
    assert hid % CNN_K_BLOCK == 0
    kb = hid // CNN_K_BLOCK

    args = (x, p["cnn_w1"], p["cnn_b1"], p["cnn_w2"], p["cnn_b2"], pe, tokens,
            p["head_w1"], p["head_b1"], p["head_w2"], p["head_b2"],
            p["head_w3"], p["head_b3"])

    flops = 2 * (hw * cin * hid + hw * hid * d + 2 * T * d * hw
                 + NUM_BOXES * d * HEAD_CAT + NUM_BOXES * HEAD_CAT * HEAD_CAT
                 + NUM_BOXES * HEAD_CAT * OUT_PAD)
    transcendentals = T * hw + NUM_BOXES * OUT_PAD + T
    bytes_accessed = int(sum(a.size * a.dtype.itemsize for a in args)
                         + NUM_BOXES * OUT_PAD * 4)

    in_specs = [
        pl.BlockSpec((hw, cin), lambda k: (0, 0)),              # x (bf16), pinned
        pl.BlockSpec((cin, CNN_K_BLOCK), lambda k: (0, k)),     # cnn_w1 block (bf16)
        pl.BlockSpec((1, CNN_K_BLOCK), lambda k: (0, k)),       # cnn_b1 block (f32)
        pl.BlockSpec((CNN_K_BLOCK, d), lambda k: (k, 0)),       # cnn_w2 block (bf16)
        pl.BlockSpec((1, d), lambda k: (0, 0)),                 # cnn_b2 (f32)
        pl.BlockSpec((hw, d), lambda k: (0, 0)),                # pe (f32)
        pl.BlockSpec((T, d), lambda k: (0, 0)),                 # tokens (f32)
        pl.BlockSpec((d, HEAD_CAT), lambda k: (0, 0)),          # head_w1 (bf16)
        pl.BlockSpec((1, HEAD_CAT), lambda k: (0, 0)),          # head_b1 (f32)
        pl.BlockSpec((HEAD_CAT, HEAD_CAT), lambda k: (0, 0)),   # head_w2 (bf16)
        pl.BlockSpec((1, HEAD_CAT), lambda k: (0, 0)),          # head_b2 (f32)
        pl.BlockSpec((HEAD_CAT, OUT_PAD), lambda k: (0, 0)),    # head_w3 (bf16)
        pl.BlockSpec((1, OUT_PAD), lambda k: (0, 0)),           # head_b3 (f32)
    ]

    return pl.pallas_call(
        functools.partial(fused_cnn_kernel, dim=d, num_box=NUM_BOXES),
        out_shape=jax.ShapeDtypeStruct((NUM_BOXES, OUT_PAD), jnp.float32),
        grid_spec=pltpu.PrefetchScalarGridSpec(
            num_scalar_prefetch=0,
            grid=(kb,),
            in_specs=in_specs,
            out_specs=pl.BlockSpec((NUM_BOXES, OUT_PAD), lambda k: (0, 0)),
            scratch_shapes=[pltpu.VMEM((hw, d), jnp.float32)]),
        compiler_params=pltpu.CompilerParams(dimension_semantics=("arbitrary",)),
        cost_estimate=pl.CostEstimate(flops=flops, transcendentals=transcendentals,
                                      bytes_accessed=bytes_accessed),
    )(*args)


def _run_fused_plain(p, img, pe, tokens):
    args = (img, pe, tokens, p["head_w1"], p["head_b1"], p["head_w2"], p["head_b2"],
            p["head_w3"], p["head_b3"])
    return pl.pallas_call(
        functools.partial(fused_plain_kernel, dim=TRANSFORMER_DIM, num_box=NUM_BOXES),
        out_shape=jax.ShapeDtypeStruct((NUM_BOXES, OUT_PAD), jnp.float32),
        grid=(1,),
        in_specs=[_full_spec(a.shape) for a in args],
        out_specs=_full_spec((NUM_BOXES, OUT_PAD)),
    )(*args)


# ---------------------------------------------------------------------------
# Parameters (deterministic, in-script). MXU operands stored as bf16,
# biases (added to f32 accumulators) stay f32. The two heads are pre-merged.
# ---------------------------------------------------------------------------
def _linear(key, fan_in, fan_out):
    kw, kb = jax.random.split(key)
    w = jax.random.normal(kw, (fan_in, fan_out), jnp.float32) * 0.02
    b = jax.random.normal(kb, (1, fan_out), jnp.float32) * 0.01
    return w, b


def init_params(key):
    ks = jax.random.split(key, 10)
    params = {}
    # nn.Embedding(num_boxes, transformer_dim)
    params["box_tokens"] = jax.random.normal(
        ks[0], (NUM_BOXES, TRANSFORMER_DIM), jnp.float32) * 0.02

    # CNN(in_channels=2*D, out_channels=D): conv1 (2D -> 4D), conv2 (4D -> D), 1x1 kernels.
    w1, b1 = _linear(ks[1], IN_CHANNELS, CNN_HIDDEN)
    w2, b2 = _linear(ks[2], CNN_HIDDEN, TRANSFORMER_DIM)
    params["cnn_w1"] = w1.astype(jnp.bfloat16)
    params["cnn_b1"] = b1
    params["cnn_w2"] = w2.astype(jnp.bfloat16)
    params["cnn_b2"] = b2

    # box_prediction_head: MLP(D, 256, 4, depth=3, sigmoid)
    bw1, bb1 = _linear(ks[3], TRANSFORMER_DIM, BOX_HEAD_HIDDEN)
    bw2, bb2 = _linear(ks[4], BOX_HEAD_HIDDEN, BOX_HEAD_HIDDEN)
    bw3, bb3 = _linear(ks[5], BOX_HEAD_HIDDEN, 4)
    # class_prediction_head: MLP(D, 256, num_classes+1, depth=3)
    cw1, cb1 = _linear(ks[6], TRANSFORMER_DIM, CLASS_HEAD_HIDDEN)
    cw2, cb2 = _linear(ks[7], CLASS_HEAD_HIDDEN, CLASS_HEAD_HIDDEN)
    cw3, cb3 = _linear(ks[8], CLASS_HEAD_HIDDEN, NUM_CLASSES + 1)

    # Merge heads: layer1 concat, layer2 block-diagonal, layer3 padded to OUT_PAD lanes
    # (box weights -> cols 0:4, class weights -> cols 4:4+num_classes+1).
    params["head_w1"] = jnp.concatenate([bw1, cw1], axis=1).astype(jnp.bfloat16)
    params["head_b1"] = jnp.concatenate([bb1, cb1], axis=1)
    w2m = jnp.zeros((HEAD_CAT, HEAD_CAT), jnp.float32)
    w2m = w2m.at[:BOX_HEAD_HIDDEN, :BOX_HEAD_HIDDEN].set(bw2)
    w2m = w2m.at[BOX_HEAD_HIDDEN:, BOX_HEAD_HIDDEN:].set(cw2)
    params["head_w2"] = w2m.astype(jnp.bfloat16)
    params["head_b2"] = jnp.concatenate([bb2, cb2], axis=1)
    w3m = jnp.zeros((HEAD_CAT, OUT_PAD), jnp.float32)
    w3m = w3m.at[:BOX_HEAD_HIDDEN, 0:4].set(bw3)
    w3m = w3m.at[BOX_HEAD_HIDDEN:, 4:4 + NUM_CLASSES + 1].set(cw3)
    params["head_w3"] = w3m.astype(jnp.bfloat16)
    b3m = jnp.zeros((1, OUT_PAD), jnp.float32)
    b3m = b3m.at[:, 0:4].set(bb3)
    b3m = b3m.at[:, 4:4 + NUM_CLASSES + 1].set(cb3)
    params["head_b3"] = b3m
    return params


# ---------------------------------------------------------------------------
# BoxDecoder.forward / predict_boxes
# ---------------------------------------------------------------------------
def box_decoder_forward(params, image_embeddings, image_pe, sparse_prompt_embeddings,
                        dense_prompt_embeddings=None):
    if dense_prompt_embeddings is not None:
        raise ValueError("BoxDecoder does not currently support dense prompt embeddings from masks.")

    b, c, h, w = image_embeddings.shape
    assert b == 1, "BoxDecoder operates on a single image embedding"
    hw = h * w

    pe = image_pe[0].reshape(TRANSFORMER_DIM, hw).T                      # (HW, D) f32

    # tokens = cat(box_tokens.weight[None], sparse.reshape(1, -1, 256), dim=1)
    sparse = sparse_prompt_embeddings.reshape(-1, 256)                   # hardcoded 256 as in reference
    tokens = jnp.concatenate([params["box_tokens"], sparse], axis=0)     # (T, D) f32

    if c != TRANSFORMER_DIM:
        # reduce_image_embedding CNN runs inside the fused kernel (streamed over hidden dim).
        x = image_embeddings[0].reshape(c, hw).T.astype(jnp.bfloat16)    # NCHW -> (HW, C) bf16
        out_pad = _run_fused_cnn(params, x, pe, tokens)                  # (num_box, OUT_PAD)
    else:
        img = image_embeddings[0].reshape(c, hw).T                       # (HW, D) f32
        out_pad = _run_fused_plain(params, img, pe, tokens)

    pred_boxes = out_pad[:, :4][None]                                    # (1, num_box, 4)
    pred_logits = out_pad[:, 4:4 + NUM_CLASSES + 1][None]                # (1, num_box, 2)
    return {"pred_boxes": pred_boxes, "pred_logits": pred_logits}


if __name__ == "__main__":
    key = jax.random.PRNGKey(0)
    kp, k1, k2, k3 = jax.random.split(key, 4)

    params = init_params(kp)
    image_embeddings = jax.random.normal(k1, (1, IN_CHANNELS, H, W), jnp.float32)
    image_pe = jax.random.normal(k2, (1, TRANSFORMER_DIM, H, W), jnp.float32)
    sparse_prompt_embeddings = jax.random.normal(k3, (2, 4, TRANSFORMER_DIM), jnp.float32)

    out = box_decoder_forward(params, image_embeddings, image_pe, sparse_prompt_embeddings)
    jax.block_until_ready(out)

    assert out["pred_boxes"].shape == (1, NUM_BOXES, 4)
    assert out["pred_logits"].shape == (1, NUM_BOXES, NUM_CLASSES + 1)
    assert bool(jnp.all(out["pred_boxes"] >= 0) & jnp.all(out["pred_boxes"] <= 1))
    print("KERNEL_OK")
</pallas_src>

<mosaic_0001>
module attributes {stable_mosaic.version = 11 : i64} {
  func.func @fused_cnn_kernel(%arg0: i32, %arg1: memref<64x512xbf16, #tpu.memory_space<vmem>>, %arg2: memref<512x256xbf16, #tpu.memory_space<vmem>>, %arg3: memref<1x256xf32, #tpu.memory_space<vmem>>, %arg4: memref<256x256xbf16, #tpu.memory_space<vmem>>, %arg5: memref<1x256xf32, #tpu.memory_space<vmem>>, %arg6: memref<64x256xf32, #tpu.memory_space<vmem>>, %arg7: memref<16x256xf32, #tpu.memory_space<vmem>>, %arg8: memref<256x512xbf16, #tpu.memory_space<vmem>>, %arg9: memref<1x512xf32, #tpu.memory_space<vmem>>, %arg10: memref<512x512xbf16, #tpu.memory_space<vmem>>, %arg11: memref<1x512xf32, #tpu.memory_space<vmem>>, %arg12: memref<512x128xbf16, #tpu.memory_space<vmem>>, %arg13: memref<1x128xf32, #tpu.memory_space<vmem>>, %arg14: memref<8x128xf32, #tpu.memory_space<vmem>>, %arg15: memref<64x256xf32, #tpu.memory_space<vmem>>) attributes {dimension_semantics = [#tpu.dimension_semantics<arbitrary>], iteration_bounds = array<i64: 4>, scalar_prefetch = 0 : i64, scratch_operands = 1 : i64, tpu.core_type = #tpu.core_type<tc>, window_params = [{pipeline_mode = #tpu.pipeline_mode<synchronous>, transform_indices = @transform_0, window_bounds = array<i64: 64, 512>}, {transform_indices = @transform_1, window_bounds = array<i64: 512, 256>}, {transform_indices = @transform_2, window_bounds = array<i64: 1, 256>}, {transform_indices = @transform_3, window_bounds = array<i64: 256, 256>}, {pipeline_mode = #tpu.pipeline_mode<synchronous>, transform_indices = @transform_4, window_bounds = array<i64: 1, 256>}, {pipeline_mode = #tpu.pipeline_mode<synchronous>, transform_indices = @transform_5, window_bounds = array<i64: 64, 256>}, {pipeline_mode = #tpu.pipeline_mode<synchronous>, transform_indices = @transform_6, window_bounds = array<i64: 16, 256>}, {pipeline_mode = #tpu.pipeline_mode<synchronous>, transform_indices = @transform_7, window_bounds = array<i64: 256, 512>}, {pipeline_mode = #tpu.pipeline_mode<synchronous>, transform_indices = @transform_8, window_bounds = array<i64: 1, 512>}, {pipeline_mode = #tpu.pipeline_mode<synchronous>, transform_indices = @transform_9, window_bounds = array<i64: 512, 512>}, {pipeline_mode = #tpu.pipeline_mode<synchronous>, transform_indices = @transform_10, window_bounds = array<i64: 1, 512>}, {pipeline_mode = #tpu.pipeline_mode<synchronous>, transform_indices = @transform_11, window_bounds = array<i64: 512, 128>}, {pipeline_mode = #tpu.pipeline_mode<synchronous>, transform_indices = @transform_12, window_bounds = array<i64: 1, 128>}, {pipeline_mode = #tpu.pipeline_mode<synchronous>, transform_indices = @transform_13, window_bounds = array<i64: 8, 128>}]} {
    %c0_i32 = arith.constant 0 : i32
    %0 = arith.cmpi eq, %arg0, %c0_i32 : i32
    %1 = arith.extui %0 : i1 to i32
    %c0_i32_0 = arith.constant 0 : i32
    %2 = arith.cmpi ne, %1, %c0_i32_0 : i32
    scf.if %2 {
      %cst_15 = arith.constant 0.000000e+00 : f32
      %20 = vector.broadcast %cst_15 : f32 to vector<64x256xf32>
      %c0_16 = arith.constant 0 : index
      %c0_17 = arith.constant 0 : index
      %21 = vector.load %arg15[%c0_16, %c0_17] : memref<64x256xf32, #tpu.memory_space<vmem>>, vector<64x256xf32>
      tpu.vector_store %arg15[%c0_16, %c0_17], %20 {strides = array<i32>} : memref<64x256xf32, #tpu.memory_space<vmem>>, vector<64x256xf32>,
    } else {
    }
    %c0 = arith.constant 0 : index
    %c0_1 = arith.constant 0 : index
    %3 = vector.load %arg1[%c0, %c0_1] : memref<64x512xbf16, #tpu.memory_space<vmem>>, vector<64x512xbf16>
    %c0_2 = arith.constant 0 : index
    %c0_3 = arith.constant 0 : index
    %4 = vector.load %arg2[%c0_2, %c0_3] : memref<512x256xbf16, #tpu.memory_space<vmem>>, vector<512x256xbf16>
    %cst = arith.constant dense<0.000000e+00> : vector<64x256xf32>
    %5 = tpu.matmul %3, %4, %cst {dimension_numbers = #tpu.dot_dimension_numbers<[1], [0], [0], [1], [0, 0, 1, 1], [], []>} : vector<64x512xbf16>, vector<512x256xbf16>, vector<64x256xf32> -> vector<64x256xf32>
    %c0_4 = arith.constant 0 : index
    %c0_5 = arith.constant 0 : index
    %6 = vector.load %arg3[%c0_4, %c0_5] : memref<1x256xf32, #tpu.memory_space<vmem>>, vector<1x256xf32>
    %7 = vector.broadcast %6 : vector<1x256xf32> to vector<64x256xf32>
    %8 = arith.addf %5, %7 : vector<64x256xf32>
    %cst_6 = arith.constant 0.000000e+00 : f32
    %9 = vector.broadcast %cst_6 : f32 to vector<64x256xf32>
    %10 = arith.maximumf %8, %9 : vector<64x256xf32>
    %c0_7 = arith.constant 0 : index
    %c0_8 = arith.constant 0 : index
    %11 = vector.load %arg15[%c0_7, %c0_8] : memref<64x256xf32, #tpu.memory_space<vmem>>, vector<64x256xf32>
    %12 = arith.truncf %10 : vector<64x256xf32> to vector<64x256xbf16>
    %c0_9 = arith.constant 0 : index
    %c0_10 = arith.constant 0 : index
    %13 = vector.load %arg4[%c0_9, %c0_10] : memref<256x256xbf16, #tpu.memory_space<vmem>>, vector<256x256xbf16>
    %cst_11 = arith.constant dense<0.000000e+00> : vector<64x256xf32>
    %14 = tpu.matmul %12, %13, %cst_11 {dimension_numbers = #tpu.dot_dimension_numbers<[1], [0], [0], [1], [0, 0, 1, 1], [], []>} : vector<64x256xbf16>, vector<256x256xbf16>, vector<64x256xf32> -> vector<64x256xf32>
    %15 = arith.addf %11, %14 : vector<64x256xf32>
    %c0_12 = arith.constant 0 : index
    %c0_13 = arith.constant 0 : index
    %16 = vector.load %arg15[%c0_12, %c0_13] : memref<64x256xf32, #tpu.memory_space<vmem>>, vector<64x256xf32>
    tpu.vector_store %arg15[%c0_12, %c0_13], %15 {strides = array<i32>} : memref<64x256xf32, #tpu.memory_space<vmem>>, vector<64x256xf32>,
    %c3_i32 = arith.constant 3 : i32
    %17 = arith.cmpi eq, %arg0, %c3_i32 : i32
    %18 = arith.extui %17 : i1 to i32
    %c0_i32_14 = arith.constant 0 : i32
    %19 = arith.cmpi ne, %18, %c0_i32_14 : i32
    scf.if %19 {
      %c0_15 = arith.constant 0 : index
      %c0_16 = arith.constant 0 : index
      %20 = vector.load %arg15[%c0_15, %c0_16] : memref<64x256xf32, #tpu.memory_space<vmem>>, vector<64x256xf32>
      %c0_17 = arith.constant 0 : index
      %c0_18 = arith.constant 0 : index
      %21 = vector.load %arg5[%c0_17, %c0_18] : memref<1x256xf32, #tpu.memory_space<vmem>>, vector<1x256xf32>
      %22 = vector.broadcast %21 : vector<1x256xf32> to vector<64x256xf32>
      %23 = arith.addf %20, %22 : vector<64x256xf32>
      %c0_19 = arith.constant 0 : index
      %c0_20 = arith.constant 0 : index
      %24 = vector.load %arg6[%c0_19, %c0_20] : memref<64x256xf32, #tpu.memory_space<vmem>>, vector<64x256xf32>
      %c0_21 = arith.constant 0 : index
      %c0_22 = arith.constant 0 : index
      %25 = vector.load %arg7[%c0_21, %c0_22] : memref<16x256xf32, #tpu.memory_space<vmem>>, vector<16x256xf32>
      %c0_23 = arith.constant 0 : index
      %c0_24 = arith.constant 0 : index
      %26 = vector.load %arg8[%c0_23, %c0_24] : memref<256x512xbf16, #tpu.memory_space<vmem>>, vector<256x512xbf16>
      %c0_25 = arith.constant 0 : index
      %c0_26 = arith.constant 0 : index
      %27 = vector.load %arg9[%c0_25, %c0_26] : memref<1x512xf32, #tpu.memory_space<vmem>>, vector<1x512xf32>
      %c0_27 = arith.constant 0 : index
      %c0_28 = arith.constant 0 : index
      %28 = vector.load %arg10[%c0_27, %c0_28] : memref<512x512xbf16, #tpu.memory_space<vmem>>, vector<512x512xbf16>
      %c0_29 = arith.constant 0 : index
      %c0_30 = arith.constant 0 : index
      %29 = vector.load %arg11[%c0_29, %c0_30] : memref<1x512xf32, #tpu.memory_space<vmem>>, vector<1x512xf32>
      %c0_31 = arith.constant 0 : index
      %c0_32 = arith.constant 0 : index
      %30 = vector.load %arg12[%c0_31, %c0_32] : memref<512x128xbf16, #tpu.memory_space<vmem>>, vector<512x128xbf16>
      %c0_33 = arith.constant 0 : index
      %c0_34 = arith.constant 0 : index
      %31 = vector.load %arg13[%c0_33, %c0_34] : memref<1x128xf32, #tpu.memory_space<vmem>>, vector<1x128xf32>
      %32 = arith.addf %23, %24 : vector<64x256xf32>
      %33 = arith.truncf %32 : vector<64x256xf32> to vector<64x256xbf16>
      %34 = arith.truncf %25 : vector<16x256xf32> to vector<16x256xbf16>
      %cst_35 = arith.constant dense<0.000000e+00> : vector<16x64xf32>
      %35 = tpu.matmul %34, %33, %cst_35 {dimension_numbers = #tpu.dot_dimension_numbers<[1], [1], [0], [0], [0, 0, 1, 0], [], []>} : vector<16x256xbf16>, vector<64x256xbf16>, vector<16x64xf32> -> vector<16x64xf32>
      %cst_36 = arith.constant 6.250000e-02 : f32
      %36 = vector.broadcast %cst_36 : f32 to vector<16x64xf32>
      %37 = arith.mulf %35, %36 : vector<16x64xf32>
      %cst_37 = arith.constant dense<0xFF800000> : vector<16xf32>
      %38 = vector.multi_reduction <maximumf>, %37, %cst_37 [1] : vector<16x64xf32> to vector<16xf32>
      %39 = vector.shape_cast %38 : vector<16xf32> to vector<16x1xf32>
      %40 = vector.broadcast %39 : vector<16x1xf32> to vector<16x64xf32>
      %41 = arith.subf %37, %40 : vector<16x64xf32>
      %42 = math.exp %41 : vector<16x64xf32>
      %cst_38 = arith.constant dense<0.000000e+00> : vector<16xf32>
      %43 = vector.multi_reduction <add>, %42, %cst_38 [1] : vector<16x64xf32> to vector<16xf32>
      %44 = vector.shape_cast %43 : vector<16xf32> to vector<16x1xf32>
      %45 = tpu.reciprocal %44 {approx = true} : vector<16x1xf32> -> vector<16x1xf32>
      %46 = vector.broadcast %45 : vector<16x1xf32> to vector<16x64xf32>
      %47 = arith.mulf %42, %46 : vector<16x64xf32>
      %48 = arith.truncf %47 : vector<16x64xf32> to vector<16x64xbf16>
      %49 = arith.truncf %23 : vector<64x256xf32> to vector<64x256xbf16>
      %cst_39 = arith.constant dense<0.000000e+00> : vector<16x256xf32>
      %50 = tpu.matmul %48, %49, %cst_39 {dimension_numbers = #tpu.dot_dimension_numbers<[1], [0], [0], [1], [0, 0, 1, 1], [], []>} : vector<16x64xbf16>, vector<64x256xbf16>, vector<16x256xf32> -> vector<16x256xf32>
      %51 = arith.addf %25, %50 : vector<16x256xf32>
      %52 = vector.extract_strided_slice %51 {offsets = [0, 0], sizes = [8, 256], strides = [1, 1]} : vector<16x256xf32> to vector<8x256xf32>
      %53 = arith.truncf %52 : vector<8x256xf32> to vector<8x256xbf16>
      %cst_40 = arith.constant dense<0.000000e+00> : vector<8x512xf32>
      %54 = tpu.matmul %53, %26, %cst_40 {dimension_numbers = #tpu.dot_dimension_numbers<[1], [0], [0], [1], [0, 0, 1, 1], [], []>} : vector<8x256xbf16>, vector<256x512xbf16>, vector<8x512xf32> -> vector<8x512xf32>
      %55 = vector.broadcast %27 : vector<1x512xf32> to vector<8x512xf32>
      %56 = arith.addf %54, %55 : vector<8x512xf32>
      %cst_41 = arith.constant 0.000000e+00 : f32
      %57 = vector.broadcast %cst_41 : f32 to vector<8x512xf32>
      %58 = arith.maximumf %56, %57 : vector<8x512xf32>
      %59 = arith.truncf %58 : vector<8x512xf32> to vector<8x512xbf16>
      %cst_42 = arith.constant dense<0.000000e+00> : vector<8x512xf32>
      %60 = tpu.matmul %59, %28, %cst_42 {dimension_numbers = #tpu.dot_dimension_numbers<[1], [0], [0], [1], [0, 0, 1, 1], [], []>} : vector<8x512xbf16>, vector<512x512xbf16>, vector<8x512xf32> -> vector<8x512xf32>
      %61 = vector.broadcast %29 : vector<1x512xf32> to vector<8x512xf32>
      %62 = arith.addf %60, %61 : vector<8x512xf32>
      %cst_43 = arith.constant 0.000000e+00 : f32
      %63 = vector.broadcast %cst_43 : f32 to vector<8x512xf32>
      %64 = arith.maximumf %62, %63 : vector<8x512xf32>
      %65 = arith.truncf %64 : vector<8x512xf32> to vector<8x512xbf16>
      %cst_44 = arith.constant dense<0.000000e+00> : vector<8x128xf32>
      %66 = tpu.matmul %65, %30, %cst_44 {dimension_numbers = #tpu.dot_dimension_numbers<[1], [0], [0], [1], [0, 0, 1, 1], [], []>} : vector<8x512xbf16>, vector<512x128xbf16>, vector<8x128xf32> -> vector<8x128xf32>
      %67 = vector.broadcast %31 : vector<1x128xf32> to vector<8x128xf32>
      %68 = arith.addf %66, %67 : vector<8x128xf32>
      %69 = tpu.iota {dimensions = array<i32: 1>} : vector<8x128xi32>
      %c4_i32 = arith.constant 4 : i32
      %70 = vector.broadcast %c4_i32 : i32 to vector<8x128xi32>
      %71 = arith.cmpi slt, %69, %70 : vector<8x128xi32>
      %72 = arith.negf %68 : vector<8x128xf32>
      %73 = math.exp %72 : vector<8x128xf32>
      %cst_45 = arith.constant 1.000000e+00 : f32
      %74 = vector.broadcast %cst_45 : f32 to vector<8x128xf32>
      %75 = arith.addf %74, %73 : vector<8x128xf32>
      %76 = arith.divf %74, %75 : vector<8x128xf32>
      %77 = arith.select %71, %76, %68 : vector<8x128xi1>, vector<8x128xf32>
      %c0_46 = arith.constant 0 : index
      %c0_47 = arith.constant 0 : index
      %78 = vector.load %arg14[%c0_46, %c0_47] : memref<8x128xf32, #tpu.memory_space<vmem>>, vector<8x128xf32>
      tpu.vector_store %arg14[%c0_46, %c0_47], %77 {strides = array<i32>} : memref<8x128xf32, #tpu.memory_space<vmem>>, vector<8x128xf32>,
    } else {
    }
    return
  }
  func.func @transform_0(%arg0: i32) -> (i32, i32) {
    %c0_i32 = arith.constant 0 : i32
    %c0_i32_0 = arith.constant 0 : i32
    %c0_i32_1 = arith.constant 0 : i32
    return %c0_i32, %c0_i32_0 : i32, i32
  }
  func.func @transform_1(%arg0: i32) -> (i32, i32) {
    %c0_i32 = arith.constant 0 : i32
    %c0_i32_0 = arith.constant 0 : i32
    return %c0_i32, %arg0 : i32, i32
  }
  func.func @transform_2(%arg0: i32) -> (i32, i32) {
    %c0_i32 = arith.constant 0 : i32
    %c0_i32_0 = arith.constant 0 : i32
    return %c0_i32, %arg0 : i32, i32
  }
  func.func @transform_3(%arg0: i32) -> (i32, i32) {
    %c0_i32 = arith.constant 0 : i32
    %c0_i32_0 = arith.constant 0 : i32
    return %arg0, %c0_i32 : i32, i32
  }
  func.func @transform_4(%arg0: i32) -> (i32, i32) {
    %c0_i32 = arith.constant 0 : i32
    %c0_i32_0 = arith.constant 0 : i32
    %c0_i32_1 = arith.constant 0 : i32
    return %c0_i32, %c0_i32_0 : i32, i32
  }
  func.func @transform_5(%arg0: i32) -> (i32, i32) {
    %c0_i32 = arith.constant 0 : i32
    %c0_i32_0 = arith.constant 0 : i32
    %c0_i32_1 = arith.constant 0 : i32
    return %c0_i32, %c0_i32_0 : i32, i32
  }
  func.func @transform_6(%arg0: i32) -> (i32, i32) {
    %c0_i32 = arith.constant 0 : i32
    %c0_i32_0 = arith.constant 0 : i32
    %c0_i32_1 = arith.constant 0 : i32
    return %c0_i32, %c0_i32_0 : i32, i32
  }
  func.func @transform_7(%arg0: i32) -> (i32, i32) {
    %c0_i32 = arith.constant 0 : i32
    %c0_i32_0 = arith.constant 0 : i32
    %c0_i32_1 = arith.constant 0 : i32
    return %c0_i32, %c0_i32_0 : i32, i32
  }
  func.func @transform_8(%arg0: i32) -> (i32, i32) {
    %c0_i32 = arith.constant 0 : i32
    %c0_i32_0 = arith.constant 0 : i32
    %c0_i32_1 = arith.constant 0 : i32
    return %c0_i32, %c0_i32_0 : i32, i32
  }
  func.func @transform_9(%arg0: i32) -> (i32, i32) {
    %c0_i32 = arith.constant 0 : i32
    %c0_i32_0 = arith.constant 0 : i32
    %c0_i32_1 = arith.constant 0 : i32
    return %c0_i32, %c0_i32_0 : i32, i32
  }
  func.func @transform_10(%arg0: i32) -> (i32, i32) {
    %c0_i32 = arith.constant 0 : i32
    %c0_i32_0 = arith.constant 0 : i32
    %c0_i32_1 = arith.constant 0 : i32
    return %c0_i32, %c0_i32_0 : i32, i32
  }
  func.func @transform_11(%arg0: i32) -> (i32, i32) {
    %c0_i32 = arith.constant 0 : i32
    %c0_i32_0 = arith.constant 0 : i32
    %c0_i32_1 = arith.constant 0 : i32
    return %c0_i32, %c0_i32_0 : i32, i32
  }
  func.func @transform_12(%arg0: i32) -> (i32, i32) {
    %c0_i32 = arith.constant 0 : i32
    %c0_i32_0 = arith.constant 0 : i32
    %c0_i32_1 = arith.constant 0 : i32
    return %c0_i32, %c0_i32_0 : i32, i32
  }
  func.func @transform_13(%arg0: i32) -> (i32, i32) {
    %c0_i32 = arith.constant 0 : i32
    %c0_i32_0 = arith.constant 0 : i32
    %c0_i32_1 = arith.constant 0 : i32
    return %c0_i32, %c0_i32_0 : i32, i32
  }
}

</mosaic_0001>

<bundles_post_ra>
// kernel: tpu_custom_call.1
= control target key start
LH: loop header
LB: loop body
LE: loop exit
PB: predicated region body
PF: predicated region fallthrough
CT: control target
= control target key end

     0   :  { %s6955_s0 = inlined_call_operand.hbm [shape: bf16[64,512], index: 0, kind: input, shape index: {}]   ;;  %s6956_s1 = inlined_call_operand.hbm [shape: bf16[512,1024], index: 1, kind: input, shape index: {}]   ;;  %s6957_s2 = inlined_call_operand.hbm [shape: f32[1,1024], index: 2, kind: input, shape index: {}]   ;;  %s6958_s3 = inlined_call_operand.hbm [shape: bf16[1024,256], index: 3, kind: input, shape index: {}]   ;;  %s6959_s4 = inlined_call_operand.hbm [shape: f32[1,256], index: 4, kind: input, shape index: {}]   ;;  %s6960_s5 = inlined_call_operand.hbm [shape: f32[64,256], index: 5, kind: input, shape index: {}]   ;;  %s6961_s6 = inlined_call_operand.hbm [shape: f32[16,256], index: 6, kind: input, shape index: {}]   ;;  %s6962_s7 = inlined_call_operand.hbm [shape: bf16[256,512], index: 7, kind: input, shape index: {}]   ;;  %s6963_s8 = inlined_call_operand.vmem [shape: f32[1,512], index: 8, kind: input, shape index: {}]   ;;  %s6964_s9 = inlined_call_operand.hbm [shape: bf16[512,512], index: 9, kind: input, shape index: {}]   ;;  %s6965_s10 = inlined_call_operand.vmem [shape: f32[1,512], index: 10, kind: input, shape index: {}]   ;;  %s6966_s11 = inlined_call_operand.hbm [shape: bf16[512,128], index: 11, kind: input, shape index: {}]   ;;  %s6967_s12 = inlined_call_operand.vmem [shape: f32[1,128], index: 12, kind: input, shape index: {}]   ;;  %s6968_s13 = inlined_call_operand.hbm [shape: f32[8,128], index: 13, kind: output, shape index: {}]  }
   0x1   :  { %6978 = sst [smem:[#allocation32_spill]] %s6955_s0 }
   0x2   :  { %6979 = sst [smem:[#allocation33_spill]] %s6956_s1 }
   0x3   :  { %6980 = sst [smem:[#allocation34_spill]] %s6959_s4 }
   0x4   :  { %6981 = sst [smem:[#allocation35_spill]] %s6960_s5 }
   0x5   :  { %6982 = sst [smem:[#allocation36_spill]] %s6961_s6 }
   0x6   :  { %6983 = sst [smem:[#allocation37_spill]] %s6962_s7 }
   0x7   :  { %6984 = sst [smem:[#allocation38_spill]] %s6964_s9 }
   0x8   :  { %6985 = sst [smem:[#allocation39_spill]] %s6967_s12 }
   0x9   :  { %6986 = sst [smem:[#allocation40_spill]] %s6968_s13 }
   0xa   :  { %18 = vsyncpa [#allocation4], 0 }
   0xb   :  { %19 = vsyncpa [#allocation7], 0 }
   0xc   :  { %21 = vsyncpa [#allocation7 + $0x1], 0 }
   0xd   :  { %22 = vsyncpa [#allocation10], 0 }
   0xe   :  { %24 = vsyncpa [#allocation10 + $0x1], 0 }
   0xf   :  { %25 = vsyncpa [#allocation13], 0 }
  0x10   :  { %26 = vsyncpa [#allocation16], 0 }
  0x11   :  { %27 = vsyncpa [#allocation19], 0 }
  0x12   :  { %28 = vsyncpa [#allocation5], 0  ;;  %s6302_s25 = smov 0   ;;  %s6304_s26 = smov 0  }
  0x13   :  { %s6306_s27 = smov 0   ;;  %s6308_s28 = smov 0  }
  0x14 LB: > { %6987 = sst [smem:[#allocation29_spill]] %s6210_s27  ;;  %s6326_s15 = sadd.s32 4294967295, %s6214_s28   ;;  %s6214_s28 = sphi %s6308_s28, %s7010_s28   ;;  %s6210_s27 = sphi %s6306_s27, %s7012_s27   ;;  %s6206_s26 = sphi %s6304_s26, %s7014_s26   ;;  %s6202_s25 = sphi %s6302_s25, %s7013_s25  }
  0x15   : > { %s6988_s4 = sld [smem:[#allocation34_spill]]  ;;  %p3955_p0 = scmp.ge.s32.totalorder %s6214_s28, 1 }
  0x16   : > { %p76_p1 = scmp.eq.s32.totalorder %s6326_s15, 0  ;;  %p348_p2 = scmp.lt.s32.totalorder %s6214_s28, 5 }
  0x17   : > { %p3956_p3 = scmp.ne.s32.totalorder %s6326_s15, 0  ;;  %s6216_s17 = smov [#allocation11]  }
  0x18   : > { %p6332_p4 = pnand %p3955_p0, %p348_p2  ;;  %s376_s18 = sshll.u32 %s6216_s17, 4  ;;  %s377_s18 = int_to_ptr.vmem [resolvable:$true] %s376_s18 }
  0x19   : > { %s6990_s5 = sld [smem:[#allocation35_spill]]  ;;  %s6217_s30 = smov [#allocation12]  }
  0x1a   : > { %p5714_p5 = pneg %p6332_p4  ;;  %s6992_s7 = sld [smem:[#allocation37_spill]] }
  0x1b   : > { %s374_s14 = sshll.u32 %s6988_s4, 4  ;;  %s387_s17 = sshll.u32 %s6217_s30, 4  ;;  %s375_s14 = int_to_ptr.hbm [resolvable:$true] %s374_s14  ;;  %s388_s17 = int_to_ptr.vmem [resolvable:$true] %s387_s17 }
  0x1c   : > { %p6343_p6 = pnand %p5714_p5, %p76_p1  ;;  %s6969_s19 = smov 256  }
  0x1d   : > { %s6971_s20 = smov 16   ;;  %s6220_s23 = smov [#allocation15]  }
  0x1e   : > { %5720 = dma.hbm_to_vmem [thread:$0]  (!%p6343_p6), %s375_s14, 32, %s377_s18, [#allocation10]  }
  0x1f   : > { %s385_s21 = sshll.u32 %s6990_s5, 4  ;;  %s415_s24 = sshll.u32 %s6220_s23, 4  ;;  %s386_s21 = int_to_ptr.hbm [resolvable:$true] %s385_s21  ;;  %s416_s24 = int_to_ptr.vmem [resolvable:$true] %s415_s24 }
  0x20   : > { %s413_s29 = sshll.u32 %s6992_s7, 4  ;;  %s6363_s14 = sadd.s32 1, %s6214_s28   ;;  %s414_s29 = int_to_ptr.hbm [resolvable:$true] %s413_s29 }
  0x21   : > { %5723 = dma.hbm_to_vmem [thread:$0]  (!%p6343_p6), %s386_s21, 2048, %s388_s17, [#allocation13], %s6969_s19, %s6969_s19, %s6971_s20  }
  0x22   : > { %5729 = dma.hbm_to_vmem [thread:$0]  (!%p6343_p6), %s414_s29, 8192, %s416_s24, [#allocation16], %s6969_s19, %s6969_s19, %s6971_s20  }
  0x23   : > { %6993 = sst [smem:[#allocation30_spill]] %s6363_s14  ;;  %s59_s18 = ssub.s32 %s6214_s28, %s6363_s14 }
  0x24   : > { %s62_s30 = sadd.s32 1, %s6210_s27  ;;  %p60_p7 = scmp.eq.s32.totalorder %s59_s18, 0 }
  0x25   : > { %p69_p8 = scmp.ne.s32.totalorder %s6210_s27, %s6206_s26  ;;  %p70_p9 = scmp.eq.s32.totalorder %s6214_s28, 0 }
  0x26   : > { %p75_p10 = scmp.ne.s32.totalorder %s6206_s26, %s6202_s25  ;;  %p5753_p13 = scmp.lt.s32.totalorder %s6214_s28, 4 }
  0x27   : > { %s6374_s21 = scalar_select %p60_p7, %s6210_s27, %s62_s30  }
  0x28   : > { %p6376_p11 = por %p70_p9, %p69_p8  ;;  %p6382_p12 = por %p76_p1, %p75_p10 }
  0x29   : > { %6994 = sst [smem:[#allocation31_spill]] %s6374_s21  ;;  %s6389_s24 = sand.u32 1, %s6210_s27  }
  0x2a   : > { %s3964_s18 = sshll.u32 %s6389_s24, 9  ;;  %s5337_s25 = sshll.u32 %s6214_s28, 3 }
  0x2b   : > { %s6997_s1 = sld [smem:[#allocation33_spill]]  ;;  %s470_s5 = scalar_lea.vmem [#allocation6], %s3964_s18 }
  0x2c   : > { %s478_s7 = sshll.u32 %s470_s5, 4  ;;  %p6398_p0 = pnand %p5753_p13, %p6376_p11  ;;  %s479_s7 = int_to_ptr.vmem [resolvable:$true] %s478_s7 }
  0x2d   : > { %s6999_s0 = sld [smem:[#allocation32_spill]]  ;;  %s7000_s13 = sand.u32 1, %s6214_s28  }
  0x2e   : > { %s6407_s12 = scalar_lea.sflag [#allocation7], %s7000_s13  ;;  %p5918_p5 = pneg %p6398_p0 }
  0x31   : > { %s475_s20 = scalar_lea.hbm %s6997_s1, %s5337_s25  ;;  %s5921_s27 = scalar_lea.hbm %s6997_s1, 2048 }
  0x32   : > { %s476_s4 = sshll.u32 %s475_s20, 4  ;;  %s477_s4 = int_to_ptr.hbm [resolvable:$true] %s476_s4 }
  0x33   : > { %s359_s14 = sshll.u32 %s6999_s0, 4  ;;  %s5914_s19 = sshra.s32 %s477_s4, 4  ;;  %s5915_s19 = int_to_ptr.hbm [resolvable:$true] %s5914_s19  ;;  %s360_s14 = int_to_ptr.hbm [resolvable:$true] %s359_s14 }
  0x34   : > { %s5916_s20 = scalar_lea.hbm %s5915_s19, 512  ;;  %p5922_p9 = scmp.lt.s32.totalorder %s5915_s19, %s6997_s1 }
  0x35   : > { %p5917_p2 = scmp.ne.s32.totalorder %s5915_s19, %s5916_s20  ;;  %p5923_p10 = scmp.lt.s32.totalorder %s5921_s27, %s5916_s20 }
  0x37   : > { %p5919_p7 = pnand %p5918_p5, %p5917_p2  ;;  %p5924_p11 = por %p5923_p10, %p5922_p9 }
  0x39   : > { %p5920_p8 = pneg %p5919_p7 }
  0x3b   : > { %p5925_p13 = pnand %p5924_p11, %p5920_p8 }
  0x3d   : > { %5928 = shalt.err (!%p5925_p13)
}
  0x3e   : > { %s6221_s13 = smov 512   ;;  %s6976_s25 = smov 128  }
  0x3f   : > { %s6977_s30 = smov 8   ;;  %s6224_s5 = smov [#allocation3]  }
  0x40   : > { %5739 = dma.hbm_to_vmem [thread:$0]  (!%p6398_p0), %s477_s4, 8192, %s479_s7, %s6407_s12, %s6221_s13, %s6976_s25, %s6977_s30  }
  0x41   : > { %s361_s17 = sshll.u32 %s6224_s5, 4  ;;  %s7001_s6 = sld [smem:[#allocation36_spill]]  ;;  %s362_s17 = int_to_ptr.vmem [resolvable:$true] %s361_s17 }
  0x42   : > { %s7002_s27 = smov 16   ;;  %s7003_s18 = smov 256  }
  0x43   : > { %5717 = dma.hbm_to_vmem [thread:$0]  (!%p6343_p6), %s360_s14, 2048, %s362_s17, [#allocation4], %s7003_s18, %s7003_s18, %s7002_s27  }
  0x44   : > { %s7004_s9 = sld [smem:[#allocation38_spill]]  ;;  %s6225_s7 = smov [#allocation14]  }
  0x45   : > { %s401_s13 = sshll.u32 %s6225_s7, 4  ;;  %s6226_s5 = smov [#allocation17]   ;;  %s402_s13 = int_to_ptr.vmem [resolvable:$true] %s401_s13 }
  0x46   : > { %s432_s23 = sshll.u32 %s6226_s5, 4  ;;  %s447_s17 = sshll.u32 %s6966_s11, 4  ;;  %s433_s23 = int_to_ptr.vmem [resolvable:$true] %s432_s23  ;;  %s448_s17 = int_to_ptr.hbm [resolvable:$true] %s447_s17 }
  0x47   : > { %s399_s20 = sshll.u32 %s7001_s6, 4  ;;  %s6227_s0 = smov [#allocation18]   ;;  %s400_s20 = int_to_ptr.hbm [resolvable:$true] %s399_s20 }
  0x48   : > { %5726 = dma.hbm_to_vmem [thread:$0]  (!%p6343_p6), %s400_s20, 512, %s402_s13, [#allocation13], %s7003_s18, %s7003_s18, %s7002_s27  }
  0x49   : > { %s449_s1 = sshll.u32 %s6227_s0, 4  ;;  %s3967_s7 = sshll.u32 %s6389_s24, 1  ;;  %s450_s1 = int_to_ptr.vmem [resolvable:$true] %s449_s1 }
  0x4a   : > { %s430_s4 = sshll.u32 %s7004_s9, 4  ;;  %s6228_s25 = smov 64   ;;  %s431_s4 = int_to_ptr.hbm [resolvable:$true] %s430_s4 }
  0x4b   : > { %5732 = dma.hbm_to_vmem [thread:$0]  (!%p6343_p6), %s431_s4, 16384, %s433_s23, [#allocation16], %s7003_s18, %s7003_s18, %s7002_s27  }
  0x4c   : > { %s6229_s20 = smov 4   ;;  %s3968_s13 = sshll.u32 %s6214_s28, 1 }
  0x4d   : > { %5735 = dma.hbm_to_vmem [thread:$0]  (!%p6343_p6), %s448_s17, 4096, %s450_s1, [#allocation19], %s6228_s25, %s6228_s25, %s6229_s20  }
  0x4e   : > { %s496_s14 = scalar_lea.hbm %s6957_s2, %s3968_s13  ;;  %s492_s30 = scalar_lea.vmem [#allocation8], %s3967_s7 }
  0x4f   : > { %s500_s6 = sshll.u32 %s492_s30, 4  ;;  %s498_s9 = sshll.u32 %s496_s14, 4  ;;  %s501_s6 = int_to_ptr.vmem [resolvable:$true] %s500_s6  ;;  %s499_s9 = int_to_ptr.hbm [resolvable:$true] %s498_s9 }
  0x50   : > { %s6064_s27 = sshra.s32 %s499_s9, 4  ;;  %s6071_s4 = scalar_lea.hbm %s6957_s2, 8  ;;  %s6065_s27 = int_to_ptr.hbm [resolvable:$true] %s6064_s27 }
  0x51   : > { %s6066_s18 = scalar_lea.hbm %s6065_s27, 2  ;;  %p6072_p6 = scmp.lt.s32.totalorder %s6065_s27, %s6957_s2 }
  0x52   : > { %p6067_p2 = scmp.ne.s32.totalorder %s6065_s27, %s6066_s18  ;;  %p6073_p9 = scmp.lt.s32.totalorder %s6071_s4, %s6066_s18 }
  0x54   : > { %p6069_p7 = pnand %p6067_p2, %p5918_p5  ;;  %p6074_p10 = por %p6073_p9, %p6072_p6 }
  0x56   : > { %p6070_p8 = pneg %p6069_p7 }
  0x58   : > { %p6075_p11 = pnand %p6074_p10, %p6070_p8 }
  0x5a   : > { %6078 = shalt.err (!%p6075_p11)
}
  0x5b   : > { %5742 = dma.hbm_to_vmem [thread:$0]  (!%p6398_p0), %s499_s9, 32, %s501_s6, %s6407_s12  }
  0x5c   : > { %s3969_s30 = sshll.u32 %s6389_s24, 8  ;;  %s5339_s0 = sshll.u32 %s6214_s28, 8 }
  0x5d   : > { %s517_s20 = scalar_lea.hbm %s6958_s3, %s5339_s0  ;;  %s511_s5 = scalar_lea.vmem [#allocation9], %s3969_s30 }
  0x5e   : > { %s518_s13 = sshll.u32 %s517_s20, 4  ;;  %s520_s19 = sshll.u32 %s511_s5, 4  ;;  %s519_s13 = int_to_ptr.hbm [resolvable:$true] %s518_s13  ;;  %s521_s19 = int_to_ptr.vmem [resolvable:$true] %s520_s19 }
  0x5f   : > { %s7005_s14 = sand.u32 1, %s6214_s28   ;;  %s6094_s18 = sshra.s32 %s519_s13, 4  ;;  %s6095_s18 = int_to_ptr.hbm [resolvable:$true] %s6094_s18 }
  0x60   : > { %s508_s27 = scalar_lea.sflag [#allocation10], %s7005_s14  ;;  %s6096_s22 = scalar_lea.hbm %s6095_s18, 256 }
  0x61   : > { %p6097_p13 = scmp.ne.s32.totalorder %s6095_s18, %s6096_s22  ;;  %s6101_s12 = scalar_lea.hbm %s6958_s3, 1024 }
  0x62   : > { %p6102_p8 = scmp.lt.s32.totalorder %s6095_s18, %s6958_s3  ;;  %p6103_p6 = scmp.lt.s32.totalorder %s6101_s12, %s6096_s22 }
  0x63   : > { %p6099_p2 = pnand %p6097_p13, %p5918_p5 }
  0x64   : > { %p6104_p9 = por %p6103_p6, %p6102_p8 }
  0x65   : > { %p6100_p7 = pneg %p6099_p2 }
  0x67   : > { %p6105_p10 = pnand %p6104_p9, %p6100_p7 }
  0x69   : > { %6108 = shalt.err (!%p6105_p10)
}
  0x6a   : > { %s7006_s28 = smov 8   ;;  %s7007_s4 = smov 128  }
  0x6b   : > { %5745 = dma.hbm_to_vmem [thread:$0]  (!%p6398_p0), %s519_s13, 4096, %s521_s19, %s508_s27, %s7007_s4, %s7007_s4, %s7006_s28  }
  0x6c   : > { %532 = sbr.rel (%p6332_p4) target bundleno = 1691 (0x69b), region = 72 }
  0x71   : > { %6169 = dma.done.wait (%p76_p1), [#allocation4], 2048  }
  0x72   : > { %6171 = vsyncadd (%p76_p1), [#allocation4], 4294965248  ;;  %s539_s23 = sand.u32 1, %s6326_s15   ;;  %s541_s17 = sand.u32 1, %s6206_s26  }
  0x73   : > { %s3975_s30 = sshll.u32 %s541_s17, 9  ;;  %s540_s21 = scalar_lea.sflag [#allocation7], %s539_s23 }
  0x74   : > { %s6497_s0 = scalar_lea.vmem [#allocation6], %s3975_s30 }
  0x75   : > { %6173 = dma.done.wait (%p6382_p12), %s540_s21, 8224  }
  0x76   : > { %6175 = vsyncadd (%p6382_p12), %s540_s21, 4294959072  ;;  %s3976_s16 = sshll.u32 %s541_s17, 1  ;;  %s3977_s1 = sshll.u32 %s541_s17, 8 }
  0x77   : > { %s6503_s7 = scalar_lea.vmem [#allocation8], %s3976_s16  ;;  %s560_s20 = scalar_lea.sflag [#allocation10], %s539_s23 }
  0x78   : > { %s6505_s13 = scalar_lea.vmem [#allocation9], %s3977_s1 }
  0x79   : > { %6177 = dma.done.wait (%p6382_p12), %s560_s20, 4096  }
  0x7a   : > { %6179 = vsyncadd (%p6382_p12), %s560_s20, 4294963200 }
  0x7b   : > { %6181 = dma.done.wait (%p76_p1), [#allocation10], 32  }
  0x7c   : > { %6183 = vsyncadd (%p76_p1), [#allocation10], 4294967264 }
  0x7d   : > { %6185 = dma.done.wait (%p76_p1), [#allocation13], 2560  }
  0x7e   : > { %6187 = vsyncadd (%p76_p1), [#allocation13], 4294964736 }
  0x7f   : > { %6189 = dma.done.wait (%p76_p1), [#allocation16], 24576  }
  0x80   : > { %6191 = vsyncadd (%p76_p1), [#allocation16], 4294942720 }
  0x81   : > { %6193 = dma.done.wait (%p76_p1), [#allocation19], 4096  }
  0x82   : > { %6195 = vsyncadd (%p76_p1), [#allocation19], 4294963200  ;;  %649 = sbr.rel (%p3956_p3) target bundleno = 152 (0x98), region = 116 }
  0x87   : > { %v6230_v0 = vmov 0.0  }
  0x88   : > { %650 = vst [vmem:[#allocation2 + $0x30] sm:$0xff] %v6230_v0 }
  0x89   : > { %651 = vst [vmem:[#allocation2] sm:$0xff] %v6230_v0 }
  0x8a   : > { %652 = vst [vmem:[#allocation2 + $0x58] sm:$0xff] %v6230_v0 }
  0x8b   : > { %653 = vst [vmem:[#allocation2 + $0x18] sm:$0xff] %v6230_v0 }
  0x8c   : > { %654 = vst [vmem:[#allocation2 + $0x50] sm:$0xff] %v6230_v0 }
  0x8d   : > { %655 = vst [vmem:[#allocation2 + $0x68] sm:$0xff] %v6230_v0 }
  0x8e   : > { %656 = vst [vmem:[#allocation2 + $0x8] sm:$0xff] %v6230_v0 }
  0x8f   : > { %657 = vst [vmem:[#allocation2 + $0x48] sm:$0xff] %v6230_v0 }
  0x90   : > { %658 = vst [vmem:[#allocation2 + $0x40] sm:$0xff] %v6230_v0 }
  0x91   : > { %659 = vst [vmem:[#allocation2 + $0x20] sm:$0xff] %v6230_v0 }
  0x92   : > { %660 = vst [vmem:[#allocation2 + $0x10] sm:$0xff] %v6230_v0 }
  0x93   : > { %661 = vst [vmem:[#allocation2 + $0x38] sm:$0xff] %v6230_v0 }
  0x94   : > { %662 = vst [vmem:[#allocation2 + $0x60] sm:$0xff] %v6230_v0 }
  0x95   : > { %663 = vst [vmem:[#allocation2 + $0x70] sm:$0xff] %v6230_v0 }
  0x96   : > { %664 = vst [vmem:[#allocation2 + $0x78] sm:$0xff] %v6230_v0 }
  0x97   : > { %665 = vst [vmem:[#allocation2 + $0x28] sm:$0xff] %v6230_v0 }
  0x98 PF: > { %v4107_v1 = vld [vmem:[%s6497_s0 + $0x70] sm:$0xf]  ;;  %v5371_v2 = vld [vmem:[%s6497_s0 + $0x74] sm:$0xf0]  ;;  %v4099_v12 = vld [vmem:[%s6497_s0 + $0x60] sm:$0xf] }
  0x99   : > { %v4171_v3 = vld [vmem:[%s6497_s0 + $0xf0] sm:$0xf]  ;;  %v4108_v4 = vor.u32 %v5371_v2, %v4107_v1  ;;  %v5387_v5 = vld [vmem:[%s6497_s0 + $0xf4] sm:$0xf0]  ;;  %v5369_v14 = vld [vmem:[%s6497_s0 + $0x64] sm:$0xf0] }
  0x9a   : > { %v4235_v6 = vld [vmem:[%s6497_s0 + $0x170] sm:$0xf]  ;;  %v5403_v7 = vld [vmem:[%s6497_s0 + $0x174] sm:$0xf0]  ;;  %v4172_v8 = vor.u32 %v5387_v5, %v4171_v3  ;;  %v4163_v15 = vld [vmem:[%s6497_s0 + $0xe0] sm:$0xf]  ;;  %v4100_v17 = vor.u32 %v5369_v14, %v4099_v12 }
  0x9b   : > { %v4236_v9 = vor.u32 %v5403_v7, %v4235_v6  ;;  %v4299_v10 = vld [vmem:[%s6497_s0 + $0x1f0] sm:$0xf]  ;;  %v5419_v11 = vld [vmem:[%s6497_s0 + $0x1f4] sm:$0xf0]  ;;  %1152 = vmatpush.bf16.msra.mxu0 %v4108_v4  ;;  %v5385_v16 = vld [vmem:[%s6497_s0 + $0xe4] sm:$0xf0] }
  0x9c   : > { %v4300_v13 = vor.u32 %v5419_v11, %v4299_v10  ;;  %1181 = vmatpush.bf16.msra.mxu1 %v4172_v8  ;;  %v4164_v18 = vor.u32 %v5385_v16, %v4163_v15  ;;  %v4227_v19 = vld [vmem:[%s6497_s0 + $0x160] sm:$0xf]  ;;  %v5401_v20 = vld [vmem:[%s6497_s0 + $0x164] sm:$0xf0]  ;;  %v4091_v24 = vld [vmem:[%s6497_s0 + $0x50] sm:$0xf] }
  0x9d   : > { %1210 = vmatpush.bf16.msra.mxu2 %v4236_v9  ;;  %v4291_v21 = vld [vmem:[%s6497_s0 + $0x1e0] sm:$0xf]  ;;  %v4228_v22 = vor.u32 %v5401_v20, %v4227_v19  ;;  %v5417_v23 = vld [vmem:[%s6497_s0 + $0x1e4] sm:$0xf0]  ;;  %v5367_v25 = vld [vmem:[%s6497_s0 + $0x54] sm:$0xf0] }
  0x9e   : > { %1239 = vmatpush.bf16.msra.mxu3 %v4300_v13  ;;  %v4292_v26 = vor.u32 %v5417_v23, %v4291_v21  ;;  %v4155_v27 = vld [vmem:[%s6497_s0 + $0xd0] sm:$0xf]  ;;  %v5383_v28 = vld [vmem:[%s6497_s0 + $0xd4] sm:$0xf0]  ;;  %v4092_v30 = vor.u32 %v5367_v25, %v4091_v24  ;;  %v4083_v36 = vld [vmem:[%s6497_s0 + $0x40] sm:$0xf] }
  0x9f   : > { %v4219_v29 = vld [vmem:[%s6497_s0 + $0x150] sm:$0xf]  ;;  %1153 = vmatpush.bf16.msra.mxu0 %v4100_v17  ;;  %v5399_v31 = vld [vmem:[%s6497_s0 + $0x154] sm:$0xf0]  ;;  %v4156_v34 = vor.u32 %v5383_v28, %v4155_v27  ;;  %v5365_v37 = vld [vmem:[%s6497_s0 + $0x44] sm:$0xf0] }
  0xa0   : > { %v4283_v32 = vld [vmem:[%s6497_s0 + $0x1d0] sm:$0xf]  ;;  %v5415_v33 = vld [vmem:[%s6497_s0 + $0x1d4] sm:$0xf0]  ;;  %1182 = vmatpush.bf16.msra.mxu1 %v4164_v18  ;;  %v4220_v35 = vor.u32 %v5399_v31, %v4219_v29  ;;  %v4147_v38 = vld [vmem:[%s6497_s0 + $0xc0] sm:$0xf]  ;;  %v4084_v45 = vor.u32 %v5365_v37, %v4083_v36 }
  0xa1   : > { %1211 = vmatpush.bf16.msra.mxu2 %v4228_v22  ;;  %v4284_v39 = vor.u32 %v5415_v33, %v4283_v32  ;;  %v5381_v40 = vld [vmem:[%s6497_s0 + $0xc4] sm:$0xf0]  ;;  %v4211_v41 = vld [vmem:[%s6497_s0 + $0x140] sm:$0xf]  ;;  %v4075_v48 = vld [vmem:[%s6497_s0 + $0x30] sm:$0xf] }
  0xa2   : > { %1240 = vmatpush.bf16.msra.mxu3 %v4292_v26  ;;  %v5397_v42 = vld [vmem:[%s6497_s0 + $0x144] sm:$0xf0]  ;;  %v4275_v43 = vld [vmem:[%s6497_s0 + $0x1c0] sm:$0xf]  ;;  %v4148_v46 = vor.u32 %v5381_v40, %v4147_v38  ;;  %v5363_v49 = vld [vmem:[%s6497_s0 + $0x34] sm:$0xf0] }
  0xa3   : > { %v5413_v44 = vld [vmem:[%s6497_s0 + $0x1c4] sm:$0xf0]  ;;  %1154 = vmatpush.bf16.msra.mxu0 %v4092_v30  ;;  %v4212_v47 = vor.u32 %v5397_v42, %v4211_v41  ;;  %v4139_v50 = vld [vmem:[%s6497_s0 + $0xb0] sm:$0xf]  ;;  %v5379_v52 = vld [vmem:[%s6497_s0 + $0xb4] sm:$0xf0]  ;;  %v4076_v57 = vor.u32 %v5363_v49, %v4075_v48 }
  0xa4   : > { %1183 = vmatpush.bf16.msra.mxu1 %v4156_v34  ;;  %v4276_v51 = vor.u32 %v5413_v44, %v4275_v43  ;;  %v4203_v53 = vld [vmem:[%s6497_s0 + $0x130] sm:$0xf]  ;;  %v5395_v54 = vld [vmem:[%s6497_s0 + $0x134] sm:$0xf0]  ;;  %v4140_v58 = vor.u32 %v5379_v52, %v4139_v50  ;;  %v4067_v60 = vld [vmem:[%s6497_s0 + $0x20] sm:$0xf] }
  0xa5   : > { %1212 = vmatpush.bf16.msra.mxu2 %v4220_v35  ;;  %v4267_v55 = vld [vmem:[%s6497_s0 + $0x1b0] sm:$0xf]  ;;  %v5411_v56 = vld [vmem:[%s6497_s0 + $0x1b4] sm:$0xf0]  ;;  %v4204_v59 = vor.u32 %v5395_v54, %v4203_v53  ;;  %v5361_v61 = vld [vmem:[%s6497_s0 + $0x24] sm:$0xf0] }
  0xa6   : > { %1241 = vmatpush.bf16.msra.mxu3 %v4284_v39  ;;  %v4131_v62 = vld [vmem:[%s6497_s0 + $0xa0] sm:$0xf]  ;;  %v4268_v63 = vor.u32 %v5411_v56, %v4267_v55  ;;  %v5377_v0 = vld [vmem:[%s6497_s0 + $0xa4] sm:$0xf0]  ;;  %v4068_v5 = vor.u32 %v5361_v61, %v4067_v60  ;;  %v4059_v8 = vld [vmem:[%s6497_s0 + $0x10] sm:$0xf] }
  0xa7   : > { %1155 = vmatpush.bf16.msra.mxu0 %v4084_v45  ;;  %v4195_v1 = vld [vmem:[%s6497_s0 + $0x120] sm:$0xf]  ;;  %v5393_v2 = vld [vmem:[%s6497_s0 + $0x124] sm:$0xf0]  ;;  %v4132_v6 = vor.u32 %v5377_v0, %v4131_v62  ;;  %v5359_v9 = vld [vmem:[%s6497_s0 + $0x14] sm:$0xf0] }
  0xa8   : > { %1184 = vmatpush.bf16.msra.mxu1 %v4148_v46  ;;  %v4259_v3 = vld [vmem:[%s6497_s0 + $0x1a0] sm:$0xf]  ;;  %v5409_v4 = vld [vmem:[%s6497_s0 + $0x1a4] sm:$0xf0]  ;;  %v4196_v7 = vor.u32 %v5393_v2, %v4195_v1  ;;  %v4123_v10 = vld [vmem:[%s6497_s0 + $0x90] sm:$0xf]  ;;  %v4060_v18 = vor.u32 %v5359_v9, %v4059_v8 }
  0xa9   : > { %1213 = vmatpush.bf16.msra.mxu2 %v4212_v47  ;;  %v4260_v11 = vor.u32 %v5409_v4, %v4259_v3  ;;  %v5375_v12 = vld [vmem:[%s6497_s0 + $0x94] sm:$0xf0]  ;;  %v4187_v13 = vld [vmem:[%s6497_s0 + $0x110] sm:$0xf]  ;;  %v4051_v17 = vld [vmem:[%s6497_s0] sm:$0xf] }
  0xaa   : > { %1242 = vmatpush.bf16.msra.mxu3 %v4276_v51  ;;  %v5391_v14 = vld [vmem:[%s6497_s0 + $0x114] sm:$0xf0]  ;;  %v4251_v15 = vld [vmem:[%s6497_s0 + $0x190] sm:$0xf]  ;;  %v5357_v19 = vld [vmem:[%s6497_s0 + $0x4] sm:$0xf0]  ;;  %v4124_v22 = vor.u32 %v5375_v12, %v4123_v10 }
  0xab   : > { %1156 = vmatpush.bf16.msra.mxu0 %v4076_v57  ;;  %v5407_v16 = vld [vmem:[%s6497_s0 + $0x194] sm:$0xf0]  ;;  %v4115_v20 = vld [vmem:[%s6497_s0 + $0x80] sm:$0xf]  ;;  %v5373_v21 = vld [vmem:[%s6497_s0 + $0x84] sm:$0xf0]  ;;  %v4188_v23 = vor.u32 %v5391_v14, %v4187_v13  ;;  %v4052_v35 = vor.u32 %v5357_v19, %v4051_v17 }
  0xac   : > { %1185 = vmatpush.bf16.msra.mxu1 %v4140_v58  ;;  %v4179_v24 = vld [vmem:[%s6497_s0 + $0x100] sm:$0xf]  ;;  %v5389_v25 = vld [vmem:[%s6497_s0 + $0x104] sm:$0xf0]  ;;  %v4252_v27 = vor.u32 %v5407_v16, %v4251_v15  ;;  %v5342_v30 = vld [vmem:[#allocation3 + $0xc] sm:$0xf0]  ;;  %v4116_v39 = vor.u32 %v5373_v21, %v4115_v20 }
  0xad   : > { %1214 = vmatpush.bf16.msra.mxu2 %v4204_v59  ;;  %v4243_v26 = vld [vmem:[%s6497_s0 + $0x180] sm:$0xf]  ;;  %v5405_v28 = vld [vmem:[%s6497_s0 + $0x184] sm:$0xf0]  ;;  %v5340_v31 = vld [vmem:[#allocation3 + $0x4] sm:$0xf]  ;;  %v4180_v40 = vor.u32 %v5389_v25, %v4179_v24 }
  0xae   : > { %1243 = vmatpush.bf16.msra.mxu3 %v4268_v63  ;;  %v3987_v29 = vld [vmem:[#allocation3] sm:$0xf]  ;;  %v3989_v32 = vld [vmem:[#allocation3 + $0x10] sm:$0xf0]  ;;  %v4237_v34 = vld [vmem:[%s6497_s0 + $0x178] sm:$0xf0]  ;;  %v4244_v44 = vor.u32 %v5405_v28, %v4243_v26 }
  0xaf   : > { %1157 = vmatpush.bf16.msra.mxu0 %v4068_v5  ;;  %v5402_v33 = vld [vmem:[%s6497_s0 + $0x174] sm:$0xf]  ;;  %v3995_v36 = vld [vmem:[#allocation3 + $0x8] sm:$0xf]  ;;  %v4301_v38 = vld [vmem:[%s6497_s0 + $0x1f8] sm:$0xf0]  ;;  %v6600_v49 = vor.u32 %v5342_v30, %v3987_v29  ;;  %v6605_v54 = vor.u32 %v5340_v31, %v3989_v32 }
  0xb0   : > { %1186 = vmatpush.bf16.msra.mxu1 %v4132_v6  ;;  %v5418_v37 = vld [vmem:[%s6497_s0 + $0x1f4] sm:$0xf]  ;;  %v5343_v41 = vld [vmem:[#allocation3 + $0x14] sm:$0xf0]  ;;  %v5341_v42 = vld [vmem:[#allocation3 + $0xc] sm:$0xf]  ;;  %v4240_v45 = vor.u32 %v5402_v33, %v4237_v34 }
  0xb1   : > { %1215 = vmatpush.bf16.msra.mxu2 %v4196_v7  ;;  %v3997_v43 = vld [vmem:[#allocation3 + $0x18] sm:$0xf0]  ;;  %v5370_v46 = vld [vmem:[%s6497_s0 + $0x74] sm:$0xf]  ;;  %v4304_v50 = vor.u32 %v5418_v37, %v4301_v38  ;;  %v5400_v52 = vld [vmem:[%s6497_s0 + $0x164] sm:$0xf]  ;;  %v6607_v55 = vor.u32 %v5343_v41, %v3995_v36 }
  0xb2   : > { %1244 = vmatpush.bf16.msra.mxu3 %v4260_v11  ;;  %v4109_v47 = vld [vmem:[%s6497_s0 + $0x78] sm:$0xf0]  ;;  %v5386_v48 = vld [vmem:[%s6497_s0 + $0xf4] sm:$0xf]  ;;  %v4229_v53 = vld [vmem:[%s6497_s0 + $0x168] sm:$0xf0]  ;;  %v6611_v58 = vor.u32 %v5341_v42, %v3997_v43 }
  0xb3   : > { %1158 = vmatpush.bf16.msra.mxu0 %v4060_v18  ;;  %v4173_v51 = vld [vmem:[%s6497_s0 + $0xf8] sm:$0xf0]  ;;  %v5416_v56 = vld [vmem:[%s6497_s0 + $0x1e4] sm:$0xf]  ;;  %v4293_v57 = vld [vmem:[%s6497_s0 + $0x1e8] sm:$0xf0]  ;;  %v4112_v59 = vor.u32 %v5370_v46, %v4109_v47  ;;  %v4232_v61 = vor.u32 %v5400_v52, %v4229_v53 }
  0xb4   : > { %1187 = vmatpush.bf16.msra.mxu1 %v4124_v22  ;;  %v4176_v60 = vor.u32 %v5386_v48, %v4173_v51  ;;  %v5368_v62 = vld [vmem:[%s6497_s0 + $0x64] sm:$0xf]  ;;  %v4101_v63 = vld [vmem:[%s6497_s0 + $0x68] sm:$0xf0]  ;;  %v4296_v1 = vor.u32 %v5416_v56, %v4293_v57  ;;  %v5398_v3 = vld [vmem:[%s6497_s0 + $0x154] sm:$0xf] }
  0xb5   : > { %1216 = vmatpush.bf16.msra.mxu2 %v4188_v23  ;;  %v5384_v0 = vld [vmem:[%s6497_s0 + $0xe4] sm:$0xf]  ;;  %v4165_v2 = vld [vmem:[%s6497_s0 + $0xe8] sm:$0xf0]  ;;  %v4221_v4 = vld [vmem:[%s6497_s0 + $0x158] sm:$0xf0]  ;;  %v4104_v7 = vor.u32 %v5368_v62, %v4101_v63 }
  0xb6   : > { %1245 = vmatpush.bf16.msra.mxu3 %v4252_v27  ;;  %v5414_v5 = vld [vmem:[%s6497_s0 + $0x1d4] sm:$0xf]  ;;  %v4285_v6 = vld [vmem:[%s6497_s0 + $0x1d8] sm:$0xf0]  ;;  %v4168_v8 = vor.u32 %v5384_v0, %v4165_v2  ;;  %v4224_v9 = vor.u32 %v5398_v3, %v4221_v4  ;;  %v5396_v15 = vld [vmem:[%s6497_s0 + $0x144] sm:$0xf] }
  0xb7   : > { %1159 = vmatpush.bf16.msra.mxu0 %v4052_v35  ;;  %v5366_v10 = vld [vmem:[%s6497_s0 + $0x54] sm:$0xf]  ;;  %v4093_v11 = vld [vmem:[%s6497_s0 + $0x58] sm:$0xf0]  ;;  %v4288_v13 = vor.u32 %v5414_v5, %v4285_v6  ;;  %v4213_v16 = vld [vmem:[%s6497_s0 + $0x148] sm:$0xf0] }
  0xb8   : > { %1188 = vmatpush.bf16.msra.mxu1 %v4116_v39  ;;  %v5382_v12 = vld [vmem:[%s6497_s0 + $0xd4] sm:$0xf]  ;;  %v4157_v14 = vld [vmem:[%s6497_s0 + $0xd8] sm:$0xf0]  ;;  %v5412_v17 = vld [vmem:[%s6497_s0 + $0x1c4] sm:$0xf]  ;;  %v4096_v19 = vor.u32 %v5366_v10, %v4093_v11  ;;  %v4216_v23 = vor.u32 %v5396_v15, %v4213_v16 }
  0xb9   : > { %1217 = vmatpush.bf16.msra.mxu2 %v4180_v40  ;;  %v4277_v18 = vld [vmem:[%s6497_s0 + $0x1c8] sm:$0xf0]  ;;  %v4003_v20 = vld [vmem:[#allocation3 + $0x20] sm:$0xf]  ;;  %v5346_v21 = vld [vmem:[#allocation3 + $0x2c] sm:$0xf0]  ;;  %v4160_v22 = vor.u32 %v5382_v12, %v4157_v14 }
  0xba   : > { %1246 = vmatpush.bf16.msra.mxu3 %v4244_v44  ;;  %1160 = vmatmul.bf16.vlgmr.msra.gmra.mxu0 %v6600_v49  ;;  %v5364_v24 = vld [vmem:[%s6497_s0 + $0x44] sm:$0xf]  ;;  %v4085_v25 = vld [vmem:[%s6497_s0 + $0x48] sm:$0xf0]  ;;  %v4005_v28 = vld [vmem:[#allocation3 + $0x30] sm:$0xf0]  ;;  %v4280_v29 = vor.u32 %v5412_v17, %v4277_v18 }
  0xbb   : > { %1189 = vmatmul.bf16.vlgmr.msra.gmra.mxu1 %v6605_v54  ;;  %1268 = vmatpush.bf16.msrb.mxu0 %v4112_v59  ;;  %v5380_v26 = vld [vmem:[%s6497_s0 + $0xc4] sm:$0xf]  ;;  %v4149_v30 = vld [vmem:[%s6497_s0 + $0xc8] sm:$0xf0]  ;;  %v5394_v31 = vld [vmem:[%s6497_s0 + $0x134] sm:$0xf]  ;;  %v4088_v39 = vor.u32 %v5364_v24, %v4085_v25 }
  0xbc   : > { %1218 = vmatmul.bf16.vlgmr.msra.gmra.mxu2 %v6607_v55  ;;  %1297 = vmatpush.bf16.msrb.mxu1 %v4176_v60  ;;  %v5344_v27 = vld [vmem:[#allocation3 + $0x24] sm:$0xf]  ;;  %v4205_v32 = vld [vmem:[%s6497_s0 + $0x138] sm:$0xf0]  ;;  %v4011_v33 = vld [vmem:[#allocation3 + $0x28] sm:$0xf]  ;;  %v4152_v40 = vor.u32 %v5380_v26, %v4149_v30 }
  0xbd   : > { %1326 = vmatpush.bf16.msrb.mxu2 %v4240_v45  ;;  %1247 = vmatmul.bf16.vlgmr.msra.gmra.mxu3 %v6611_v58  ;;  %v5410_v34 = vld [vmem:[%s6497_s0 + $0x1b4] sm:$0xf]  ;;  %v4269_v35 = vld [vmem:[%s6497_s0 + $0x1b8] sm:$0xf0]  ;;  %v5347_v36 = vld [vmem:[#allocation3 + $0x34] sm:$0xf0]  ;;  %v4208_v41 = vor.u32 %v5394_v31, %v4205_v32  ;;  %v6644_v45 = vor.u32 %v5346_v21, %v4003_v20  ;;  %v6649_v51 = vor.u32 %v5344_v27, %v4005_v28 }
  0xbe   : > { %1355 = vmatpush.bf16.msrb.mxu3 %v4304_v50  ;;  %v5345_v37 = vld [vmem:[#allocation3 + $0x2c] sm:$0xf]  ;;  %v4013_v38 = vld [vmem:[#allocation3 + $0x38] sm:$0xf0]  ;;  %v5362_v42 = vld [vmem:[%s6497_s0 + $0x34] sm:$0xf]  ;;  %v4272_v46 = vor.u32 %v5410_v34, %v4269_v35  ;;  %v6651_v52 = vor.u32 %v5347_v36, %v4011_v33 }
  0xbf   : > { %1269 = vmatpush.bf16.msrb.mxu0 %v4104_v7  ;;  %v4077_v43 = vld [vmem:[%s6497_s0 + $0x38] sm:$0xf0]  ;;  %v5378_v44 = vld [vmem:[%s6497_s0 + $0xb4] sm:$0xf]  ;;  %v5392_v48 = vld [vmem:[%s6497_s0 + $0x124] sm:$0xf]  ;;  %v6655_v57 = vor.u32 %v5345_v37, %v4013_v38 }
  0xc0   : > { %1298 = vmatpush.bf16.msrb.mxu1 %v4168_v8  ;;  %v4141_v47 = vld [vmem:[%s6497_s0 + $0xb8] sm:$0xf0]  ;;  %v4197_v50 = vld [vmem:[%s6497_s0 + $0x128] sm:$0xf0]  ;;  %v5408_v53 = vld [vmem:[%s6497_s0 + $0x1a4] sm:$0xf]  ;;  %v4080_v59 = vor.u32 %v5362_v42, %v4077_v43 }
  0xc1   : > { %1327 = vmatpush.bf16.msrb.mxu2 %v4232_v61  ;;  %v4261_v56 = vld [vmem:[%s6497_s0 + $0x1a8] sm:$0xf0]  ;;  %v4144_v60 = vor.u32 %v5378_v44, %v4141_v47  ;;  %v4200_v61 = vor.u32 %v5392_v48, %v4197_v50  ;;  %v5360_v62 = vld [vmem:[%s6497_s0 + $0x24] sm:$0xf]  ;;  %v5390_v4 = vld [vmem:[%s6497_s0 + $0x114] sm:$0xf] }
  0xc2   : > { %1356 = vmatpush.bf16.msrb.mxu3 %v4296_v1  ;;  %v4069_v63 = vld [vmem:[%s6497_s0 + $0x28] sm:$0xf0]  ;;  %v4264_v0 = vor.u32 %v5408_v53, %v4261_v56  ;;  %v5376_v1 = vld [vmem:[%s6497_s0 + $0xa4] sm:$0xf]  ;;  %v4189_v5 = vld [vmem:[%s6497_s0 + $0x118] sm:$0xf0] }
  0xc3   : > { %1270 = vmatpush.bf16.msrb.mxu0 %v4096_v19  ;;  %v4133_v2 = vld [vmem:[%s6497_s0 + $0xa8] sm:$0xf0]  ;;  %v4072_v3 = vor.u32 %v5360_v62, %v4069_v63  ;;  %v5358_v6 = vld [vmem:[%s6497_s0 + $0x14] sm:$0xf]  ;;  %v4192_v8 = vor.u32 %v5390_v4, %v4189_v5  ;;  %v4253_v11 = vld [vmem:[%s6497_s0 + $0x198] sm:$0xf0] }
  0xc4   : > { %1299 = vmatpush.bf16.msrb.mxu1 %v4160_v22  ;;  %v4136_v7 = vor.u32 %v5376_v1, %v4133_v2  ;;  %v5406_v10 = vld [vmem:[%s6497_s0 + $0x194] sm:$0xf]  ;;  %v4125_v14 = vld [vmem:[%s6497_s0 + $0x98] sm:$0xf0]  ;;  %v5388_v15 = vld [vmem:[%s6497_s0 + $0x104] sm:$0xf] }
  0xc5   : > { %1328 = vmatpush.bf16.msrb.mxu2 %v4224_v9  ;;  %v4061_v9 = vld [vmem:[%s6497_s0 + $0x18] sm:$0xf0]  ;;  %v4256_v12 = vor.u32 %v5406_v10, %v4253_v11  ;;  %v4181_v16 = vld [vmem:[%s6497_s0 + $0x108] sm:$0xf0]  ;;  %v5404_v18 = vld [vmem:[%s6497_s0 + $0x184] sm:$0xf] }
  0xc6   : > { %1357 = vmatpush.bf16.msrb.mxu3 %v4288_v13  ;;  %v5374_v13 = vld [vmem:[%s6497_s0 + $0x94] sm:$0xf]  ;;  %v4064_v17 = vor.u32 %v5358_v6, %v4061_v9  ;;  %v4245_v19 = vld [vmem:[%s6497_s0 + $0x188] sm:$0xf0]  ;;  %v4184_v21 = vor.u32 %v5388_v15, %v4181_v16  ;;  %v5356_v22 = vld [vmem:[%s6497_s0 + $0x4] sm:$0xf] }
  0xc7   : > { %1271 = vmatpush.bf16.msrb.mxu0 %v4088_v39  ;;  %v4128_v20 = vor.u32 %v5374_v13, %v4125_v14  ;;  %v4248_v24 = vor.u32 %v5404_v18, %v4245_v19  ;;  %v5372_v25 = vld [vmem:[%s6497_s0 + $0x84] sm:$0xf]  ;;  %v4117_v26 = vld [vmem:[%s6497_s0 + $0x88] sm:$0xf0]  ;;  %v4019_v27 = vld [vmem:[#allocation3 + $0x40] sm:$0xf] }
  0xc8   : > { %1300 = vmatpush.bf16.msrb.mxu1 %v4152_v40  ;;  %v5350_v28 = vld [vmem:[#allocation3 + $0x4c] sm:$0xf0]  ;;  %v4021_v30 = vld [vmem:[#allocation3 + $0x50] sm:$0xf0]  ;;  %v4027_v31 = vld [vmem:[#allocation3 + $0x48] sm:$0xf]  ;;  %v4120_v36 = vor.u32 %v5372_v25, %v4117_v26 }
  0xc9   : > { %1329 = vmatpush.bf16.msrb.mxu2 %v4216_v23  ;;  %v4053_v23 = vld [vmem:[%s6497_s0 + $0x8] sm:$0xf0]  ;;  %v5351_v32 = vld [vmem:[#allocation3 + $0x54] sm:$0xf0]  ;;  %v4029_v35 = vld [vmem:[#allocation3 + $0x58] sm:$0xf0]  ;;  %v4020_v37 = vor.u32 %v5350_v28, %v4019_v27 }
  0xca   : > { %1358 = vmatpush.bf16.msrb.mxu3 %v4280_v29  ;;  %1165 = vmatmul.bf16.gmra.mxu0 %v6644_v45  ;;  %v5348_v29 = vld [vmem:[#allocation3 + $0x44] sm:$0xf]  ;;  %v4056_v33 = vor.u32 %v5356_v22, %v4053_v23  ;;  %v5349_v34 = vld [vmem:[#allocation3 + $0x4c] sm:$0xf]  ;;  %v4028_v39 = vor.u32 %v5351_v32, %v4027_v31  ;;  %v5354_v42 = vld [vmem:[#allocation3 + $0x6c] sm:$0xf0] }
  0xcb   : > { %1194 = vmatmul.bf16.gmra.mxu1 %v6649_v51  ;;  %1272 = vmatpush.bf16.msrb.mxu0 %v4080_v59  ;;  %v4024_v38 = vor.u32 %v5348_v29, %v4021_v30  ;;  %v4032_v40 = vor.u32 %v5349_v34, %v4029_v35  ;;  %v5352_v43 = vld [vmem:[#allocation3 + $0x64] sm:$0xf]  ;;  %v4037_v44 = vld [vmem:[#allocation3 + $0x70] sm:$0xf0]  ;;  %v5355_v47 = vld [vmem:[#allocation3 + $0x74] sm:$0xf0] }
  0xcc   : > { %1223 = vmatmul.bf16.gmra.mxu2 %v6651_v52  ;;  %1301 = vmatpush.bf16.msrb.mxu1 %v4144_v60  ;;  %v5353_v48 = vld [vmem:[#allocation3 + $0x6c] sm:$0xf]  ;;  %v4045_v50 = vld [vmem:[#allocation3 + $0x78] sm:$0xf0]  ;;  %v6683_v56 = vor.u32 %v5352_v43, %v4037_v44  ;;  %v4365_v63 = vld [vmem:[%s6505_s13 + $0x78] sm:$0xf0] }
  0xcd   : > { %1330 = vmatpush.bf16.msrb.mxu2 %v4208_v41  ;;  %1252 = vmatmul.bf16.gmra.mxu3 %v6655_v57  ;;  %v4035_v41 = vld [vmem:[#allocation3 + $0x60] sm:$0xf]  ;;  %v6687_v60 = vor.u32 %v5353_v48, %v4045_v50  ;;  %v5435_v62 = vld [vmem:[%s6505_s13 + $0x74] sm:$0xf0]  ;;  %v5432_v1 = vld [vmem:[%s6505_s13 + $0x64] sm:$0xf] }
  0xce   : > { %1359 = vmatpush.bf16.msrb.mxu3 %v4272_v46  ;;  %v4043_v46 = vld [vmem:[#allocation3 + $0x68] sm:$0xf]  ;;  %v6681_v53 = vor.u32 %v5354_v42, %v4035_v41  ;;  %v5431_v2 = vld [vmem:[%s6505_s13 + $0x54] sm:$0xf0]  ;;  %v4349_v5 = vld [vmem:[%s6505_s13 + $0x58] sm:$0xf0] }
  0xcf   : > { %1273 = vmatpush.bf16.msrb.mxu0 %v4072_v3  ;;  %v6685_v59 = vor.u32 %v5355_v47, %v4043_v46  ;;  %v5430_v3 = vld [vmem:[%s6505_s13 + $0x54] sm:$0xf]  ;;  %v5428_v9 = vld [vmem:[%s6505_s13 + $0x44] sm:$0xf]  ;;  %v4341_v11 = vld [vmem:[%s6505_s13 + $0x48] sm:$0xf0] }
  0xd0   : > { %1302 = vmatpush.bf16.msrb.mxu1 %v4136_v7  ;;  %v4352_v6 = vor.u32 %v5430_v3, %v4349_v5  ;;  %v4339_v7 = vld [vmem:[%s6505_s13 + $0x40] sm:$0xf]  ;;  %v4331_v13 = vld [vmem:[%s6505_s13 + $0x30] sm:$0xf]  ;;  %v5427_v14 = vld [vmem:[%s6505_s13 + $0x34] sm:$0xf0] }
  0xd1   : > { %1331 = vmatpush.bf16.msrb.mxu2 %v4200_v61  ;;  %v4363_v61 = vld [vmem:[%s6505_s13 + $0x70] sm:$0xf]  ;;  %v5426_v15 = vld [vmem:[%s6505_s13 + $0x34] sm:$0xf]  ;;  %v4332_v16 = vor.u32 %v5427_v14, %v4331_v13  ;;  %v4323_v19 = vld [vmem:[%s6505_s13 + $0x20] sm:$0xf] }
  0xd2   : > { %1360 = vmatpush.bf16.msrb.mxu3 %v4264_v0  ;;  %v5433_v0 = vld [vmem:[%s6505_s13 + $0x64] sm:$0xf0]  ;;  %v4325_v23 = vld [vmem:[%s6505_s13 + $0x28] sm:$0xf0]  ;;  %v4315_v25 = vld [vmem:[%s6505_s13 + $0x10] sm:$0xf] }
  0xd3   : > { %1274 = vmatpush.bf16.msrb.mxu0 %v4064_v17  ;;  %v4333_v17 = vld [vmem:[%s6505_s13 + $0x38] sm:$0xf0]  ;;  %v5423_v26 = vld [vmem:[%s6505_s13 + $0x14] sm:$0xf0]  ;;  %v5422_v27 = vld [vmem:[%s6505_s13 + $0x14] sm:$0xf] }
  0xd4   : > { %1303 = vmatpush.bf16.msrb.mxu1 %v4128_v20  ;;  %v4336_v18 = vor.u32 %v5426_v15, %v4333_v17  ;;  %v5425_v20 = vld [vmem:[%s6505_s13 + $0x24] sm:$0xf0]  ;;  %v4316_v28 = vor.u32 %v5423_v26, %v4315_v25  ;;  %v4317_v29 = vld [vmem:[%s6505_s13 + $0x18] sm:$0xf0]  ;;  %v4307_v31 = vld [vmem:[%s6505_s13] sm:$0xf] }
  0xd5   : > { %1332 = vmatpush.bf16.msrb.mxu2 %v4192_v8  ;;  %v5429_v8 = vld [vmem:[%s6505_s13 + $0x44] sm:$0xf0]  ;;  %v4324_v22 = vor.u32 %v5425_v20, %v4323_v19  ;;  %v4320_v30 = vor.u32 %v5422_v27, %v4317_v29  ;;  %v4309_v35 = vld [vmem:[%s6505_s13 + $0x8] sm:$0xf0]  ;;  %v5451_v42 = vld [vmem:[%s6505_s13 + $0xf4] sm:$0xf0] }
  0xd6   : > { %1361 = vmatpush.bf16.msrb.mxu3 %v4256_v12  ;;  %v4340_v10 = vor.u32 %v5429_v8, %v4339_v7  ;;  %v4344_v12 = vor.u32 %v5428_v9, %v4341_v11  ;;  %v5421_v32 = vld [vmem:[%s6505_s13 + $0x4] sm:$0xf0]  ;;  %v5448_v50 = vld [vmem:[%s6505_s13 + $0xe4] sm:$0xf]  ;;  %v4405_v15 = vld [vmem:[%s6505_s13 + $0xc8] sm:$0xf0] }
  0xd7   : > { %1275 = vmatpush.bf16.msrb.mxu0 %v4056_v33  ;;  %v5420_v33 = vld [vmem:[%s6505_s13 + $0x4] sm:$0xf]  ;;  %v4308_v34 = vor.u32 %v5421_v32, %v4307_v31  ;;  %v4403_v17 = vld [vmem:[%s6505_s13 + $0xc0] sm:$0xf]  ;;  %v4397_v29 = vld [vmem:[%s6505_s13 + $0xb8] sm:$0xf0] }
  0xd8   : > { %1304 = vmatpush.bf16.msrb.mxu1 %v4120_v36  ;;  %v4312_v36 = vor.u32 %v5420_v33, %v4309_v35  ;;  %v5444_v14 = vld [vmem:[%s6505_s13 + $0xc4] sm:$0xf]  ;;  %v4395_v31 = vld [vmem:[%s6505_s13 + $0xb0] sm:$0xf]  ;;  %v5443_v32 = vld [vmem:[%s6505_s13 + $0xb4] sm:$0xf0] }
  0xd9   : > { %1333 = vmatpush.bf16.msrb.mxu2 %v4184_v21  ;;  %v5424_v21 = vld [vmem:[%s6505_s13 + $0x24] sm:$0xf]  ;;  %p4433_p1 = scmp.ne.s32.totalorder %s6326_s15, 3 }
  0xda   : > { %1362 = vmatpush.bf16.msrb.mxu3 %v4248_v24  ;;  %1170 = vmatmul.bf16.gmra.mxu0 %v4020_v37  ;;  %v4328_v24 = vor.u32 %v5424_v21, %v4325_v23  ;;  %s7008_s22 = sld [smem:[#allocation39_spill]] (!%p4433_p1) }
  0xdb   : > { %1199 = vmatmul.bf16.gmra.mxu1 %v4024_v38 }
  0xdc   : > { %1228 = vmatmul.bf16.gmra.mxu2 %v4028_v39 }
  0xdd   : > { %1257 = vmatmul.bf16.gmra.mxu3 %v4032_v40 }
  0xea   : > { %1175 = vmatmul.bf16.gmra.mxu0 %v6681_v53 }
  0xeb   : > { %1204 = vmatmul.bf16.gmra.mxu1 %v6683_v56 }
  0xec   : > { %1233 = vmatmul.bf16.gmra.mxu2 %v6685_v59 }
  0xed   : > { %1262 = vmatmul.bf16.gmra.mxu3 %v6687_v60 }
  0xfa   : > { %1276 = vmatmul.bf16.vlgmr.msrb.gmra.mxu0 %v6600_v49  ;;  %v5434_v49 = vld [vmem:[%s6505_s13 + $0x74] sm:$0xf] }
  0xfb   : > { %1305 = vmatmul.bf16.vlgmr.msrb.gmra.mxu1 %v6605_v54  ;;  %v4364_v54 = vor.u32 %v5435_v62, %v4363_v61 }
  0xfc   : > { %1334 = vmatmul.bf16.vlgmr.msrb.gmra.mxu2 %v6607_v55  ;;  %v4355_v55 = vld [vmem:[%s6505_s13 + $0x60] sm:$0xf] }
  0xfd   : > { %1363 = vmatmul.bf16.vlgmr.msrb.gmra.mxu3 %v6611_v58  ;;  %v4368_v58 = vor.u32 %v5434_v49, %v4365_v63  ;;  %1616 = vmatpush.bf16.msra.mxu0 %v4364_v54 }
  0xff   : > { %1674 = vmatpush.bf16.msra.mxu2 %v4368_v58 }
 0x10a   : > { %1281 = vmatmul.bf16.gmra.mxu0 %v6644_v45  ;;  %v4357_v45 = vld [vmem:[%s6505_s13 + $0x68] sm:$0xf0] }
 0x10b   : > { %1310 = vmatmul.bf16.gmra.mxu1 %v6649_v51  ;;  %v4356_v51 = vor.u32 %v5433_v0, %v4355_v55 }
 0x10c   : > { %1339 = vmatmul.bf16.gmra.mxu2 %v6651_v52  ;;  %v4360_v52 = vor.u32 %v5432_v1, %v4357_v45  ;;  %v5446_v1 = vld [vmem:[%s6505_s13 + $0xd4] sm:$0xf]  ;;  %v4413_v45 = vld [vmem:[%s6505_s13 + $0xd8] sm:$0xf0] }
 0x10d   : > { %1368 = vmatmul.bf16.gmra.mxu3 %v6655_v57  ;;  %1617 = vmatpush.bf16.msra.mxu0 %v4356_v51  ;;  %v4347_v57 = vld [vmem:[%s6505_s13 + $0x50] sm:$0xf]  ;;  %v4416_v51 = vor.u32 %v5446_v1, %v4413_v45  ;;  %v5438_v1 = vld [vmem:[%s6505_s13 + $0x94] sm:$0xf]  ;;  %v4381_v45 = vld [vmem:[%s6505_s13 + $0x98] sm:$0xf0] }
 0x10e   : > { %1675 = vmatpush.bf16.msra.mxu2 %v4360_v52  ;;  %v4348_v4 = vor.u32 %v5431_v2, %v4347_v57  ;;  %v4411_v52 = vld [vmem:[%s6505_s13 + $0xd0] sm:$0xf]  ;;  %v5447_v57 = vld [vmem:[%s6505_s13 + $0xd4] sm:$0xf0] }
 0x10f   : > { %v4412_v3 = vor.u32 %v5447_v57, %v4411_v52  ;;  %v4379_v52 = vld [vmem:[%s6505_s13 + $0x90] sm:$0xf]  ;;  %v5439_v57 = vld [vmem:[%s6505_s13 + $0x94] sm:$0xf0] }
 0x111   : > { %1618 = vmatpush.bf16.msra.mxu0 %v4348_v4 }
 0x112   : > { %1676 = vmatpush.bf16.msra.mxu2 %v4352_v6 }
 0x115   : > { %1619 = vmatpush.bf16.msra.mxu0 %v4340_v10 }
 0x116   : > { %1677 = vmatpush.bf16.msra.mxu2 %v4344_v12 }
 0x119   : > { %1620 = vmatpush.bf16.msra.mxu0 %v4332_v16  ;;  %v4408_v16 = vor.u32 %v5444_v14, %v4405_v15 }
 0x11a   : > { %1286 = vmatmul.bf16.gmra.mxu0 %v4020_v37  ;;  %1678 = vmatpush.bf16.msra.mxu2 %v4336_v18  ;;  %v5450_v37 = vld [vmem:[%s6505_s13 + $0xf4] sm:$0xf]  ;;  %v5445_v18 = vld [vmem:[%s6505_s13 + $0xc4] sm:$0xf0] }
 0x11b   : > { %1315 = vmatmul.bf16.gmra.mxu1 %v4024_v38  ;;  %v4429_v38 = vld [vmem:[%s6505_s13 + $0xf8] sm:$0xf0]  ;;  %v4404_v20 = vor.u32 %v5445_v18, %v4403_v17  ;;  %v5437_v18 = vld [vmem:[%s6505_s13 + $0x84] sm:$0xf0] }
 0x11c   : > { %1344 = vmatmul.bf16.gmra.mxu2 %v4028_v39  ;;  %v4427_v39 = vld [vmem:[%s6505_s13 + $0xf0] sm:$0xf]  ;;  %v4432_v41 = vor.u32 %v5450_v37, %v4429_v38 }
 0x11d   : > { %1373 = vmatmul.bf16.gmra.mxu3 %v4032_v40  ;;  %1621 = vmatpush.bf16.msra.mxu0 %v4324_v22  ;;  %v6741_v40 = vld [vmem:[%s6503_s7] sm:$0x3]  ;;  %v4428_v43 = vor.u32 %v5451_v42, %v4427_v39 }
 0x11e   : > { %1679 = vmatpush.bf16.msra.mxu2 %v4328_v24  ;;  %1703 = vmatpush.bf16.msra.mxu3 %v4432_v41  ;;  %v6745_v44 = vperm.slane %v6741_v40, 0 }
 0x11f   : > { %1645 = vmatpush.bf16.msra.mxu1 %v4428_v43 }
 0x121   : > { %1622 = vmatpush.bf16.msra.mxu0 %v4316_v28  ;;  %v5442_v28 = vld [vmem:[%s6505_s13 + $0xb4] sm:$0xf] }
 0x122   : > { %1680 = vmatpush.bf16.msra.mxu2 %v4320_v30  ;;  %v4400_v30 = vor.u32 %v5442_v28, %v4397_v29 }
 0x125   : > { %1623 = vmatpush.bf16.msra.mxu0 %v4308_v34  ;;  %v4396_v34 = vor.u32 %v5443_v32, %v4395_v31 }
 0x126   : > { %1681 = vmatpush.bf16.msra.mxu2 %v4312_v36 }
 0x12a   : > { %1291 = vmatmul.bf16.gmra.mxu0 %v6681_v53  ;;  %v4421_v53 = vld [vmem:[%s6505_s13 + $0xe8] sm:$0xf0] }
 0x12b   : > { %1320 = vmatmul.bf16.gmra.mxu1 %v6683_v56  ;;  %v4419_v56 = vld [vmem:[%s6505_s13 + $0xe0] sm:$0xf] }
 0x12c   : > { %1349 = vmatmul.bf16.gmra.mxu2 %v6685_v59  ;;  %v4424_v59 = vor.u32 %v5448_v50, %v4421_v53  ;;  %v4389_v50 = vld [vmem:[%s6505_s13 + $0xa8] sm:$0xf0] }
 0x12d   : > { %1378 = vmatmul.bf16.gmra.mxu3 %v6687_v60  ;;  %v5449_v60 = vld [vmem:[%s6505_s13 + $0xe4] sm:$0xf0] }
 0x12e   : > { %v4420_v61 = vor.u32 %v5449_v60, %v4419_v56  ;;  %1704 = vmatpush.bf16.msra.mxu3 %v4424_v59  ;;  %v4387_v56 = vld [vmem:[%s6505_s13 + $0xa0] sm:$0xf]  ;;  %v5441_v59 = vld [vmem:[%s6505_s13 + $0xa4] sm:$0xf0] }
 0x130   : > { %1646 = vmatpush.bf16.msra.mxu1 %v4420_v61  ;;  %v4388_v61 = vor.u32 %v5441_v59, %v4387_v56 }
 0x132   : > { %1705 = vmatpush.bf16.msra.mxu3 %v4416_v51  ;;  %v4384_v51 = vor.u32 %v5438_v1, %v4381_v45 }
 0x134   : > { %1647 = vmatpush.bf16.msra.mxu1 %v4412_v3  ;;  %v4380_v3 = vor.u32 %v5439_v57, %v4379_v52 }
 0x136   : > { %1706 = vmatpush.bf16.msra.mxu3 %v4408_v16 }
 0x137   : > { %v1161_v46 = vpop.f32.mrf.mxu0 }
 0x138   : > { %v1190_v47 = vpop.f32.mrf.mxu1  ;;  %v1162_v48 = vadd.f32 %v1161_v46, %v6745_v44  ;;  %1648 = vmatpush.bf16.msra.mxu1 %v4404_v20 }
 0x13a   : > { %v1191_v49 = vadd.f32 %v1190_v47, %v1162_v48  ;;  %1707 = vmatpush.bf16.msra.mxu3 %v4400_v30  ;;  %v5440_v48 = vld [vmem:[%s6505_s13 + $0xa4] sm:$0xf] }
 0x13b   : > { %v4392_v53 = vor.u32 %v5440_v48, %v4389_v50 }
 0x13c   : > { %1649 = vmatpush.bf16.msra.mxu1 %v4396_v34 }
 0x13e   : > { %1708 = vmatpush.bf16.msra.mxu3 %v4392_v53 }
 0x13f   : > { %v1219_v62 = vpop.f32.mrf.mxu2  ;;  %v1163_v63 = vpop.f32.mrf.mxu0 }
 0x140   : > { %v1248_v54 = vpop.f32.mrf.mxu3  ;;  %v1192_v55 = vpop.f32.mrf.mxu1  ;;  %v1164_v0 = vadd.f32 %v1163_v63, %v6745_v44  ;;  %v1220_v58 = vadd.f32 %v1219_v62, %v1191_v49  ;;  %1650 = vmatpush.bf16.msra.mxu1 %v4388_v61 }
 0x142   : > { %v1193_v2 = vadd.f32 %v1192_v55, %v1164_v0  ;;  %v1249_v5 = vadd.f32 %v1248_v54, %v1220_v58  ;;  %1709 = vmatpush.bf16.msra.mxu3 %v4384_v51 }
 0x144   : > { %v1384_v11 = vmax.f32 %v1249_v5, 0.0  ;;  %1651 = vmatpush.bf16.msra.mxu1 %v4380_v3 }
 0x147   : > { %v1221_v4 = vpop.f32.mrf.mxu2  ;;  %v1166_v8 = vpop.f32.mrf.mxu0 }
 0x148   : > { %v1222_v6 = vadd.f32 %v1221_v4, %v1193_v2  ;;  %v1250_v7 = vpop.f32.mrf.mxu3  ;;  %v1195_v9 = vpop.f32.mrf.mxu1  ;;  %v1167_v13 = vadd.f32 %v1166_v8, %v6745_v44 }
 0x14a   : > { %v1251_v10 = vadd.f32 %v1250_v7, %v1222_v6  ;;  %v1196_v22 = vadd.f32 %v1195_v9, %v1167_v13  ;;  %v4371_v13 = vld [vmem:[%s6505_s13 + $0x80] sm:$0xf] }
 0x14c   : > { %v1386_v12 = vmax.f32 %v1251_v10, 0.0 }
 0x14e   : > { %v1416_v19 = vpack.c.bf16 %v1386_v12, %v1384_v11  ;;  %v5436_v11 = vld [vmem:[%s6505_s13 + $0x84] sm:$0xf]  ;;  %v4373_v12 = vld [vmem:[%s6505_s13 + $0x88] sm:$0xf0] }
 0x14f   : > { %v1224_v21 = vpop.f32.mrf.mxu2  ;;  %v1168_v24 = vpop.f32.mrf.mxu0  ;;  %v4376_v17 = vor.u32 %v5436_v11, %v4373_v12 }
 0x150   : > { %v1253_v23 = vpop.f32.mrf.mxu3  ;;  %1624 = vmatmul.bf16.vlgmr.msra.gmra.mxu0 %v1416_v19  ;;  %1682 = vmatmul.bf16.vlgmr.msra.gmra.mxu2 %v1416_v19  ;;  %v1197_v25 = vpop.f32.mrf.mxu1  ;;  %v1169_v26 = vadd.f32 %v1168_v24, %v6745_v44  ;;  %v1225_v27 = vadd.f32 %v1224_v21, %v1196_v22  ;;  %v4372_v19 = vor.u32 %v5437_v18, %v4371_v13 }
 0x151   : > { %1710 = vmatpush.bf16.msra.mxu3 %v4376_v17 }
 0x152   : > { %v1198_v33 = vadd.f32 %v1197_v25, %v1169_v26  ;;  %v1254_v36 = vadd.f32 %v1253_v23, %v1225_v27  ;;  %1652 = vmatpush.bf16.msra.mxu1 %v4372_v19 }
 0x154   : > { %v1388_v43 = vmax.f32 %v1254_v36, 0.0 }
 0x157   : > { %v1226_v35 = vpop.f32.mrf.mxu2  ;;  %v1171_v39 = vpop.f32.mrf.mxu0 }
 0x158   : > { %v1227_v37 = vadd.f32 %v1226_v35, %v1198_v33  ;;  %v1255_v38 = vpop.f32.mrf.mxu3  ;;  %v1200_v41 = vpop.f32.mrf.mxu1  ;;  %v1172_v47 = vadd.f32 %v1171_v39, %v6745_v44  ;;  %v6784_v33 = vperm.slane %v6741_v40, 1 }
 0x15a   : > { %v1256_v42 = vadd.f32 %v1255_v38, %v1227_v37  ;;  %v1201_v49 = vadd.f32 %v1200_v41, %v1172_v47 }
 0x15c   : > { %v1390_v46 = vmax.f32 %v1256_v42, 0.0 }
 0x15e   : > { %v1418_v60 = vpack.c.bf16 %v1390_v46, %v1388_v43 }
 0x15f   : > { %v1229_v62 = vpop.f32.mrf.mxu2  ;;  %v1173_v63 = vpop.f32.mrf.mxu0 }
 0x160   : > { %v1258_v54 = vpop.f32.mrf.mxu3  ;;  %1629 = vmatmul.bf16.gmra.mxu0 %v1418_v60  ;;  %1687 = vmatmul.bf16.gmra.mxu2 %v1418_v60  ;;  %v1202_v55 = vpop.f32.mrf.mxu1  ;;  %v1174_v0 = vadd.f32 %v1173_v63, %v6745_v44  ;;  %v1230_v58 = vadd.f32 %v1229_v62, %v1201_v49 }
 0x162   : > { %v1203_v2 = vadd.f32 %v1202_v55, %v1174_v0  ;;  %v1259_v5 = vadd.f32 %v1258_v54, %v1230_v58 }
 0x164   : > { %v1392_v14 = vmax.f32 %v1259_v5, 0.0 }
 0x167   : > { %v1231_v4 = vpop.f32.mrf.mxu2  ;;  %v1176_v8 = vpop.f32.mrf.mxu0 }
 0x168   : > { %v1232_v6 = vadd.f32 %v1231_v4, %v1203_v2  ;;  %v1260_v7 = vpop.f32.mrf.mxu3  ;;  %v1205_v9 = vpop.f32.mrf.mxu1  ;;  %v1177_v16 = vadd.f32 %v1176_v8, %v6745_v44 }
 0x16a   : > { %v1261_v10 = vadd.f32 %v1260_v7, %v1232_v6  ;;  %v1206_v22 = vadd.f32 %v1205_v9, %v1177_v16 }
 0x16c   : > { %v1394_v15 = vmax.f32 %v1261_v10, 0.0 }
 0x16e   : > { %v1420_v20 = vpack.c.bf16 %v1394_v15, %v1392_v14 }
 0x16f   : > { %v1234_v21 = vpop.f32.mrf.mxu2  ;;  %v1178_v24 = vpop.f32.mrf.mxu0 }
 0x170   : > { %v1263_v23 = vpop.f32.mrf.mxu3  ;;  %1634 = vmatmul.bf16.gmra.mxu0 %v1420_v20  ;;  %1692 = vmatmul.bf16.gmra.mxu2 %v1420_v20  ;;  %v1207_v25 = vpop.f32.mrf.mxu1  ;;  %v1179_v26 = vadd.f32 %v1178_v24, %v6745_v44  ;;  %v1235_v27 = vadd.f32 %v1234_v21, %v1206_v22 }
 0x172   : > { %v1208_v28 = vadd.f32 %v1207_v25, %v1179_v26  ;;  %v1264_v30 = vadd.f32 %v1263_v23, %v1235_v27 }
 0x174   : > { %v1396_v37 = vmax.f32 %v1264_v30, 0.0 }
 0x177   : > { %v1236_v29 = vpop.f32.mrf.mxu2  ;;  %v1277_v34 = vpop.f32.mrf.mxu0 }
 0x178   : > { %v1237_v31 = vadd.f32 %v1236_v29, %v1208_v28  ;;  %v1265_v32 = vpop.f32.mrf.mxu3  ;;  %v1306_v35 = vpop.f32.mrf.mxu1  ;;  %v1278_v39 = vadd.f32 %v1277_v34, %v6784_v33 }
 0x17a   : > { %v1266_v36 = vadd.f32 %v1265_v32, %v1237_v31  ;;  %v1307_v43 = vadd.f32 %v1306_v35, %v1278_v39 }
 0x17c   : > { %v1398_v38 = vmax.f32 %v1266_v36, 0.0 }
 0x17e   : > { %v1422_v41 = vpack.c.bf16 %v1398_v38, %v1396_v37 }
 0x17f   : > { %v1335_v42 = vpop.f32.mrf.mxu2  ;;  %v1279_v46 = vpop.f32.mrf.mxu0 }
 0x180   : > { %v1364_v44 = vpop.f32.mrf.mxu3  ;;  %1639 = vmatmul.bf16.gmra.mxu0 %v1422_v41  ;;  %1697 = vmatmul.bf16.gmra.mxu2 %v1422_v41  ;;  %v1308_v47 = vpop.f32.mrf.mxu1  ;;  %v1280_v48 = vadd.f32 %v1279_v46, %v6784_v33  ;;  %v1336_v50 = vadd.f32 %v1335_v42, %v1307_v43 }
 0x182   : > { %v1309_v40 = vadd.f32 %v1308_v47, %v1280_v48  ;;  %v1365_v56 = vadd.f32 %v1364_v44, %v1336_v50 }
 0x184   : > { %v1385_v54 = vmax.f32 %v1365_v56, 0.0 }
 0x187   : > { %v1337_v53 = vpop.f32.mrf.mxu2  ;;  %v1282_v61 = vpop.f32.mrf.mxu0 }
 0x188   : > { %v1338_v59 = vadd.f32 %v1337_v53, %v1309_v40  ;;  %v1366_v60 = vpop.f32.mrf.mxu3  ;;  %v1311_v62 = vpop.f32.mrf.mxu1  ;;  %v1283_v55 = vadd.f32 %v1282_v61, %v6784_v33 }
 0x18a   : > { %v1367_v49 = vadd.f32 %v1366_v60, %v1338_v59  ;;  %v1312_v1 = vadd.f32 %v1311_v62, %v1283_v55  ;;  %v1400_v62 = vld [vmem:[#allocation2 + $0x30] sm:$0xff] }
 0x18c   : > { %v1387_v63 = vmax.f32 %v1367_v49, 0.0 }
 0x18e   : > { %v1417_v0 = vpack.c.bf16 %v1387_v63, %v1385_v54 }
 0x18f   : > { %v1340_v58 = vpop.f32.mrf.mxu2  ;;  %v1284_v51 = vpop.f32.mrf.mxu0 }
 0x190   : > { %v1369_v45 = vpop.f32.mrf.mxu3  ;;  %1653 = vmatmul.bf16.vlgmr.msra.gmra.mxu1 %v1417_v0  ;;  %1711 = vmatmul.bf16.vlgmr.msra.gmra.mxu3 %v1417_v0  ;;  %v1313_v52 = vpop.f32.mrf.mxu1  ;;  %v1285_v57 = vadd.f32 %v1284_v51, %v6784_v33  ;;  %v1341_v2 = vadd.f32 %v1340_v58, %v1312_v1  ;;  %v1401_v0 = vld [vmem:[#allocation2] sm:$0xff] }
 0x192   : > { %v1314_v3 = vadd.f32 %v1313_v52, %v1285_v57  ;;  %v1370_v5 = vadd.f32 %v1369_v45, %v1341_v2  ;;  %v1402_v45 = vld [vmem:[#allocation2 + $0x58] sm:$0xff] }
 0x194   : > { %v1389_v11 = vmax.f32 %v1370_v5, 0.0 }
 0x197   : > { %v1342_v4 = vpop.f32.mrf.mxu2  ;;  %v1287_v8 = vpop.f32.mrf.mxu0 }
 0x198   : > { %v1343_v6 = vadd.f32 %v1342_v4, %v1314_v3  ;;  %v1371_v7 = vpop.f32.mrf.mxu3  ;;  %v1316_v9 = vpop.f32.mrf.mxu1  ;;  %v1288_v13 = vadd.f32 %v1287_v8, %v6784_v33  ;;  %v1403_v4 = vld [vmem:[#allocation2 + $0x18] sm:$0xff]  ;;  %v1404_v8 = vld [vmem:[#allocation2 + $0x50] sm:$0xff] }
 0x19a   : > { %v1372_v10 = vadd.f32 %v1371_v7, %v1343_v6  ;;  %v1317_v16 = vadd.f32 %v1316_v9, %v1288_v13 }
 0x19c   : > { %v1391_v12 = vmax.f32 %v1372_v10, 0.0 }
 0x19e   : > { %v1419_v14 = vpack.c.bf16 %v1391_v12, %v1389_v11 }
 0x19f   : > { %v1345_v15 = vpop.f32.mrf.mxu2  ;;  %v1289_v18 = vpop.f32.mrf.mxu0 }
 0x1a0   : > { %v1374_v17 = vpop.f32.mrf.mxu3  ;;  %1658 = vmatmul.bf16.gmra.mxu1 %v1419_v14  ;;  %1716 = vmatmul.bf16.gmra.mxu3 %v1419_v14  ;;  %v1318_v19 = vpop.f32.mrf.mxu1  ;;  %v1290_v20 = vadd.f32 %v1289_v18, %v6784_v33  ;;  %v1346_v21 = vadd.f32 %v1345_v15, %v1317_v16  ;;  %v1405_v14 = vld [vmem:[#allocation2 + $0x68] sm:$0xff] }
 0x1a2   : > { %v1319_v22 = vadd.f32 %v1318_v19, %v1290_v20  ;;  %v1375_v24 = vadd.f32 %v1374_v17, %v1346_v21  ;;  %v1406_v17 = vld [vmem:[#allocation2 + $0x8] sm:$0xff] }
 0x1a4   : > { %v1393_v30 = vmax.f32 %v1375_v24, 0.0 }
 0x1a7   : > { %v1347_v23 = vpop.f32.mrf.mxu2  ;;  %v1292_v27 = vpop.f32.mrf.mxu0 }
 0x1a8   : > { %v1348_v25 = vadd.f32 %v1347_v23, %v1319_v22  ;;  %v1376_v26 = vpop.f32.mrf.mxu3  ;;  %v1321_v29 = vpop.f32.mrf.mxu1  ;;  %v1293_v32 = vadd.f32 %v1292_v27, %v6784_v33  ;;  %v1407_v23 = vld [vmem:[#allocation2 + $0x48] sm:$0xff]  ;;  %v1408_v27 = vld [vmem:[#allocation2 + $0x40] sm:$0xff] }
 0x1aa   : > { %v1377_v28 = vadd.f32 %v1376_v26, %v1348_v25  ;;  %v1322_v36 = vadd.f32 %v1321_v29, %v1293_v32 }
 0x1ac   : > { %v1395_v31 = vmax.f32 %v1377_v28, 0.0 }
 0x1ae   : > { %v1421_v34 = vpack.c.bf16 %v1395_v31, %v1393_v30 }
 0x1af   : > { %v1350_v35 = vpop.f32.mrf.mxu2  ;;  %v1294_v38 = vpop.f32.mrf.mxu0 }
 0x1b0   : > { %v1379_v37 = vpop.f32.mrf.mxu3  ;;  %1663 = vmatmul.bf16.gmra.mxu1 %v1421_v34  ;;  %1721 = vmatmul.bf16.gmra.mxu3 %v1421_v34  ;;  %v1295_v39 = vadd.f32 %v1294_v38, %v6784_v33  ;;  %v1351_v41 = vadd.f32 %v1350_v35, %v1322_v36  ;;  %v1323_v42 = vpop.f32.mrf.mxu1  ;;  %v1409_v34 = vld [vmem:[#allocation2 + $0x20] sm:$0xff] }
 0x1b2   : > { %v1324_v43 = vadd.f32 %v1323_v42, %v1295_v39  ;;  %v1380_v46 = vadd.f32 %v1379_v37, %v1351_v41  ;;  %v1410_v37 = vld [vmem:[#allocation2 + $0x10] sm:$0xff] }
 0x1b4   : > { %v1397_v40 = vmax.f32 %v1380_v46, 0.0  ;;  %v1411_v46 = vld [vmem:[#allocation2 + $0x38] sm:$0xff] }
 0x1b7   : > { %v1352_v44 = vpop.f32.mrf.mxu2 }
 0x1b8   : > { %v1353_v47 = vadd.f32 %v1352_v44, %v1324_v43  ;;  %v1381_v48 = vpop.f32.mrf.mxu3 }
 0x1ba   : > { %v1382_v50 = vadd.f32 %v1381_v48, %v1353_v47 }
 0x1bc   : > { %v1399_v53 = vmax.f32 %v1382_v50, 0.0  ;;  %v1412_v50 = vld [vmem:[#allocation2 + $0x60] sm:$0xff] }
 0x1be   : > { %v1423_v56 = vpack.c.bf16 %v1399_v53, %v1397_v40 }
 0x1c0   : > { %1668 = vmatmul.bf16.gmra.mxu1 %v1423_v56  ;;  %1726 = vmatmul.bf16.gmra.mxu3 %v1423_v56 }
 0x1cd   : > { %v1625_v59 = vpop.f32.mrf.mxu0 }
 0x1d3   : > { %v1683_v60 = vpop.f32.mrf.mxu2 }
 0x1d5   : > { %v1627_v61 = vpop.f32.mrf.mxu0 }
 0x1db   : > { %v1685_v33 = vpop.f32.mrf.mxu2 }
 0x1dd   : > { %v1630_v55 = vpop.f32.mrf.mxu0 }
 0x1e3   : > { %v1688_v3 = vpop.f32.mrf.mxu2 }
 0x1e5   : > { %v1632_v7 = vpop.f32.mrf.mxu0 }
 0x1eb   : > { %v1690_v13 = vpop.f32.mrf.mxu2 }
 0x1ed   : > { %v1635_v21 = vpop.f32.mrf.mxu0 }
 0x1f3   : > { %v1693_v26 = vpop.f32.mrf.mxu2 }
 0x1f5   : > { %v1637_v32 = vpop.f32.mrf.mxu0 }
 0x1fb   : > { %v1695_v42 = vpop.f32.mrf.mxu2 }
 0x1fd   : > { %v1640_v44 = vpop.f32.mrf.mxu0 }
 0x20d   : > { %v1654_v49 = vpop.f32.mrf.mxu1 }
 0x20e   : > { %v1655_v54 = vadd.f32 %v1654_v49, %v1625_v59 }
 0x210   : > { %v1732_v63 = vadd.f32 %v1655_v54, %v1400_v62  ;;  %v1642_v54 = vpop.f32.mrf.mxu0 }
 0x212   : > { %1748 = vst [vmem:[#allocation2 + $0x30] sm:$0xff] %v1732_v63 }
 0x213   : > { %v1712_v58 = vpop.f32.mrf.mxu3 }
 0x214   : > { %v1713_v1 = vadd.f32 %v1712_v58, %v1683_v60  ;;  %v1698_v60 = vpop.f32.mrf.mxu2 }
 0x215   : > { %v1656_v51 = vpop.f32.mrf.mxu1 }
 0x216   : > { %v1733_v52 = vadd.f32 %v1713_v1, %v1401_v0  ;;  %v1657_v57 = vadd.f32 %v1656_v51, %v1627_v61  ;;  %v1413_v61 = vld [vmem:[#allocation2 + $0x70] sm:$0xff] }
 0x218   : > { %1749 = vst [vmem:[#allocation2] sm:$0xff] %v1733_v52  ;;  %v1734_v2 = vadd.f32 %v1657_v57, %v1402_v45  ;;  %v1415_v45 = vld [vmem:[#allocation2 + $0x28] sm:$0xff] }
 0x21a   : > { %1750 = vst [vmem:[#allocation2 + $0x58] sm:$0xff] %v1734_v2 }
 0x21b   : > { %v1714_v5 = vpop.f32.mrf.mxu3 }
 0x21c   : > { %v1715_v6 = vadd.f32 %v1714_v5, %v1685_v33  ;;  %v1414_v33 = vld [vmem:[#allocation2 + $0x78] sm:$0xff]  ;;  %v1700_v1 = vpop.f32.mrf.mxu2 }
 0x21d   : > { %v1659_v9 = vpop.f32.mrf.mxu1 }
 0x21e   : > { %v1735_v10 = vadd.f32 %v1715_v6, %v1403_v4  ;;  %v1660_v11 = vadd.f32 %v1659_v9, %v1630_v55 }
 0x220   : > { %1751 = vst [vmem:[#allocation2 + $0x18] sm:$0xff] %v1735_v10  ;;  %v1736_v12 = vadd.f32 %v1660_v11, %v1404_v8 }
 0x222   : > { %1752 = vst [vmem:[#allocation2 + $0x50] sm:$0xff] %v1736_v12 }
 0x223   : > { %v1717_v15 = vpop.f32.mrf.mxu3 }
 0x224   : > { %v1718_v16 = vadd.f32 %v1717_v15, %v1688_v3 }
 0x225   : > { %v1661_v18 = vpop.f32.mrf.mxu1 }
 0x226   : > { %v1737_v19 = vadd.f32 %v1718_v16, %v1405_v14  ;;  %v1662_v20 = vadd.f32 %v1661_v18, %v1632_v7 }
 0x228   : > { %1753 = vst [vmem:[#allocation2 + $0x68] sm:$0xff] %v1737_v19  ;;  %v1738_v22 = vadd.f32 %v1662_v20, %v1406_v17 }
 0x22a   : > { %1754 = vst [vmem:[#allocation2 + $0x8] sm:$0xff] %v1738_v22 }
 0x22b   : > { %v1719_v24 = vpop.f32.mrf.mxu3 }
 0x22c   : > { %v1720_v25 = vadd.f32 %v1719_v24, %v1690_v13 }
 0x22d   : > { %v1664_v28 = vpop.f32.mrf.mxu1 }
 0x22e   : > { %v1739_v29 = vadd.f32 %v1720_v25, %v1407_v23  ;;  %v1665_v30 = vadd.f32 %v1664_v28, %v1635_v21 }
 0x230   : > { %1755 = vst [vmem:[#allocation2 + $0x48] sm:$0xff] %v1739_v29  ;;  %v1740_v31 = vadd.f32 %v1665_v30, %v1408_v27 }
 0x232   : > { %1756 = vst [vmem:[#allocation2 + $0x40] sm:$0xff] %v1740_v31 }
 0x233   : > { %v1722_v35 = vpop.f32.mrf.mxu3 }
 0x234   : > { %v1723_v36 = vadd.f32 %v1722_v35, %v1693_v26 }
 0x235   : > { %v1666_v38 = vpop.f32.mrf.mxu1 }
 0x236   : > { %v1741_v39 = vadd.f32 %v1723_v36, %v1409_v34  ;;  %v1667_v41 = vadd.f32 %v1666_v38, %v1637_v32 }
 0x238   : > { %1757 = vst [vmem:[#allocation2 + $0x20] sm:$0xff] %v1741_v39  ;;  %v1742_v43 = vadd.f32 %v1667_v41, %v1410_v37 }
 0x23a   : > { %1758 = vst [vmem:[#allocation2 + $0x10] sm:$0xff] %v1742_v43 }
 0x23b   : > { %v1724_v47 = vpop.f32.mrf.mxu3 }
 0x23c   : > { %v1725_v48 = vadd.f32 %v1724_v47, %v1695_v42 }
 0x23d   : > { %v1669_v40 = vpop.f32.mrf.mxu1 }
 0x23e   : > { %v1743_v53 = vadd.f32 %v1725_v48, %v1411_v46  ;;  %v1670_v56 = vadd.f32 %v1669_v40, %v1640_v44 }
 0x240   : > { %1759 = vst [vmem:[#allocation2 + $0x38] sm:$0xff] %v1743_v53  ;;  %v1744_v59 = vadd.f32 %v1670_v56, %v1412_v50 }
 0x242   : > { %1760 = vst [vmem:[#allocation2 + $0x60] sm:$0xff] %v1744_v59 }
 0x243   : > { %v1727_v62 = vpop.f32.mrf.mxu3 }
 0x244   : > { %v1728_v49 = vadd.f32 %v1727_v62, %v1698_v60 }
 0x245   : > { %v1671_v63 = vpop.f32.mrf.mxu1 }
 0x246   : > { %v1745_v55 = vadd.f32 %v1728_v49, %v1413_v61  ;;  %v1672_v0 = vadd.f32 %v1671_v63, %v1642_v54 }
 0x248   : > { %1761 = vst [vmem:[#allocation2 + $0x70] sm:$0xff] %v1745_v55  ;;  %v1746_v58 = vadd.f32 %v1672_v0, %v1414_v33 }
 0x24a   : > { %1762 = vst [vmem:[#allocation2 + $0x78] sm:$0xff] %v1746_v58 }
 0x24b   : > { %v1729_v51 = vpop.f32.mrf.mxu3 }
 0x24c   : > { %v1730_v52 = vadd.f32 %v1729_v51, %v1700_v1  ;;  %1767 = sbr.rel (%p4433_p1) target bundleno = 1680 (0x690), region = 120 }
 0x24e   : > { %v1747_v57 = vadd.f32 %v1730_v52, %v1415_v45 }
 0x250   : > { %1763 = vst [vmem:[#allocation2 + $0x28] sm:$0xff] %v1747_v57 }
 0x251   : > { %v1780_v2 = vld [vmem:[#allocation2 + $0x60] sm:$0xff]  ;;  %v1782_v3 = vld [vmem:[#allocation2 + $0x78] sm:$0xff]  ;;  %v1781_v8 = vld [vmem:[#allocation2 + $0x70] sm:$0xff]  ;;  %vm2141_vm0 = vcmask 523264  }
 0x252   : > { %v1784_v4 = vld [vmem:[#allocation11] sm:$0x3]  ;;  %v1818_v6 = vld [vmem:[#allocation12 + $0x60] sm:$0xff]  ;;  %v1820_v7 = vld [vmem:[#allocation12 + $0x70] sm:$0xff] }
 0x253   : > { %v1786_v5 = vperm.slane %v1784_v4, 0  ;;  %v1787_v9 = vperm.slane %v1784_v4, 1  ;;  %v1819_v11 = vld [vmem:[#allocation12 + $0x68] sm:$0xff]  ;;  %v1821_v12 = vld [vmem:[#allocation12 + $0x78] sm:$0xff]  ;;  %v1814_v27 = vld [vmem:[#allocation12 + $0x40] sm:$0xff] }
 0x254   : > { %v1776_v17 = vld [vmem:[#allocation2 + $0x40] sm:$0xff]  ;;  %v1778_v18 = vld [vmem:[#allocation2 + $0x10] sm:$0xff]  ;;  %v1779_v22 = vld [vmem:[#allocation2 + $0x38] sm:$0xff] }
 0x255   : > { %v6795_v13 = vadd.f32 %v1786_v5, %v1780_v2  ;;  %v6797_v14 = vadd.f32 %v1786_v5, %v1782_v3  ;;  %v6799_v15 = vadd.f32 %v1787_v9, %v1781_v8  ;;  %v6803_v19 = vadd.f32 %v1786_v5, %v1776_v17  ;;  %v1777_v21 = vld [vmem:[#allocation2 + $0x20] sm:$0xff]  ;;  %v1816_v28 = vld [vmem:[#allocation12 + $0x50] sm:$0xff]  ;;  %v1815_v31 = vld [vmem:[#allocation12 + $0x48] sm:$0xff] }
 0x256   : > { %v6805_v20 = vadd.f32 %v1786_v5, %v1778_v18  ;;  %v6811_v29 = vadd.f32 %v1787_v9, %v1777_v21  ;;  %v6813_v30 = vadd.f32 %v1787_v9, %v1779_v22  ;;  %v1817_v32 = vld [vmem:[#allocation12 + $0x58] sm:$0xff]  ;;  %v1772_v41 = vld [vmem:[#allocation2 + $0x50] sm:$0xff]  ;;  %v1774_v42 = vld [vmem:[#allocation2 + $0x8] sm:$0xff] }
 0x257   : > { %v1783_v10 = vld [vmem:[#allocation2 + $0x28] sm:$0xff]  ;;  %v2097_v23 = vadd.f32 %v1818_v6, %v6795_v13  ;;  %v2099_v24 = vadd.f32 %v1820_v7, %v6797_v14  ;;  %v2098_v25 = vadd.f32 %v1819_v11, %v6799_v15  ;;  %v2093_v36 = vadd.f32 %v1814_v27, %v6803_v19  ;;  %v1812_v59 = vld [vmem:[#allocation12 + $0x30] sm:$0xff]  ;;  %v1813_v61 = vld [vmem:[#allocation12 + $0x38] sm:$0xff] }
 0x258   : > { %v6801_v16 = vadd.f32 %v1787_v9, %v1783_v10  ;;  %v2095_v37 = vadd.f32 %v1816_v28, %v6805_v20  ;;  %v2094_v38 = vadd.f32 %v1815_v31, %v6811_v29  ;;  %v2096_v39 = vadd.f32 %v1817_v32, %v6813_v30  ;;  %v1773_v43 = vld [vmem:[#allocation2 + $0x68] sm:$0xff]  ;;  %v1768_v63 = vld [vmem:[#allocation2 + $0x30] sm:$0xff]  ;;  %v1770_v55 = vld [vmem:[#allocation2 + $0x58] sm:$0xff] }
 0x259   : > { %v2107_v34 = vpack.c.bf16 %v2099_v24, %v2097_v23  ;;  %v1775_v44 = vld [vmem:[#allocation2 + $0x48] sm:$0xff]  ;;  %v6819_v46 = vadd.f32 %v1786_v5, %v1772_v41  ;;  %v6821_v47 = vadd.f32 %v1786_v5, %v1774_v42  ;;  %v6823_v53 = vadd.f32 %v1787_v9, %v1773_v43  ;;  %v1769_v0 = vld [vmem:[#allocation2] sm:$0xff]  ;;  %v1771_v58 = vld [vmem:[#allocation2 + $0x18] sm:$0xff] }
 0x25a   : > { %v2100_v26 = vadd.f32 %v1821_v12, %v6801_v16  ;;  %v2105_v48 = vpack.c.bf16 %v2095_v37, %v2093_v36  ;;  %v2106_v50 = vpack.c.bf16 %v2096_v39, %v2094_v38  ;;  %v1810_v40 = vld [vmem:[#allocation12 + $0x20] sm:$0xff]  ;;  %v6825_v56 = vadd.f32 %v1787_v9, %v1775_v44  ;;  %v1811_v60 = vld [vmem:[#allocation12 + $0x28] sm:$0xff]  ;;  %v1808_v4 = vld [vmem:[#allocation12 + $0x10] sm:$0xff] }
 0x25b   : > { %2115 = vmatpush.bf16.xpose.msra.mxu0 %v2107_v34  ;;  %v2089_v62 = vadd.f32 %v1810_v40, %v6819_v46  ;;  %v2091_v49 = vadd.f32 %v1812_v59, %v6821_v47  ;;  %v2090_v54 = vadd.f32 %v1811_v60, %v6823_v53  ;;  %v6831_v1 = vadd.f32 %v1786_v5, %v1768_v63  ;;  %v1806_v57 = vld [vmem:[#allocation12] sm:$0xff]  ;;  %v1807_v6 = vld [vmem:[#allocation12 + $0x8] sm:$0xff]  ;;  %v1809_v7 = vld [vmem:[#allocation12 + $0x18] sm:$0xff] }
 0x25c   : > { %v2108_v35 = vpack.c.bf16 %v2100_v26, %v2098_v25  ;;  %v2092_v33 = vadd.f32 %v1813_v61, %v6825_v56  ;;  %v6833_v45 = vadd.f32 %v1786_v5, %v1770_v55  ;;  %v6835_v2 = vadd.f32 %v1787_v9, %v1769_v0  ;;  %v6843_v18 = vld [vmem:[#allocation14] sm:$0xff]  ;;  %v6845_v21 = vld [vmem:[#allocation14 + $0x8] sm:$0xff]  ;;  %v1825_v22 = vld [vmem:[#allocation14 + $0x18] sm:$0xff] }
 0x25d   : > { %v2103_v51 = vpack.c.bf16 %v2091_v49, %v2089_v62  ;;  %v6837_v3 = vadd.f32 %v1787_v9, %v1771_v58  ;;  %v2085_v8 = vadd.f32 %v1806_v57, %v6831_v1  ;;  %v1824_v9 = vld [vmem:[#allocation14 + $0x10] sm:$0xff]  ;;  %v2110_v24 = vpack.c.bf16 %v1825_v22, %v6845_v21  ;;  %v4534_v55 = vld [vmem:[#allocation15 + $0xc0] sm:$0xf]  ;;  %v5476_v57 = vld [vmem:[#allocation15 + $0xc4] sm:$0xf] }
 0x25e   : > { %2129 = vmatpush.bf16.xpose.msra.mxu1 %v2108_v35  ;;  %v2104_v52 = vpack.c.bf16 %v2092_v33, %v2090_v54  ;;  %v2087_v10 = vadd.f32 %v1808_v4, %v6833_v45  ;;  %v2086_v11 = vadd.f32 %v1807_v6, %v6835_v2  ;;  %v2109_v23 = vpack.c.bf16 %v1824_v9, %v6843_v18  ;;  %v5478_v58 = vld [vmem:[#allocation15 + $0xcc] sm:$0xf0]  ;;  %v4664_v6 = vld [vmem:[#allocation15 + $0x1d0] sm:$0xf0]  ;;  %v5504_v22 = vld [vmem:[#allocation15 + $0x1a4] sm:$0xf] }
 0x25f   : > { %v2088_v5 = vadd.f32 %v1809_v7, %v6837_v3  ;;  %v2171_v60 = vpack.c.bf16 %v6797_v14, %v6795_v13  ;;  %v2172_v61 = vpack.c.bf16 %v6801_v16, %v6799_v15  ;;  %v2169_v62 = vpack.c.bf16 %v6805_v20, %v6803_v19  ;;  %v4550_v15 = vld [vmem:[#allocation15 + $0xe0] sm:$0xf]  ;;  %v5482_v16 = vld [vmem:[#allocation15 + $0xec] sm:$0xf0]  ;;  %v4520_v9 = vld [vmem:[#allocation15 + $0xb0] sm:$0xf0] }
 0x260   : > { %v2101_v12 = vpack.c.bf16 %v2087_v10, %v2085_v8  ;;  %v2170_v49 = vpack.c.bf16 %v6813_v30, %v6811_v29  ;;  %v2167_v54 = vpack.c.bf16 %v6821_v47, %v6819_v46  ;;  %v2168_v33 = vpack.c.bf16 %v6825_v56, %v6823_v53  ;;  %v4678_v19 = vld [vmem:[#allocation15 + $0x1e0] sm:$0xf]  ;;  %v5514_v29 = vld [vmem:[#allocation15 + $0x1ec] sm:$0xf0]  ;;  %v5480_v30 = vld [vmem:[#allocation15 + $0xe4] sm:$0xf] }
 0x261   : > { %v2102_v17 = vpack.c.bf16 %v2088_v5, %v2086_v11  ;;  %2180 = vmatpush.bf16.msra.mxu2 %v2171_v60  ;;  %2193 = vmatpush.bf16.msra.mxu3 %v2172_v61  ;;  %v2165_v13 = vpack.c.bf16 %v6833_v45, %v6831_v1  ;;  %v2166_v14 = vpack.c.bf16 %v6837_v3, %v6835_v2  ;;  %v4552_v46 = vld [vmem:[#allocation15 + $0xf0] sm:$0xf0]  ;;  %v5512_v53 = vld [vmem:[#allocation15 + $0x1e4] sm:$0xf]  ;;  %v4662_v1 = vld [vmem:[#allocation15 + $0x1c0] sm:$0xf] }
 0x262   : > { %v4551_v20 = vor.u32 %v5482_v16, %v4550_v15  ;;  %v4679_v47 = vor.u32 %v5514_v29, %v4678_v19  ;;  %v4555_v63 = vor.u32 %v5480_v30, %v4552_v46  ;;  %v4680_v56 = vld [vmem:[#allocation15 + $0x1f0] sm:$0xf0]  ;;  %v5510_v45 = vld [vmem:[#allocation15 + $0x1cc] sm:$0xf0]  ;;  %v5508_v3 = vld [vmem:[#allocation15 + $0x1c4] sm:$0xf] }
 0x263   : > { %2116 = vmatpush.bf16.xpose.msra.mxu0 %v2105_v48  ;;  %v4683_v0 = vor.u32 %v5512_v53, %v4680_v56  ;;  %v4536_v2 = vld [vmem:[#allocation15 + $0xd0] sm:$0xf0]  ;;  %v4518_v7 = vld [vmem:[#allocation15 + $0xa0] sm:$0xf]  ;;  %v5474_v8 = vld [vmem:[#allocation15 + $0xac] sm:$0xf0]  ;;  %v4667_v10 = vor.u32 %v5508_v3, %v4664_v6 }
 0x264   : > { %v4539_v4 = vor.u32 %v5476_v57, %v4536_v2  ;;  %v4646_v11 = vld [vmem:[#allocation15 + $0x1a0] sm:$0xf]  ;;  %v5506_v5 = vld [vmem:[#allocation15 + $0x1ac] sm:$0xf0]  ;;  %v5464_v61 = vld [vmem:[#allocation15 + $0x64] sm:$0xf] }
 0x265   : > { %2181 = vmatpush.bf16.msra.mxu2 %v2169_v62  ;;  %2194 = vmatpush.bf16.msra.mxu3 %v2170_v49  ;;  %v5498_v60 = vld [vmem:[#allocation15 + $0x16c] sm:$0xf0]  ;;  %v4488_v62 = vld [vmem:[#allocation15 + $0x70] sm:$0xf0]  ;;  %v5496_v49 = vld [vmem:[#allocation15 + $0x164] sm:$0xf] }
 0x266   : > { %2130 = vmatpush.bf16.xpose.msra.mxu1 %v2106_v50  ;;  %v4470_v15 = vld [vmem:[#allocation15 + $0x40] sm:$0xf]  ;;  %v5462_v16 = vld [vmem:[#allocation15 + $0x4c] sm:$0xf0]  ;;  %v5460_v30 = vld [vmem:[#allocation15 + $0x44] sm:$0xf] }
 0x267   : > { %v4598_v19 = vld [vmem:[#allocation15 + $0x140] sm:$0xf]  ;;  %v5494_v29 = vld [vmem:[#allocation15 + $0x14c] sm:$0xf0]  ;;  %v4472_v46 = vld [vmem:[#allocation15 + $0x50] sm:$0xf0]  ;;  %v4471_v53 = vor.u32 %v5462_v16, %v4470_v15 }
 0x268   : > { %v5456_v57 = vld [vmem:[#allocation15 + $0x24] sm:$0xf]  ;;  %v4456_v2 = vld [vmem:[#allocation15 + $0x30] sm:$0xf0]  ;;  %v4672_v15 = vld [vmem:[#allocation15 + $0x1d8] sm:$0xf0] }
 0x269   : > { %2182 = vmatpush.bf16.msra.mxu2 %v2167_v54  ;;  %2195 = vmatpush.bf16.msra.mxu3 %v2168_v33  ;;  %v4616_v54 = vld [vmem:[#allocation15 + $0x170] sm:$0xf0]  ;;  %v5488_v3 = vld [vmem:[#allocation15 + $0x124] sm:$0xf] }
 0x26b   : > { %2117 = vmatpush.bf16.xpose.msra.mxu0 %v2103_v51  ;;  %v4535_v51 = vor.u32 %v5478_v58, %v4534_v55  ;;  %v4599_v55 = vor.u32 %v5494_v29, %v4598_v19  ;;  %v4454_v58 = vld [vmem:[#allocation15 + $0x20] sm:$0xf]  ;;  %v4526_v29 = vld [vmem:[#allocation15 + $0xa8] sm:$0xf] }
 0x26d   : > { %2183 = vmatpush.bf16.msra.mxu2 %v2165_v13  ;;  %2196 = vmatpush.bf16.msra.mxu3 %v2166_v14  ;;  %v4491_v14 = vor.u32 %v5464_v61, %v4488_v62  ;;  %v4542_v62 = vld [vmem:[#allocation15 + $0xc8] sm:$0xf] }
 0x26e   : > { %2131 = vmatpush.bf16.xpose.msra.mxu1 %v2104_v52  ;;  %v4663_v52 = vor.u32 %v5510_v45, %v4662_v1  ;;  %v5458_v1 = vld [vmem:[#allocation15 + $0x2c] sm:$0xf0]  ;;  %v4582_v45 = vld [vmem:[#allocation15 + $0x120] sm:$0xf] }
 0x26f   : > { %v4455_v6 = vor.u32 %v5458_v1, %v4454_v58 }
 0x271   : > { %2535 = vmatpush.bf16.msrb.mxu2 %v4551_v20  ;;  %2548 = vmatpush.bf16.msrb.mxu3 %v4679_v47  ;;  %v4619_v20 = vor.u32 %v5496_v49, %v4616_v54  ;;  %v5492_v47 = vld [vmem:[#allocation15 + $0x144] sm:$0xf]  ;;  %v4670_v49 = vld [vmem:[#allocation15 + $0x1c8] sm:$0xf]  ;;  %v5511_v54 = vld [vmem:[#allocation15 + $0x1d4] sm:$0xf0] }
 0x272   : > { %v4671_v19 = vor.u32 %v5511_v54, %v4670_v49  ;;  %v5491_v49 = vld [vmem:[#allocation15 + $0x134] sm:$0xf0] }
 0x273   : > { %2118 = vmatpush.bf16.xpose.msra.mxu0 %v2101_v12  ;;  %v5472_v12 = vld [vmem:[#allocation15 + $0xa4] sm:$0xf] }
 0x275   : > { %2536 = vmatpush.bf16.msrb.mxu2 %v4535_v51  ;;  %2549 = vmatpush.bf16.msrb.mxu3 %v4663_v52  ;;  %v5490_v52 = vld [vmem:[#allocation15 + $0x12c] sm:$0xf0] }
 0x276   : > { %2132 = vmatpush.bf16.xpose.msra.mxu1 %v2102_v17  ;;  %v4519_v17 = vor.u32 %v5474_v8, %v4518_v7  ;;  %v4583_v7 = vor.u32 %v5490_v52, %v4582_v45  ;;  %v4459_v8 = vor.u32 %v5456_v57, %v4456_v2  ;;  %v4510_v52 = vld [vmem:[#allocation15 + $0x88] sm:$0xf]  ;;  %v5471_v57 = vld [vmem:[#allocation15 + $0x94] sm:$0xf0] }
 0x277   : > { %v4638_v2 = vld [vmem:[#allocation15 + $0x188] sm:$0xf] }
 0x279   : > { %2537 = vmatpush.bf16.msrb.mxu2 %v4519_v17  ;;  %v4566_v17 = vld [vmem:[#allocation15 + $0x100] sm:$0xf] }
 0x27a   : > { %2119 = vmatmul.bf16.vlgmr.msra.gmra.mxu0 %v2109_v23  ;;  %v4648_v23 = vld [vmem:[#allocation15 + $0x1b0] sm:$0xf0] }
 0x27b   : > { %2561 = vmatpush.bf16.msrb.mxu0 %v4555_v63  ;;  %v4600_v63 = vld [vmem:[#allocation15 + $0x150] sm:$0xf0] }
 0x27c   : > { %v4603_v51 = vor.u32 %v5492_v47, %v4600_v63  ;;  %v5507_v63 = vld [vmem:[#allocation15 + $0x1b4] sm:$0xf0] }
 0x27d   : > { %2133 = vmatmul.bf16.vlgmr.msra.gmra.mxu1 %v2110_v24  ;;  %v4647_v24 = vor.u32 %v5506_v5, %v4646_v11  ;;  %v5454_v11 = vld [vmem:[#allocation15 + $0xc] sm:$0xf0] }
 0x27e   : > { %2574 = vmatpush.bf16.msrb.mxu1 %v4683_v0  ;;  %v4475_v0 = vor.u32 %v5460_v30, %v4472_v46  ;;  %v5475_v30 = vld [vmem:[#allocation15 + $0xb4] sm:$0xf0]  ;;  %v4654_v46 = vld [vmem:[#allocation15 + $0x1a8] sm:$0xf] }
 0x27f   : > { %2562 = vmatpush.bf16.msrb.mxu0 %v4539_v4  ;;  %2550 = vmatpush.bf16.msrb.mxu3 %v4647_v24  ;;  %v4584_v4 = vld [vmem:[#allocation15 + $0x130] sm:$0xf0]  ;;  %v5484_v24 = vld [vmem:[#allocation15 + $0x104] sm:$0xf]  ;;  %v4527_v58 = vor.u32 %v5475_v30, %v4526_v29  ;;  %v4655_v1 = vor.u32 %v5507_v63, %v4654_v46  ;;  %v4574_v30 = vld [vmem:[#allocation15 + $0x108] sm:$0xf] }
 0x280   : > { %v5487_v46 = vld [vmem:[#allocation15 + $0x114] sm:$0xf0] }
 0x282   : > { %2575 = vmatpush.bf16.msrb.mxu1 %v4667_v10  ;;  %v4438_v10 = vld [vmem:[#allocation15] sm:$0xf] }
 0x2f7   : > { %v2120_v25 = vpop.f32.mrf.mxu0 }
 0x2fa   : > { %v2134_v26 = vpop.f32.mrf.mxu1 }
 0x2fb   : > { %v2135_v27 = vadd.f32 %v2134_v26, %v2120_v25  ;;  %v4523_v25 = vor.u32 %v5472_v12, %v4520_v9  ;;  %v4502_v26 = vld [vmem:[#allocation15 + $0x80] sm:$0xf]  ;;  %v4587_v12 = vor.u32 %v5488_v3, %v4584_v4  ;;  %v5486_v9 = vld [vmem:[#allocation15 + $0x10c] sm:$0xf0]  ;;  %v4511_v3 = vor.u32 %v5471_v57, %v4510_v52  ;;  %v5503_v4 = vld [vmem:[#allocation15 + $0x194] sm:$0xf0] }
 0x2fd   : > { %v2139_v28 = vmul.f32 0.0625, %v2135_v27  ;;  %v5470_v27 = vld [vmem:[#allocation15 + $0x8c] sm:$0xf0]  ;;  %2563 = vmatpush.bf16.msrb.mxu0 %v4523_v25  ;;  %v4568_v25 = vld [vmem:[#allocation15 + $0x110] sm:$0xf0] }
 0x2ff   : > { %v2142_v31 = vsel %vm2141_vm0, %v2139_v28, -inf  ;;  %v2122_v32 = vpop.f32.mrf.mxu0 }
 0x300   : > { %2143 = vmax.xlane.f32.xlu0 %v2142_v31  ;;  %v4651_v31 = vor.u32 %v5504_v22, %v4648_v23  ;;  %v5452_v22 = vld [vmem:[#allocation15 + $0x4] sm:$0xf]  ;;  %v4440_v23 = vld [vmem:[#allocation15 + $0x10] sm:$0xf0] }
 0x302   : > { %v2136_v34 = vpop.f32.mrf.mxu1  ;;  %2576 = vmatpush.bf16.msrb.mxu1 %v4651_v31  ;;  %v5483_v31 = vld [vmem:[#allocation15 + $0xf4] sm:$0xf0] }
 0x303   : > { %v2137_v35 = vadd.f32 %v2136_v34, %v2122_v32  ;;  %v5502_v32 = vld [vmem:[#allocation15 + $0x18c] sm:$0xf0]  ;;  %v5468_v34 = vld [vmem:[#allocation15 + $0x84] sm:$0xf] }
 0x305   : > { %v2140_v36 = vmul.f32 0.0625, %v2137_v35  ;;  %v4504_v35 = vld [vmem:[#allocation15 + $0x90] sm:$0xf0] }
 0x307   : > { %v2145_v37 = vsel %vm2141_vm0, %v2140_v36, -inf }
 0x308   : > { %2146 = vmax.xlane.f32.xlu0 %v2145_v37  ;;  %v4632_v37 = vld [vmem:[#allocation15 + $0x190] sm:$0xf0] }
 0x373   : > { %v2144_v38 = vpop.xlane.xlu0 %2143 }
 0x374   : > { %v2148_v39 = vsub.f32 %v2139_v28, %v2144_v38  ;;  %v4630_v28 = vld [vmem:[#allocation15 + $0x180] sm:$0xf]  ;;  %v4503_v38 = vor.u32 %v5470_v27, %v4502_v26  ;;  %v4439_v27 = vor.u32 %v5454_v11, %v4438_v10  ;;  %v5501_v11 = vld [vmem:[#allocation15 + $0x18c] sm:$0xf] }
 0x376   : > { %v2150_v41 = vmul.f32 1.442695, %v2148_v39  ;;  %2538 = vmatpush.bf16.msrb.mxu2 %v4503_v38  ;;  %v4560_v38 = vld [vmem:[#allocation15 + $0xf8] sm:$0xf0] }
 0x378   : > { %5812 = vpow2.f32 %v2150_v41  ;;  %v4631_v41 = vor.u32 %v5502_v32, %v4630_v28  ;;  %v4558_v28 = vld [vmem:[#allocation15 + $0xe8] sm:$0xf] }
 0x379   : > { %v4686_v32 = vld [vmem:[#allocation15 + $0x1e8] sm:$0xf] }
 0x37a   : > { %2551 = vmatpush.bf16.msrb.mxu3 %v4631_v41  ;;  %v4443_v41 = vor.u32 %v5452_v22, %v4440_v23  ;;  %v4622_v22 = vld [vmem:[#allocation15 + $0x168] sm:$0xf] }
 0x37b   : > { %v2147_v42 = vpop.xlane.xlu0 %2146 }
 0x37c   : > { %v2149_v43 = vsub.f32 %v2140_v36, %v2147_v42  ;;  %v5500_v36 = vld [vmem:[#allocation15 + $0x184] sm:$0xf]  ;;  %v4507_v42 = vor.u32 %v5468_v34, %v4504_v35 }
 0x37e   : > { %v6851_v44 = vpop.eup %5812  ;;  %v2152_v48 = vmul.f32 1.442695, %v2149_v43  ;;  %v4486_v43 = vld [vmem:[#allocation15 + $0x60] sm:$0xf]  ;;  %2564 = vmatpush.bf16.msrb.mxu0 %v4507_v42  ;;  %v5513_v42 = vld [vmem:[#allocation15 + $0x1ec] sm:$0xf] }
 0x37f   : > { %v2154_v50 = vsel %vm2141_vm0, %v6851_v44, 0.0 }
 0x380   : > { %5814 = vpow2.f32 %v2152_v48  ;;  %2155 = vadd.xlane.f32.xlu1 %v2154_v50  ;;  %v5466_v48 = vld [vmem:[#allocation15 + $0x6c] sm:$0xf0]  ;;  %v4614_v50 = vld [vmem:[#allocation15 + $0x160] sm:$0xf] }
 0x381   : > { %v4487_v33 = vor.u32 %v5466_v48, %v4486_v43  ;;  %v4615_v13 = vor.u32 %v5498_v60, %v4614_v50  ;;  %v4688_v43 = vld [vmem:[#allocation15 + $0x1f8] sm:$0xf0]  ;;  %v4571_v50 = vor.u32 %v5484_v24, %v4568_v25  ;;  %v5499_v24 = vld [vmem:[#allocation15 + $0x174] sm:$0xf0]  ;;  %v5465_v25 = vld [vmem:[#allocation15 + $0x6c] sm:$0xf] }
 0x382   : > { %2565 = vmatpush.bf16.msrb.mxu0 %v4491_v14  ;;  %v5509_v14 = vld [vmem:[#allocation15 + $0x1cc] sm:$0xf] }
 0x383   : > { %2539 = vmatpush.bf16.msrb.mxu2 %v4487_v33  ;;  %2552 = vmatpush.bf16.msrb.mxu3 %v4615_v13  ;;  %v5477_v33 = vld [vmem:[#allocation15 + $0xcc] sm:$0xf]  ;;  %v4544_v13 = vld [vmem:[#allocation15 + $0xd8] sm:$0xf0]  ;;  %v4675_v47 = vor.u32 %v5509_v14, %v4672_v15 }
 0x384   : > { %v5489_v14 = vld [vmem:[#allocation15 + $0x12c] sm:$0xf] }
 0x386   : > { %v6855_v40 = vpop.eup %5814  ;;  %2566 = vmatpush.bf16.msrb.mxu0 %v4475_v0  ;;  %v4656_v0 = vld [vmem:[#allocation15 + $0x1b8] sm:$0xf0] }
 0x387   : > { %v2157_v59 = vsel %vm2141_vm0, %v6855_v40, 0.0  ;;  %2540 = vmatpush.bf16.msrb.mxu2 %v4471_v53  ;;  %2553 = vmatpush.bf16.msrb.mxu3 %v4599_v55  ;;  %v5473_v53 = vld [vmem:[#allocation15 + $0xac] sm:$0xf] }
 0x388   : > { %2158 = vadd.xlane.f32.xlu1 %v2157_v59  ;;  %v4635_v59 = vor.u32 %v5500_v36, %v4632_v37  ;;  %v5515_v36 = vld [vmem:[#allocation15 + $0x1f4] sm:$0xf0]  ;;  %v5481_v37 = vld [vmem:[#allocation15 + $0xec] sm:$0xf] }
 0x389   : > { %v4687_v60 = vor.u32 %v5515_v36, %v4686_v32  ;;  %v4563_v61 = vor.u32 %v5481_v37, %v4560_v38  ;;  %v5505_v55 = vld [vmem:[#allocation15 + $0x1ac] sm:$0xf]  ;;  %v4624_v32 = vld [vmem:[#allocation15 + $0x178] sm:$0xf0]  ;;  %v5463_v36 = vld [vmem:[#allocation15 + $0x54] sm:$0xf0] }
 0x38a   : > { %2577 = vmatpush.bf16.msrb.mxu1 %v4635_v59  ;;  %2567 = vmatpush.bf16.msrb.mxu0 %v4459_v8  ;;  %v4559_v59 = vor.u32 %v5483_v31, %v4558_v28  ;;  %v4639_v8 = vor.u32 %v5503_v4, %v4638_v2  ;;  %v5497_v31 = vld [vmem:[#allocation15 + $0x16c] sm:$0xf]  ;;  %v4606_v37 = vld [vmem:[#allocation15 + $0x148] sm:$0xf]  ;;  %v4806_v2 = vld [vmem:[#allocation17 + $0xe0] sm:$0xf] }
 0x38b   : > { %2541 = vmatpush.bf16.msrb.mxu2 %v4455_v6  ;;  %2554 = vmatpush.bf16.msrb.mxu3 %v4583_v7  ;;  %v5469_v6 = vld [vmem:[#allocation15 + $0x8c] sm:$0xf]  ;;  %v4512_v7 = vld [vmem:[#allocation15 + $0x98] sm:$0xf0]  ;;  %v5190_v4 = vld [vmem:[#allocation17 + $0x3e0] sm:$0xf] }
 0x38c   : > { %v4515_v10 = vor.u32 %v5469_v6, %v4512_v7 }
 0x38e   : > { %2578 = vmatpush.bf16.msrb.mxu1 %v4619_v20  ;;  %2568 = vmatpush.bf16.msrb.mxu0 %v4443_v41  ;;  %v4547_v20 = vor.u32 %v5477_v33, %v4544_v13  ;;  %v5461_v41 = vld [vmem:[#allocation15 + $0x4c] sm:$0xf]  ;;  %v4464_v13 = vld [vmem:[#allocation15 + $0x38] sm:$0xf0] }
 0x38f   : > { %2542 = vmatpush.bf16.msrb.mxu2 %v4439_v27  ;;  %v4623_v27 = vor.u32 %v5499_v24, %v4622_v22  ;;  %v5457_v33 = vld [vmem:[#allocation15 + $0x2c] sm:$0xf]  ;;  %v5574_v22 = vld [vmem:[#allocation17 + $0x1cc] sm:$0xf0]  ;;  %v4790_v24 = vld [vmem:[#allocation17 + $0xc0] sm:$0xf] }
 0x390   : > { %v4467_v15 = vor.u32 %v5457_v33, %v4464_v13  ;;  %v5142_v13 = vld [vmem:[#allocation17 + $0x380] sm:$0xf] }
 0x392   : > { %2579 = vmatpush.bf16.msrb.mxu1 %v4603_v51  ;;  %2613 = vmatpush.bf16.msra.mxu0 %v4563_v61  ;;  %v4659_v51 = vor.u32 %v5505_v55, %v4656_v0  ;;  %v4576_v55 = vld [vmem:[#allocation15 + $0x118] sm:$0xf0]  ;;  %v4575_v0 = vor.u32 %v5487_v46, %v4574_v30  ;;  %v5562_v30 = vld [vmem:[#allocation17 + $0x16c] sm:$0xf0] }
 0x396   : > { %2580 = vmatpush.bf16.msrb.mxu1 %v4587_v12  ;;  %2614 = vmatpush.bf16.msra.mxu0 %v4547_v20  ;;  %v5455_v20 = vld [vmem:[#allocation15 + $0x14] sm:$0xf0] }
 0x39a   : > { %2581 = vmatpush.bf16.msrb.mxu1 %v4571_v50  ;;  %v5493_v50 = vld [vmem:[#allocation15 + $0x14c] sm:$0xf] }
 0x3f3   : > { %v2156_v39 = vpop.xlane.xlu1 %2155 }
 0x3f4   : > { %5816 = vrcp.f32 %v2156_v39  ;;  %v4567_v39 = vor.u32 %v5486_v9, %v4566_v17  ;;  %v4494_v17 = vld [vmem:[#allocation15 + $0x68] sm:$0xf]  ;;  %v5467_v9 = vld [vmem:[#allocation15 + $0x74] sm:$0xf0] }
 0x3f5   : > { %v4495_v23 = vor.u32 %v5467_v9, %v4494_v17  ;;  %v4918_v9 = vld [vmem:[#allocation17 + $0x1c0] sm:$0xf] }
 0x3f6   : > { %2555 = vmatpush.bf16.msrb.mxu3 %v4567_v39  ;;  %v5495_v39 = vld [vmem:[#allocation15 + $0x154] sm:$0xf0] }
 0x3fa   : > { %v5817_v5 = vpop.eup %5816 }
 0x3fb   : > { %v2159_v56 = vpop.xlane.xlu1 %2158  ;;  %v2162_v34 = vmul.f32 %v5817_v5, %v6851_v44  ;;  %v5479_v44 = vld [vmem:[#allocation15 + $0xd4] sm:$0xf0]  ;;  %v4640_v5 = vld [vmem:[#allocation15 + $0x198] sm:$0xf0] }
 0x3fc   : > { %5818 = vrcp.f32 %v2159_v56  ;;  %v4543_v16 = vor.u32 %v5479_v44, %v4542_v62  ;;  %v4528_v56 = vld [vmem:[#allocation15 + $0xb8] sm:$0xf0]  ;;  %v4643_v12 = vor.u32 %v5501_v11, %v4640_v5  ;;  %v5459_v62 = vld [vmem:[#allocation15 + $0x34] sm:$0xf0]  ;;  %v4590_v44 = vld [vmem:[#allocation15 + $0x128] sm:$0xf] }
 0x3fd   : > { %v4531_v45 = vor.u32 %v5473_v53, %v4528_v56  ;;  %v4591_v54 = vor.u32 %v5491_v49, %v4590_v44  ;;  %v4448_v53 = vld [vmem:[#allocation15 + $0x18] sm:$0xf0]  ;;  %v5485_v56 = vld [vmem:[#allocation15 + $0x10c] sm:$0xf]  ;;  %v5610_v11 = vld [vmem:[#allocation17 + $0x2ec] sm:$0xf0] }
 0x3fe   : > { %v5566_v44 = vld [vmem:[#allocation17 + $0x18c] sm:$0xf0] }
 0x3ff   : > { %2615 = vmatpush.bf16.msra.mxu0 %v4531_v45  ;;  %v4934_v45 = vld [vmem:[#allocation17 + $0x1e0] sm:$0xf] }
 0x402   : > { %v5819_v26 = vpop.eup %5818 }
 0x403   : > { %v2163_v35 = vmul.f32 %v5819_v26, %v6855_v40  ;;  %v4691_v40 = vor.u32 %v5513_v42, %v4688_v43  ;;  %2616 = vmatpush.bf16.msra.mxu0 %v4515_v10  ;;  %v4496_v26 = vld [vmem:[#allocation15 + $0x78] sm:$0xf0]  ;;  %v4607_v43 = vor.u32 %v5495_v39, %v4606_v37  ;;  %v5062_v10 = vld [vmem:[#allocation17 + $0x2e0] sm:$0xf] }
 0x404   : > { %v4499_v28 = vor.u32 %v5465_v25, %v4496_v26  ;;  %v4480_v42 = vld [vmem:[#allocation15 + $0x58] sm:$0xf0]  ;;  %v5542_v25 = vld [vmem:[#allocation17 + $0xcc] sm:$0xf0]  ;;  %v4774_v39 = vld [vmem:[#allocation17 + $0xa0] sm:$0xf] }
 0x405   : > { %v2164_v48 = vpack.c.bf16 %v2163_v35, %v2162_v34  ;;  %2626 = vmatpush.bf16.msra.mxu1 %v4691_v40  ;;  %v4627_v34 = vor.u32 %v5497_v31, %v4624_v32  ;;  %v4478_v35 = vld [vmem:[#allocation15 + $0x48] sm:$0xf]  ;;  %v5606_v31 = vld [vmem:[#allocation17 + $0x2cc] sm:$0xf0]  ;;  %v4919_v32 = vor.u32 %v5574_v22, %v4918_v9  ;;  %v4838_v9 = vld [vmem:[#allocation17 + $0x120] sm:$0xf] }
 0x406   : > { %v4479_v38 = vor.u32 %v5463_v36, %v4478_v35  ;;  %v5570_v35 = vld [vmem:[#allocation17 + $0x1ac] sm:$0xf0]  ;;  %v4791_v36 = vor.u32 %v5542_v25, %v4790_v24  ;;  %v4710_v24 = vld [vmem:[#allocation17 + $0x20] sm:$0xf] }
 0x407   : > { %4434 = vmatmul.msk.bf16.vlgmr.msra.gmra.mxu2 %vm2141_vm0, %v2164_v48  ;;  %4435 = vmatmul.msk.bf16.vlgmr.msra.gmra.mxu3 %vm2141_vm0, %v2164_v48  ;;  %v4483_v48 = vor.u32 %v5461_v41, %v4480_v42  ;;  %v5538_v41 = vld [vmem:[#allocation17 + $0xac] sm:$0xf0] }
 0x408   : > { %2587 = vmatpush.bf16.msra.mxu2 %v4559_v59  ;;  %2600 = vmatpush.bf16.msra.mxu3 %v4687_v60  ;;  %v4608_v59 = vld [vmem:[#allocation15 + $0x158] sm:$0xf0]  ;;  %v4462_v60 = vld [vmem:[#allocation15 + $0x28] sm:$0xf]  ;;  %v4775_v49 = vor.u32 %v5538_v41, %v4774_v39  ;;  %v5554_v22 = vld [vmem:[#allocation17 + $0x12c] sm:$0xf0] }
 0x409   : > { %2627 = vmatpush.bf16.msra.mxu1 %v4675_v47  ;;  %2617 = vmatpush.bf16.msra.mxu0 %v4499_v28  ;;  %v4611_v61 = vor.u32 %v5493_v50, %v4608_v59  ;;  %v4463_v40 = vor.u32 %v5459_v62, %v4462_v60  ;;  %v5453_v47 = vld [vmem:[#allocation15 + $0xc] sm:$0xf]  ;;  %v5063_v28 = vor.u32 %v5610_v11, %v5062_v10  ;;  %v5634_v50 = vld [vmem:[#allocation17 + $0x3ac] sm:$0xf0]  ;;  %v5030_v59 = vld [vmem:[#allocation17 + $0x2a0] sm:$0xf] }
 0x40a   : > { %v5602_v60 = vld [vmem:[#allocation17 + $0x2ac] sm:$0xf0]  ;;  %v4886_v62 = vld [vmem:[#allocation17 + $0x180] sm:$0xf]  ;;  %v4936_v41 = vld [vmem:[#allocation17 + $0x1f0] sm:$0xf0] }
 0x40b   : > { %v4982_v10 = vld [vmem:[#allocation17 + $0x240] sm:$0xf]  ;;  %v5590_v11 = vld [vmem:[#allocation17 + $0x24c] sm:$0xf0] }
 0x40c   : > { %2588 = vmatpush.bf16.msra.mxu2 %v4543_v16  ;;  %2601 = vmatpush.bf16.msra.mxu3 %v4671_v19  ;;  %v4592_v16 = vld [vmem:[#allocation15 + $0x138] sm:$0xf0]  ;;  %v4446_v19 = vld [vmem:[#allocation15 + $0x8] sm:$0xf]  ;;  %v5522_v25 = vld [vmem:[#allocation17 + $0x2c] sm:$0xf0] }
 0x40d   : > { %2628 = vmatpush.bf16.msra.mxu1 %v4659_v51  ;;  %2618 = vmatpush.bf16.msra.mxu0 %v4483_v48  ;;  %v4595_v29 = vor.u32 %v5489_v14, %v4592_v16  ;;  %v4447_v63 = vor.u32 %v5455_v20, %v4446_v19  ;;  %v5578_v51 = vld [vmem:[#allocation17 + $0x1ec] sm:$0xf0]  ;;  %v5031_v14 = vor.u32 %v5602_v60, %v5030_v59  ;;  %v5014_v16 = vld [vmem:[#allocation17 + $0x280] sm:$0xf] }
 0x40e   : > { %v4935_v17 = vor.u32 %v5578_v51, %v4934_v45  ;;  %v5598_v19 = vld [vmem:[#allocation17 + $0x28c] sm:$0xf0]  ;;  %v4887_v20 = vor.u32 %v5566_v44, %v4886_v62  ;;  %v4854_v51 = vld [vmem:[#allocation17 + $0x140] sm:$0xf]  ;;  %v5192_v62 = vld [vmem:[#allocation17 + $0x3f0] sm:$0xf0] }
 0x410   : > { %2589 = vmatpush.bf16.msra.mxu2 %v4527_v58  ;;  %2602 = vmatpush.bf16.msra.mxu3 %v4655_v1  ;;  %v4451_v58 = vor.u32 %v5453_v47, %v4448_v53  ;;  %v4579_v1 = vor.u32 %v5485_v56, %v4576_v55  ;;  %v4742_v47 = vld [vmem:[#allocation17 + $0x60] sm:$0xf]  ;;  %v5015_v55 = vor.u32 %v5598_v19, %v5014_v16  ;;  %v5568_v19 = vld [vmem:[#allocation17 + $0x1a4] sm:$0xf] }
 0x411   : > { %2629 = vmatpush.bf16.msra.mxu1 %v4643_v12  ;;  %2619 = vmatpush.bf16.msra.mxu0 %v4467_v15  ;;  %v5630_v15 = vld [vmem:[#allocation17 + $0x38c] sm:$0xf0]  ;;  %v5126_v56 = vld [vmem:[#allocation17 + $0x360] sm:$0xf] }
 0x412   : > { %v5143_v53 = vor.u32 %v5630_v15, %v5142_v13  ;;  %v4792_v13 = vld [vmem:[#allocation17 + $0xd0] sm:$0xf0] }
 0x414   : > { %2590 = vmatpush.bf16.msra.mxu2 %v4511_v3  ;;  %2603 = vmatpush.bf16.msra.mxu3 %v4639_v8  ;;  %v5546_v3 = vld [vmem:[#allocation17 + $0xec] sm:$0xf0] }
 0x415   : > { %2630 = vmatpush.bf16.msra.mxu1 %v4627_v34  ;;  %2620 = vmatpush.bf16.msra.mxu0 %v4451_v58  ;;  %v5642_v8 = vld [vmem:[#allocation17 + $0x3ec] sm:$0xf0]  ;;  %v4902_v34 = vld [vmem:[#allocation17 + $0x1a0] sm:$0xf] }
 0x416   : > { %v5191_v26 = vor.u32 %v5642_v8, %v5190_v4  ;;  %v4998_v58 = vld [vmem:[#allocation17 + $0x260] sm:$0xf]  ;;  %v5622_v8 = vld [vmem:[#allocation17 + $0x34c] sm:$0xf0] }
 0x418   : > { %2591 = vmatpush.bf16.msra.mxu2 %v4495_v23  ;;  %2604 = vmatpush.bf16.msra.mxu3 %v4623_v27  ;;  %v4807_v23 = vor.u32 %v5546_v3, %v4806_v2  ;;  %v5174_v27 = vld [vmem:[#allocation17 + $0x3c0] sm:$0xf]  ;;  %v5526_v3 = vld [vmem:[#allocation17 + $0x4c] sm:$0xf0] }
 0x419   : > { %2631 = vmatpush.bf16.msra.mxu1 %v4611_v61  ;;  %v4903_v61 = vor.u32 %v5570_v35, %v4902_v34  ;;  %v4726_v2 = vld [vmem:[#allocation17 + $0x40] sm:$0xf]  ;;  %v4711_v34 = vor.u32 %v5522_v25, %v4710_v24  ;;  %v5576_v35 = vld [vmem:[#allocation17 + $0x1e4] sm:$0xf]  ;;  %v5064_v24 = vld [vmem:[#allocation17 + $0x2f0] sm:$0xf0] }
 0x41a   : > { %v4939_v44 = vor.u32 %v5576_v35, %v4936_v41  ;;  %v5048_v35 = vld [vmem:[#allocation17 + $0x2d0] sm:$0xf0]  ;;  %v5628_v41 = vld [vmem:[#allocation17 + $0x384] sm:$0xf] }
 0x41c   : > { %2592 = vmatpush.bf16.msra.mxu2 %v4479_v38  ;;  %2605 = vmatpush.bf16.msra.mxu3 %v4607_v43  ;;  %v5158_v43 = vld [vmem:[#allocation17 + $0x3a0] sm:$0xf] }
 0x41d   : > { %2632 = vmatpush.bf16.msra.mxu1 %v4595_v29  ;;  %v5159_v33 = vor.u32 %v5634_v50, %v5158_v43  ;;  %v4870_v29 = vld [vmem:[#allocation17 + $0x160] sm:$0xf]  ;;  %v4808_v43 = vld [vmem:[#allocation17 + $0xf0] sm:$0xf0]  ;;  %v5614_v50 = vld [vmem:[#allocation17 + $0x30c] sm:$0xf0] }
 0x41e   : > { %v4871_v45 = vor.u32 %v5562_v30, %v4870_v29  ;;  %v4904_v29 = vld [vmem:[#allocation17 + $0x1b0] sm:$0xf0]  ;;  %v5536_v30 = vld [vmem:[#allocation17 + $0xa4] sm:$0xf] }
 0x420   : > { %2593 = vmatpush.bf16.msra.mxu2 %v4463_v40  ;;  %2606 = vmatpush.bf16.msra.mxu3 %v4591_v54  ;;  %v4758_v40 = vld [vmem:[#allocation17 + $0x80] sm:$0xf]  ;;  %v5534_v54 = vld [vmem:[#allocation17 + $0x8c] sm:$0xf0] }
 0x421   : > { %2633 = vmatpush.bf16.msra.mxu1 %v4579_v1  ;;  %v4759_v46 = vor.u32 %v5534_v54, %v4758_v40  ;;  %v5594_v1 = vld [vmem:[#allocation17 + $0x26c] sm:$0xf0]  ;;  %v4920_v54 = vld [vmem:[#allocation17 + $0x1d0] sm:$0xf0] }
 0x424   : > { %2594 = vmatpush.bf16.msra.mxu2 %v4447_v63  ;;  %2607 = vmatpush.bf16.msra.mxu3 %v4575_v0  ;;  %v5530_v63 = vld [vmem:[#allocation17 + $0x6c] sm:$0xf0] }
 0x425   : > { %v5626_v0 = vld [vmem:[#allocation17 + $0x36c] sm:$0xf0] }
 0x426   : > { %v5127_v4 = vor.u32 %v5626_v0, %v5126_v56  ;;  %v4888_v56 = vld [vmem:[#allocation17 + $0x190] sm:$0xf0] }
 0x427   : > { %v4760_v0 = vld [vmem:[#allocation17 + $0x90] sm:$0xf0] }
 0x48a   : > { %v2185_v52 = vpop.f32.mrf.mxu2  ;;  %v2198_v57 = vpop.f32.mrf.mxu3 }
 0x48b   : > { %v2202_v6 = vadd.f32 %v2185_v52, %v6843_v18  ;;  %v2203_v7 = vadd.f32 %v2198_v57, %v6845_v21  ;;  %v5638_v18 = vld [vmem:[#allocation17 + $0x3cc] sm:$0xf0]  ;;  %v5046_v21 = vld [vmem:[#allocation17 + $0x2c0] sm:$0xf]  ;;  %v4743_v57 = vor.u32 %v5530_v63, %v4742_v47  ;;  %v4907_v47 = vor.u32 %v5568_v19, %v4904_v29  ;;  %v5564_v63 = vld [vmem:[#allocation17 + $0x184] sm:$0xf] }
 0x48c   : > { %v5175_v42 = vor.u32 %v5638_v18, %v5174_v27  ;;  %v5047_v48 = vor.u32 %v5606_v31, %v5046_v21  ;;  %v5558_v52 = vld [vmem:[#allocation17 + $0x14c] sm:$0xf0]  ;;  %v5094_v27 = vld [vmem:[#allocation17 + $0x320] sm:$0xf]  ;;  %v5620_v19 = vld [vmem:[#allocation17 + $0x344] sm:$0xf] }
 0x48d   : > { %v6881_v5 = vpack.c.bf16 %v2202_v6, %v2202_v6  ;;  %v6883_v12 = vpack.c.bf16 %v2203_v7, %v2203_v7  ;;  %v5110_v6 = vld [vmem:[#allocation17 + $0x340] sm:$0xf]  ;;  %v4999_v7 = vor.u32 %v5594_v1, %v4998_v58  ;;  %v5618_v18 = vld [vmem:[#allocation17 + $0x32c] sm:$0xf0]  ;;  %v4891_v58 = vor.u32 %v5564_v63, %v4888_v56  ;;  %v5616_v63 = vld [vmem:[#allocation17 + $0x324] sm:$0xf] }
 0x48e   : > { %v4966_v21 = vld [vmem:[#allocation17 + $0x220] sm:$0xf]  ;;  %v5586_v31 = vld [vmem:[#allocation17 + $0x22c] sm:$0xf0] }
 0x48f   : > { %2543 = vmatmul.bf16.vlgmr.msrb.gmra.mxu2 %v6881_v5  ;;  %2556 = vmatmul.bf16.vlgmr.msrb.gmra.mxu3 %v6883_v12  ;;  %v4967_v39 = vor.u32 %v5586_v31, %v4966_v21  ;;  %v5160_v21 = vld [vmem:[#allocation17 + $0x3b0] sm:$0xf0] }
 0x490   : > { %2569 = vmatmul.bf16.vlgmr.msrb.gmra.mxu0 %v6881_v5  ;;  %2582 = vmatmul.bf16.vlgmr.msrb.gmra.mxu1 %v6883_v12 }
 0x491   : > { %3309 = vmatpush.bf16.msrb.mxu3 %v4935_v17  ;;  %3296 = vmatpush.bf16.msrb.mxu2 %v4807_v23  ;;  %v4855_v17 = vor.u32 %v5558_v52, %v4854_v51  ;;  %v4727_v23 = vor.u32 %v5526_v3, %v4726_v2  ;;  %v4872_v51 = vld [vmem:[#allocation17 + $0x170] sm:$0xf0]  ;;  %v5636_v3 = vld [vmem:[#allocation17 + $0x3c4] sm:$0xf] }
 0x492   : > { %v2187_v37 = vpop.f32.mrf.mxu2  ;;  %v2200_v38 = vpop.f32.mrf.mxu3  ;;  %3335 = vmatpush.bf16.msrb.mxu1 %v5191_v26  ;;  %3322 = vmatpush.bf16.msrb.mxu0 %v5063_v28  ;;  %v5111_v26 = vor.u32 %v5622_v8, %v5110_v6  ;;  %v4983_v28 = vor.u32 %v5590_v11, %v4982_v10  ;;  %v4856_v2 = vld [vmem:[#allocation17 + $0x150] sm:$0xf0]  ;;  %v5582_v8 = vld [vmem:[#allocation17 + $0x20c] sm:$0xf0] }
 0x493   : > { %v5518_v37 = vld [vmem:[#allocation17 + $0xc] sm:$0xf0]  ;;  %v5095_v38 = vor.u32 %v5618_v18, %v5094_v27  ;;  %v5176_v6 = vld [vmem:[#allocation17 + $0x3d0] sm:$0xf0] }
 0x494   : > { %v5179_v10 = vor.u32 %v5636_v3, %v5176_v6  ;;  %v4840_v27 = vld [vmem:[#allocation17 + $0x130] sm:$0xf0]  ;;  %v6896_v3 = vld [vmem:[%s6963_s8] sm:$0xf] }
 0x495   : > { %3310 = vmatpush.bf16.msrb.mxu3 %v4919_v32  ;;  %3297 = vmatpush.bf16.msrb.mxu2 %v4791_v36  ;;  %v5550_v32 = vld [vmem:[#allocation17 + $0x10c] sm:$0xf0]  ;;  %v4694_v36 = vld [vmem:[#allocation17] sm:$0xf]  ;;  %v4952_v6 = vld [vmem:[#allocation17 + $0x210] sm:$0xf0] }
 0x496   : > { %3336 = vmatpush.bf16.msrb.mxu1 %v5175_v42  ;;  %3323 = vmatpush.bf16.msrb.mxu0 %v5047_v48  ;;  %v5544_v42 = vld [vmem:[#allocation17 + $0xe4] sm:$0xf]  ;;  %v5078_v48 = vld [vmem:[#allocation17 + $0x300] sm:$0xf]  ;;  %v4695_v60 = vor.u32 %v5518_v37, %v4694_v36 }
 0x497   : > { %v4811_v40 = vor.u32 %v5544_v42, %v4808_v43  ;;  %v5548_v37 = vld [vmem:[#allocation17 + $0x104] sm:$0xf]  ;;  %v5144_v42 = vld [vmem:[#allocation17 + $0x390] sm:$0xf0] }
 0x498   : > { %v5147_v43 = vor.u32 %v5628_v41, %v5144_v42  ;;  %v4910_v41 = vld [vmem:[#allocation17 + $0x1a8] sm:$0xf]  ;;  %v5571_v42 = vld [vmem:[#allocation17 + $0x1b4] sm:$0xf0] }
 0x499   : > { %3311 = vmatpush.bf16.msrb.mxu3 %v4903_v61  ;;  %3298 = vmatpush.bf16.msrb.mxu2 %v4775_v49  ;;  %v5640_v61 = vld [vmem:[#allocation17 + $0x3e4] sm:$0xf] }
 0x49a   : > { %3337 = vmatpush.bf16.msrb.mxu1 %v5159_v33  ;;  %3324 = vmatpush.bf16.msrb.mxu0 %v5031_v14  ;;  %v5572_v49 = vld [vmem:[#allocation17 + $0x1c4] sm:$0xf]  ;;  %v5079_v14 = vor.u32 %v5614_v50, %v5078_v48  ;;  %v5195_v15 = vor.u32 %v5640_v61, %v5192_v62  ;;  %v4712_v50 = vld [vmem:[#allocation17 + $0x30] sm:$0xf0] }
 0x49b   : > { %v5540_v33 = vld [vmem:[#allocation17 + $0xc4] sm:$0xf]  ;;  %v4923_v16 = vor.u32 %v5572_v49, %v4920_v54  ;;  %v5032_v61 = vld [vmem:[#allocation17 + $0x2b0] sm:$0xf0] }
 0x49c   : > { %v5520_v48 = vld [vmem:[#allocation17 + $0x24] sm:$0xf]  ;;  %v5128_v49 = vld [vmem:[#allocation17 + $0x370] sm:$0xf0] }
 0x49d   : > { %3312 = vmatpush.bf16.msrb.mxu3 %v4887_v20  ;;  %3299 = vmatpush.bf16.msrb.mxu2 %v4759_v46  ;;  %v4795_v20 = vor.u32 %v5540_v33, %v4792_v13  ;;  %v4776_v46 = vld [vmem:[#allocation17 + $0xb0] sm:$0xf0]  ;;  %v5516_v54 = vld [vmem:[#allocation17 + $0x4] sm:$0xf] }
 0x49e   : > { %3338 = vmatpush.bf16.msrb.mxu1 %v5143_v53  ;;  %3325 = vmatpush.bf16.msrb.mxu0 %v5015_v55  ;;  %v4779_v53 = vor.u32 %v5536_v30, %v4776_v46  ;;  %v5532_v55 = vld [vmem:[#allocation17 + $0x84] sm:$0xf]  ;;  %v4696_v33 = vld [vmem:[#allocation17 + $0x10] sm:$0xf0] }
 0x49f   : > { %2595 = vmatmul.bf16.vlgmr.msra.gmra.mxu2 %v6881_v5  ;;  %2608 = vmatmul.bf16.vlgmr.msra.gmra.mxu3 %v6883_v12  ;;  %v4763_v1 = vor.u32 %v5532_v55, %v4760_v0  ;;  %v5596_v13 = vld [vmem:[#allocation17 + $0x284] sm:$0xf]  ;;  %v5000_v46 = vld [vmem:[#allocation17 + $0x270] sm:$0xf0] }
 0x4a0   : > { %2621 = vmatmul.bf16.vlgmr.msra.gmra.mxu0 %v6881_v5  ;;  %2634 = vmatmul.bf16.vlgmr.msra.gmra.mxu1 %v6883_v12  ;;  %v4839_v5 = vor.u32 %v5554_v22, %v4838_v9  ;;  %v4822_v12 = vld [vmem:[#allocation17 + $0x100] sm:$0xf]  ;;  %v4744_v9 = vld [vmem:[#allocation17 + $0x70] sm:$0xf0]  ;;  %v5608_v22 = vld [vmem:[#allocation17 + $0x2e4] sm:$0xf] }
 0x4a1   : > { %3313 = vmatpush.bf16.msrb.mxu3 %v4871_v45  ;;  %3300 = vmatpush.bf16.msrb.mxu2 %v4743_v57  ;;  %v4823_v59 = vor.u32 %v5550_v32, %v4822_v12  ;;  %v5560_v45 = vld [vmem:[#allocation17 + $0x164] sm:$0xf]  ;;  %v5067_v25 = vor.u32 %v5608_v22, %v5064_v24  ;;  %v4728_v12 = vld [vmem:[#allocation17 + $0x50] sm:$0xf0]  ;;  %v5579_v24 = vld [vmem:[#allocation17 + $0x1f4] sm:$0xf0] }
 0x4a2   : > { %3339 = vmatpush.bf16.msrb.mxu1 %v5127_v4  ;;  %3326 = vmatpush.bf16.msrb.mxu0 %v4999_v7  ;;  %v4875_v52 = vor.u32 %v5560_v45, %v4872_v51  ;;  %v5556_v57 = vld [vmem:[#allocation17 + $0x144] sm:$0xf]  ;;  %v4950_v7 = vld [vmem:[#allocation17 + $0x200] sm:$0xf]  ;;  %v4984_v0 = vld [vmem:[#allocation17 + $0x250] sm:$0xf0] }
 0x4a3   : > { %v4859_v4 = vor.u32 %v5556_v57, %v4856_v2  ;;  %v4951_v11 = vor.u32 %v5582_v8, %v4950_v7  ;;  %v5604_v32 = vld [vmem:[#allocation17 + $0x2c4] sm:$0xf]  ;;  %v5080_v45 = vld [vmem:[#allocation17 + $0x310] sm:$0xf0]  ;;  %v2208_v7 = vperm.slane %v6896_v3, 1 }
 0x4a4   : > { %v5051_v36 = vor.u32 %v5604_v32, %v5048_v35  ;;  %v5592_v30 = vld [vmem:[#allocation17 + $0x264] sm:$0xf]  ;;  %v4968_v57 = vld [vmem:[#allocation17 + $0x230] sm:$0xf0]  ;;  %v4814_v35 = vld [vmem:[#allocation17 + $0xe8] sm:$0xf] }
 0x4a5   : > { %3314 = vmatpush.bf16.msrb.mxu3 %v4855_v17  ;;  %3301 = vmatpush.bf16.msrb.mxu2 %v4727_v23  ;;  %v5528_v17 = vld [vmem:[#allocation17 + $0x64] sm:$0xf] }
 0x4a6   : > { %3340 = vmatpush.bf16.msrb.mxu1 %v5111_v26  ;;  %3327 = vmatpush.bf16.msrb.mxu0 %v4983_v28  ;;  %v4747_v23 = vor.u32 %v5528_v17, %v4744_v9  ;;  %v5552_v26 = vld [vmem:[#allocation17 + $0x124] sm:$0xf]  ;;  %v2207_v9 = vperm.slane %v6896_v3, 0 }
 0x4a7   : > { %v5632_v28 = vld [vmem:[#allocation17 + $0x3a4] sm:$0xf]  ;;  %v4843_v18 = vor.u32 %v5552_v26, %v4840_v27 }
 0x4a8   : > { %v5163_v31 = vor.u32 %v5632_v28, %v5160_v21  ;;  %v5588_v55 = vld [vmem:[#allocation17 + $0x244] sm:$0xf] }
 0x4a9   : > { %3315 = vmatpush.bf16.msrb.mxu3 %v4839_v5  ;;  %3302 = vmatpush.bf16.msrb.mxu2 %v4711_v34  ;;  %v5524_v5 = vld [vmem:[#allocation17 + $0x44] sm:$0xf] }
 0x4aa   : > { %3341 = vmatpush.bf16.msrb.mxu1 %v5095_v38  ;;  %3328 = vmatpush.bf16.msrb.mxu0 %v4967_v39  ;;  %v4731_v34 = vor.u32 %v5524_v5, %v4728_v12  ;;  %v4824_v38 = vld [vmem:[#allocation17 + $0x110] sm:$0xf0]  ;;  %v5575_v5 = vld [vmem:[#allocation17 + $0x1d4] sm:$0xf0] }
 0x4ab   : > { %v4827_v39 = vor.u32 %v5548_v37, %v4824_v38 }
 0x4ad   : > { %3316 = vmatpush.bf16.msrb.mxu3 %v4823_v59  ;;  %3303 = vmatpush.bf16.msrb.mxu2 %v4695_v60  ;;  %v5600_v59 = vld [vmem:[#allocation17 + $0x2a4] sm:$0xf]  ;;  %v4715_v60 = vor.u32 %v5520_v48, %v4712_v50  ;;  %v4798_v48 = vld [vmem:[#allocation17 + $0xc8] sm:$0xf]  ;;  %v5543_v50 = vld [vmem:[#allocation17 + $0xd4] sm:$0xf0] }
 0x4ae   : > { %3342 = vmatpush.bf16.msrb.mxu1 %v5079_v14  ;;  %3329 = vmatpush.bf16.msrb.mxu0 %v4951_v11  ;;  %v5035_v62 = vor.u32 %v5600_v59, %v5032_v61  ;;  %v4699_v14 = vor.u32 %v5516_v54, %v4696_v33  ;;  %v2210_v61 = vperm.slane %v6896_v3, 3 }
 0x4b1   : > { %3361 = vmatpush.bf16.msra.mxu3 %v4939_v44  ;;  %3348 = vmatpush.bf16.msra.mxu2 %v4811_v40  ;;  %v5624_v44 = vld [vmem:[#allocation17 + $0x364] sm:$0xf] }
 0x4b2   : > { %3387 = vmatpush.bf16.msra.mxu1 %v5195_v15  ;;  %3374 = vmatpush.bf16.msra.mxu0 %v5067_v25  ;;  %v5131_v40 = vor.u32 %v5624_v44, %v5128_v49  ;;  %v5016_v15 = vld [vmem:[#allocation17 + $0x290] sm:$0xf0]  ;;  %v4799_v44 = vor.u32 %v5543_v50, %v4798_v48  ;;  %v4894_v49 = vld [vmem:[#allocation17 + $0x188] sm:$0xf]  ;;  %v5551_v48 = vld [vmem:[#allocation17 + $0x114] sm:$0xf0] }
 0x4b3   : > { %v5150_v50 = vld [vmem:[#allocation17 + $0x388] sm:$0xf] }
 0x4b5   : > { %3362 = vmatpush.bf16.msra.mxu3 %v4923_v16  ;;  %3349 = vmatpush.bf16.msra.mxu2 %v4795_v20  ;;  %v5019_v16 = vor.u32 %v5596_v13, %v5016_v15  ;;  %v5112_v20 = vld [vmem:[#allocation17 + $0x350] sm:$0xf0]  ;;  %v4782_v13 = vld [vmem:[#allocation17 + $0xa8] sm:$0xf] }
 0x4b6   : > { %3388 = vmatpush.bf16.msra.mxu1 %v5179_v10  ;;  %3375 = vmatpush.bf16.msra.mxu0 %v5051_v36  ;;  %v5115_v29 = vor.u32 %v5620_v19, %v5112_v20  ;;  %v5547_v36 = vld [vmem:[#allocation17 + $0xf4] sm:$0xf0]  ;;  %v2209_v19 = vperm.slane %v6896_v3, 2  ;;  %v4878_v20 = vld [vmem:[#allocation17 + $0x168] sm:$0xf] }
 0x4b7   : > { %v5559_v3 = vld [vmem:[#allocation17 + $0x154] sm:$0xf0] }
 0x4b9   : > { %3363 = vmatpush.bf16.msra.mxu3 %v4907_v47  ;;  %3350 = vmatpush.bf16.msra.mxu2 %v4779_v53  ;;  %v5003_v47 = vor.u32 %v5592_v30, %v5000_v46  ;;  %v5096_v53 = vld [vmem:[#allocation17 + $0x330] sm:$0xf0]  ;;  %v5563_v46 = vld [vmem:[#allocation17 + $0x174] sm:$0xf0] }
 0x4ba   : > { %3389 = vmatpush.bf16.msra.mxu1 %v5163_v31  ;;  %3376 = vmatpush.bf16.msra.mxu0 %v5035_v62  ;;  %v5099_v56 = vor.u32 %v5616_v63, %v5096_v53  ;;  %v4926_v31 = vld [vmem:[#allocation17 + $0x1c8] sm:$0xf]  ;;  %v4911_v62 = vor.u32 %v5571_v42, %v4910_v41  ;;  %v5643_v63 = vld [vmem:[#allocation17 + $0x3f4] sm:$0xf0] }
 0x4bb   : > { %v4927_v38 = vor.u32 %v5575_v5, %v4926_v31  ;;  %v4766_v53 = vld [vmem:[#allocation17 + $0x88] sm:$0xf] }
 0x4bc   : > { %v4830_v42 = vld [vmem:[#allocation17 + $0x108] sm:$0xf] }
 0x4bd   : > { %3364 = vmatpush.bf16.msra.mxu3 %v4891_v58  ;;  %3351 = vmatpush.bf16.msra.mxu2 %v4763_v1  ;;  %v4987_v58 = vor.u32 %v5588_v55, %v4984_v0  ;;  %v5612_v1 = vld [vmem:[#allocation17 + $0x304] sm:$0xf] }
 0x4be   : > { %3390 = vmatpush.bf16.msra.mxu1 %v5147_v43  ;;  %3377 = vmatpush.bf16.msra.mxu0 %v5019_v16  ;;  %v5083_v51 = vor.u32 %v5612_v1, %v5080_v45  ;;  %v4879_v45 = vor.u32 %v5563_v46, %v4878_v20  ;;  %v4928_v46 = vld [vmem:[#allocation17 + $0x1d8] sm:$0xf0] }
 0x4c1   : > { %3365 = vmatpush.bf16.msra.mxu3 %v4875_v52  ;;  %3352 = vmatpush.bf16.msra.mxu2 %v4747_v23  ;;  %v5584_v52 = vld [vmem:[#allocation17 + $0x224] sm:$0xf]  ;;  %v4942_v23 = vld [vmem:[#allocation17 + $0x1e8] sm:$0xf] }
 0x4c2   : > { %3391 = vmatpush.bf16.msra.mxu1 %v5131_v40  ;;  %3378 = vmatpush.bf16.msra.mxu0 %v5003_v47  ;;  %v4971_v2 = vor.u32 %v5584_v52, %v4968_v57  ;;  %v5567_v40 = vld [vmem:[#allocation17 + $0x194] sm:$0xf0]  ;;  %v5198_v47 = vld [vmem:[#allocation17 + $0x3e8] sm:$0xf] }
 0x4c3   : > { %v4895_v16 = vor.u32 %v5567_v40, %v4894_v49  ;;  %v4862_v52 = vld [vmem:[#allocation17 + $0x148] sm:$0xf]  ;;  %v5523_v40 = vld [vmem:[#allocation17 + $0x34] sm:$0xf0] }
 0x4c4   : > { %v4718_v49 = vld [vmem:[#allocation17 + $0x28] sm:$0xf] }
 0x4c5   : > { %3366 = vmatpush.bf16.msra.mxu3 %v4859_v4  ;;  %3353 = vmatpush.bf16.msra.mxu2 %v4731_v34  ;;  %v5580_v4 = vld [vmem:[#allocation17 + $0x204] sm:$0xf]  ;;  %v4719_v20 = vor.u32 %v5523_v40, %v4718_v49  ;;  %v5557_v40 = vld [vmem:[#allocation17 + $0x14c] sm:$0xf] }
 0x4c6   : > { %3392 = vmatpush.bf16.msra.mxu1 %v5115_v29  ;;  %3379 = vmatpush.bf16.msra.mxu0 %v4987_v58  ;;  %v4955_v8 = vor.u32 %v5580_v4, %v4952_v6  ;;  %v5182_v4 = vld [vmem:[#allocation17 + $0x3c8] sm:$0xf]  ;;  %v5639_v6 = vld [vmem:[#allocation17 + $0x3d4] sm:$0xf0] }
 0x4c9   : > { %3367 = vmatpush.bf16.msra.mxu3 %v4843_v18  ;;  %3354 = vmatpush.bf16.msra.mxu2 %v4715_v60  ;;  %v4943_v18 = vor.u32 %v5579_v24, %v4942_v23  ;;  %v4863_v24 = vor.u32 %v5559_v3, %v4862_v52  ;;  %v5569_v3 = vld [vmem:[#allocation17 + $0x1ac] sm:$0xf] }
 0x4ca   : > { %3393 = vmatpush.bf16.msra.mxu1 %v5099_v56  ;;  %3380 = vmatpush.bf16.msra.mxu0 %v4971_v2  ;;  %v5535_v56 = vld [vmem:[#allocation17 + $0x94] sm:$0xf0] }
 0x4cb   : > { %v4767_v2 = vor.u32 %v5535_v56, %v4766_v53  ;;  %v5022_v53 = vld [vmem:[#allocation17 + $0x288] sm:$0xf]  ;;  %v5599_v56 = vld [vmem:[#allocation17 + $0x294] sm:$0xf0] }
 0x4cd   : > { %3368 = vmatpush.bf16.msra.mxu3 %v4827_v39  ;;  %3355 = vmatpush.bf16.msra.mxu2 %v4699_v14  ;;  %v4815_v39 = vor.u32 %v5547_v36, %v4814_v35  ;;  %v5539_v14 = vld [vmem:[#allocation17 + $0xb4] sm:$0xf0] }
 0x4ce   : > { %3394 = vmatpush.bf16.msra.mxu1 %v5083_v51  ;;  %3381 = vmatpush.bf16.msra.mxu0 %v4955_v8  ;;  %v4783_v30 = vor.u32 %v5539_v14, %v4782_v13  ;;  %v5199_v51 = vor.u32 %v5643_v63, %v5198_v47  ;;  %v5527_v36 = vld [vmem:[#allocation17 + $0x54] sm:$0xf0]  ;;  %v4831_v13 = vor.u32 %v5551_v48, %v4830_v42  ;;  %v4702_v47 = vld [vmem:[#allocation17 + $0x8] sm:$0xf]  ;;  %v5200_v42 = vld [vmem:[#allocation17 + $0x3f8] sm:$0xf0] }
 0x4cf   : > { %v5519_v63 = vld [vmem:[#allocation17 + $0x14] sm:$0xf0] }
 0x4d0   : > { %v4703_v52 = vor.u32 %v5519_v63, %v4702_v47 }
 0x50d   : > { %v2570_v10 = vpop.f32.mrf.mxu0  ;;  %v2583_v11 = vpop.f32.mrf.mxu1 }
 0x50e   : > { %v2571_v17 = vadd.f32 %v2570_v10, %v2208_v7 }
 0x510   : > { %v2584_v22 = vadd.f32 %v2583_v11, %v2571_v17  ;;  %v4750_v11 = vld [vmem:[#allocation17 + $0x68] sm:$0xf]  ;;  %v5531_v17 = vld [vmem:[#allocation17 + $0x74] sm:$0xf0] }
 0x511   : > { %v4751_v5 = vor.u32 %v5531_v17, %v4750_v11  ;;  %v5541_v11 = vld [vmem:[#allocation17 + $0xcc] sm:$0xf]  ;;  %v4800_v17 = vld [vmem:[#allocation17 + $0xd8] sm:$0xf0] }
 0x512   : > { %v2640_v25 = vmax.f32 %v2584_v22, 0.0  ;;  %v2544_v26 = vpop.f32.mrf.mxu2  ;;  %v2557_v27 = vpop.f32.mrf.mxu3  ;;  %v5611_v22 = vld [vmem:[#allocation17 + $0x2f4] sm:$0xf0] }
 0x513   : > { %v2545_v28 = vadd.f32 %v2544_v26, %v2207_v9  ;;  %v5070_v9 = vld [vmem:[#allocation17 + $0x2e8] sm:$0xf] }
 0x514   : > { %v6900_v21 = vpack.c.bf16 %v2640_v25, %v2640_v25  ;;  %v5183_v25 = vor.u32 %v5639_v6, %v5182_v4  ;;  %v4846_v26 = vld [vmem:[#allocation17 + $0x128] sm:$0xf]  ;;  %v4912_v4 = vld [vmem:[#allocation17 + $0x1b8] sm:$0xf0] }
 0x515   : > { %v2558_v12 = vadd.f32 %v2557_v27, %v2545_v28  ;;  %v2572_v32 = vpop.f32.mrf.mxu0  ;;  %v2585_v34 = vpop.f32.mrf.mxu1  ;;  %v5555_v27 = vld [vmem:[#allocation17 + $0x134] sm:$0xf0]  ;;  %v5166_v28 = vld [vmem:[#allocation17 + $0x3a8] sm:$0xf] }
 0x516   : > { %3317 = vmatmul.bf16.vlgmr.msrb.gmra.mxu3 %v6900_v21  ;;  %v4734_v32 = vld [vmem:[#allocation17 + $0x48] sm:$0xf] }
 0x517   : > { %v2639_v37 = vmax.f32 %v2558_v12, 0.0  ;;  %3413 = vmatpush.bf16.msrb.mxu3 %v4943_v18  ;;  %v5635_v18 = vld [vmem:[#allocation17 + $0x3b4] sm:$0xf0]  ;;  %v5071_v12 = vor.u32 %v5611_v22, %v5070_v9  ;;  %v4915_v9 = vor.u32 %v5569_v3, %v4912_v4  ;;  %v5102_v22 = vld [vmem:[#allocation17 + $0x328] sm:$0xf] }
 0x518   : > { %v5167_v41 = vor.u32 %v5635_v18, %v5166_v28  ;;  %v4990_v28 = vld [vmem:[#allocation17 + $0x248] sm:$0xf]  ;;  %v5591_v18 = vld [vmem:[#allocation17 + $0x254] sm:$0xf0]  ;;  %v5056_v3 = vld [vmem:[#allocation17 + $0x2d8] sm:$0xf0] }
 0x519   : > { %v6903_v43 = vpack.c.bf16 %v2639_v37, %v2639_v37  ;;  %v5054_v37 = vld [vmem:[#allocation17 + $0x2c8] sm:$0xf] }
 0x51a   : > { %v2546_v59 = vpop.f32.mrf.mxu2  ;;  %v2559_v60 = vpop.f32.mrf.mxu3 }
 0x51b   : > { %3414 = vmatpush.bf16.msrb.mxu3 %v4927_v38  ;;  %3304 = vmatmul.bf16.vlgmr.msrb.gmra.mxu2 %v6903_v43  ;;  %v5607_v38 = vld [vmem:[#allocation17 + $0x2d4] sm:$0xf0]  ;;  %v4735_v60 = vor.u32 %v5527_v36, %v4734_v32  ;;  %v4784_v32 = vld [vmem:[#allocation17 + $0xb8] sm:$0xf0] }
 0x51c   : > { %3400 = vmatpush.bf16.msrb.mxu2 %v4815_v39  ;;  %v4847_v39 = vor.u32 %v5555_v27, %v4846_v26  ;;  %v5631_v59 = vld [vmem:[#allocation17 + $0x394] sm:$0xf0]  ;;  %v4896_v26 = vld [vmem:[#allocation17 + $0x198] sm:$0xf0]  ;;  %v4803_v27 = vor.u32 %v5541_v11, %v4800_v17 }
 0x51d   : > { %v2622_v54 = vpop.f32.mrf.mxu0  ;;  %v2635_v33 = vpop.f32.mrf.mxu1  ;;  %v5151_v14 = vor.u32 %v5631_v59, %v5150_v50  ;;  %v5615_v36 = vld [vmem:[#allocation17 + $0x314] sm:$0xf0]  ;;  %v4974_v50 = vld [vmem:[#allocation17 + $0x228] sm:$0xf]  ;;  %v5152_v11 = vld [vmem:[#allocation17 + $0x398] sm:$0xf0] }
 0x51e   : > { %v2623_v15 = vadd.f32 %v2622_v54, %v2210_v61  ;;  %v5055_v61 = vor.u32 %v5607_v38, %v5054_v37  ;;  %v5038_v54 = vld [vmem:[#allocation17 + $0x2a8] sm:$0xf]  ;;  %v5561_v37 = vld [vmem:[#allocation17 + $0x16c] sm:$0xf]  ;;  %v4991_v38 = vor.u32 %v5591_v18, %v4990_v28  ;;  %v5587_v59 = vld [vmem:[#allocation17 + $0x234] sm:$0xf0] }
 0x51f   : > { %3415 = vmatpush.bf16.msrb.mxu3 %v4911_v62  ;;  %v5577_v62 = vld [vmem:[#allocation17 + $0x1ec] sm:$0xf]  ;;  %v5136_v18 = vld [vmem:[#allocation17 + $0x378] sm:$0xf0] }
 0x520   : > { %v2636_v29 = vadd.f32 %v2635_v33, %v2623_v15  ;;  %3401 = vmatpush.bf16.msrb.mxu2 %v4799_v44  ;;  %v4944_v44 = vld [vmem:[#allocation17 + $0x1f8] sm:$0xf0]  ;;  %v5603_v33 = vld [vmem:[#allocation17 + $0x2b4] sm:$0xf0]  ;;  %v5625_v28 = vld [vmem:[#allocation17 + $0x36c] sm:$0xf] }
 0x521   : > { %v4947_v15 = vor.u32 %v5577_v62, %v4944_v44  ;;  %v4768_v62 = vld [vmem:[#allocation17 + $0x98] sm:$0xf0] }
 0x522   : > { %v2642_v55 = vmax.f32 %v2636_v29, 0.0  ;;  %v2596_v0 = vpop.f32.mrf.mxu2  ;;  %v2609_v58 = vpop.f32.mrf.mxu3  ;;  %v5039_v29 = vor.u32 %v5603_v33, %v5038_v54  ;;  %v4975_v54 = vor.u32 %v5587_v59, %v4974_v50  ;;  %v4864_v33 = vld [vmem:[#allocation17 + $0x158] sm:$0xf0] }
 0x523   : > { %3416 = vmatpush.bf16.msrb.mxu3 %v4895_v16  ;;  %v2597_v1 = vadd.f32 %v2596_v0, %v2209_v19  ;;  %v5134_v16 = vld [vmem:[#allocation17 + $0x368] sm:$0xf]  ;;  %v5627_v19 = vld [vmem:[#allocation17 + $0x374] sm:$0xf0]  ;;  %v5545_v0 = vld [vmem:[#allocation17 + $0xec] sm:$0xf]  ;;  %v4867_v47 = vor.u32 %v5557_v40, %v4864_v33 }
 0x524   : > { %v6908_v57 = vpack.c.bf16 %v2642_v55, %v2642_v55  ;;  %3402 = vmatpush.bf16.msrb.mxu2 %v4783_v30  ;;  %v5573_v30 = vld [vmem:[#allocation17 + $0x1cc] sm:$0xf]  ;;  %v5135_v55 = vor.u32 %v5627_v19, %v5134_v16  ;;  %v4958_v16 = vld [vmem:[#allocation17 + $0x208] sm:$0xf]  ;;  %v5583_v19 = vld [vmem:[#allocation17 + $0x214] sm:$0xf0] }
 0x525   : > { %v2610_v7 = vadd.f32 %v2609_v58, %v2597_v1  ;;  %v2624_v8 = vpop.f32.mrf.mxu0  ;;  %v2637_v10 = vpop.f32.mrf.mxu1  ;;  %v4816_v58 = vld [vmem:[#allocation17 + $0xf8] sm:$0xf0]  ;;  %v4931_v1 = vor.u32 %v5573_v30, %v4928_v46  ;;  %v5609_v30 = vld [vmem:[#allocation17 + $0x2ec] sm:$0xf] }
 0x526   : > { %3343 = vmatmul.bf16.vlgmr.msrb.gmra.mxu1 %v6908_v57  ;;  %3369 = vmatmul.bf16.vlgmr.msra.gmra.mxu3 %v6900_v21  ;;  %v4819_v6 = vor.u32 %v5545_v0, %v4816_v58  ;;  %v5595_v8 = vld [vmem:[#allocation17 + $0x274] sm:$0xf0]  ;;  %v5072_v46 = vld [vmem:[#allocation17 + $0x2f8] sm:$0xf0]  ;;  %v5633_v0 = vld [vmem:[#allocation17 + $0x3ac] sm:$0xf] }
 0x527   : > { %v2641_v23 = vmax.f32 %v2610_v7, 0.0  ;;  %3417 = vmatpush.bf16.msrb.mxu3 %v4879_v45  ;;  %3439 = vmatpush.bf16.msrb.mxu1 %v5199_v51  ;;  %v5118_v45 = vld [vmem:[#allocation17 + $0x348] sm:$0xf]  ;;  %v5623_v51 = vld [vmem:[#allocation17 + $0x354] sm:$0xf0] }
 0x528   : > { %3403 = vmatpush.bf16.msrb.mxu2 %v4767_v2  ;;  %v5023_v2 = vor.u32 %v5599_v56, %v5022_v53  ;;  %v5006_v7 = vld [vmem:[#allocation17 + $0x268] sm:$0xf]  ;;  %v5119_v10 = vor.u32 %v5623_v51, %v5118_v45  ;;  %v5553_v53 = vld [vmem:[#allocation17 + $0x12c] sm:$0xf]  ;;  %v4959_v56 = vor.u32 %v5583_v19, %v4958_v16  ;;  %v5168_v58 = vld [vmem:[#allocation17 + $0x3b8] sm:$0xf0]  ;;  %v5075_v45 = vor.u32 %v5609_v30, %v5072_v46 }
 0x529   : > { %v6912_v31 = vpack.c.bf16 %v2641_v23, %v2641_v23  ;;  %v5619_v23 = vld [vmem:[#allocation17 + $0x334] sm:$0xf0]  ;;  %v5525_v51 = vld [vmem:[#allocation17 + $0x4c] sm:$0xf]  ;;  %v5008_v50 = vld [vmem:[#allocation17 + $0x278] sm:$0xf0] }
 0x52a   : > { %v2598_v34 = vpop.f32.mrf.mxu2  ;;  %v2611_v35 = vpop.f32.mrf.mxu3  ;;  %v5651_v59 = vld [vmem:[#allocation18 + $0x38] sm:$0xff] }
 0x52b   : > { %3418 = vmatpush.bf16.msrb.mxu3 %v4863_v24  ;;  %3440 = vmatpush.bf16.msrb.mxu1 %v5183_v25  ;;  %v5007_v24 = vor.u32 %v5595_v8, %v5006_v7  ;;  %v5565_v25 = vld [vmem:[#allocation17 + $0x18c] sm:$0xf]  ;;  %v5086_v35 = vld [vmem:[#allocation17 + $0x308] sm:$0xf]  ;;  %v4832_v8 = vld [vmem:[#allocation17 + $0x118] sm:$0xf0] }
 0x52c   : > { %3330 = vmatmul.bf16.vlgmr.msrb.gmra.mxu0 %v6912_v31  ;;  %3356 = vmatmul.bf16.vlgmr.msra.gmra.mxu2 %v6903_v43  ;;  %v4899_v34 = vor.u32 %v5565_v25, %v4896_v26  ;;  %v5549_v7 = vld [vmem:[#allocation17 + $0x10c] sm:$0xf]  ;;  %v5040_v25 = vld [vmem:[#allocation17 + $0x2b8] sm:$0xf0] }
 0x52d   : > { %3404 = vmatpush.bf16.msrb.mxu2 %v4751_v5  ;;  %3426 = vmatpush.bf16.msrb.mxu0 %v5071_v12  ;;  %v5103_v5 = vor.u32 %v5619_v23, %v5102_v22  ;;  %v5537_v12 = vld [vmem:[#allocation17 + $0xac] sm:$0xf]  ;;  %v4720_v23 = vld [vmem:[#allocation17 + $0x38] sm:$0xf0]  ;;  %v4835_v26 = vor.u32 %v5549_v7, %v4832_v8  ;;  %v5652_v8 = vld [vmem:[#allocation18 + $0x40] sm:$0xff] }
 0x52e   : > { %v4787_v48 = vor.u32 %v5537_v12, %v4784_v32  ;;  %v5521_v22 = vld [vmem:[#allocation17 + $0x2c] sm:$0xf]  ;;  %v4992_v40 = vld [vmem:[#allocation17 + $0x258] sm:$0xf0] }
 0x52f   : > { %3419 = vmatpush.bf16.msrb.mxu3 %v4847_v39  ;;  %3441 = vmatpush.bf16.msrb.mxu1 %v5167_v41  ;;  %v4880_v39 = vld [vmem:[#allocation17 + $0x178] sm:$0xf0]  ;;  %v5641_v41 = vld [vmem:[#allocation17 + $0x3ec] sm:$0xf] }
 0x530   : > { %v4883_v44 = vor.u32 %v5561_v37, %v4880_v39  ;;  %v5203_v49 = vor.u32 %v5641_v41, %v5200_v42  ;;  %v5517_v32 = vld [vmem:[#allocation17 + $0xc] sm:$0xf]  ;;  %v5139_v37 = vor.u32 %v5625_v28, %v5136_v18  ;;  %v5120_v39 = vld [vmem:[#allocation17 + $0x358] sm:$0xf0] }
 0x531   : > { %3405 = vmatpush.bf16.msrb.mxu2 %v4735_v60  ;;  %3427 = vmatpush.bf16.msrb.mxu0 %v5055_v61  ;;  %v5087_v60 = vor.u32 %v5615_v36, %v5086_v35  ;;  %v5533_v61 = vld [vmem:[#allocation17 + $0x8c] sm:$0xf]  ;;  %v5024_v36 = vld [vmem:[#allocation17 + $0x298] sm:$0xf0] }
 0x532   : > { %v5597_v35 = vld [vmem:[#allocation17 + $0x28c] sm:$0xf]  ;;  %v4976_v16 = vld [vmem:[#allocation17 + $0x238] sm:$0xf0] }
 0x533   : > { %3420 = vmatpush.bf16.msrb.mxu3 %v4831_v13  ;;  %3442 = vmatpush.bf16.msrb.mxu1 %v5151_v14  ;;  %v5637_v13 = vld [vmem:[#allocation17 + $0x3cc] sm:$0xf]  ;;  %v5184_v14 = vld [vmem:[#allocation17 + $0x3d8] sm:$0xf0]  ;;  %v5027_v42 = vor.u32 %v5597_v35, %v5024_v36  ;;  %v5660_v35 = vld [vmem:[#allocation18 + $0x80] sm:$0xff] }
 0x534   : > { %v5187_v63 = vor.u32 %v5637_v13, %v5184_v14  ;;  %v5613_v13 = vld [vmem:[#allocation17 + $0x30c] sm:$0xf]  ;;  %v4960_v30 = vld [vmem:[#allocation17 + $0x218] sm:$0xf0] }
 0x535   : > { %3406 = vmatpush.bf16.msrb.mxu2 %v4719_v20  ;;  %3428 = vmatpush.bf16.msrb.mxu0 %v5039_v29  ;;  %v5529_v20 = vld [vmem:[#allocation17 + $0x6c] sm:$0xf]  ;;  %v4752_v29 = vld [vmem:[#allocation17 + $0x78] sm:$0xf0] }
 0x536   : > { %3395 = vmatmul.bf16.vlgmr.msra.gmra.mxu1 %v6908_v57  ;;  %3421 = vmatmul.bf16.vlgmr.msrb.gmra.mxu3 %v6900_v21  ;;  %v5675_v36 = vld [vmem:[#allocation18 + $0xf8] sm:$0xff] }
 0x537   : > { %3465 = vmatpush.bf16.msra.mxu3 %v4947_v15  ;;  %3443 = vmatpush.bf16.msrb.mxu1 %v5135_v55  ;;  %v4771_v15 = vor.u32 %v5533_v61, %v4768_v62  ;;  %v4848_v55 = vld [vmem:[#allocation17 + $0x138] sm:$0xf0]  ;;  %v5617_v61 = vld [vmem:[#allocation17 + $0x32c] sm:$0xf] }
 0x538   : > { %v4851_v4 = vor.u32 %v5553_v53, %v4848_v55  ;;  %v5104_v62 = vld [vmem:[#allocation17 + $0x338] sm:$0xf0]  ;;  %v5658_v55 = vld [vmem:[#allocation18 + $0x70] sm:$0xff] }
 0x539   : > { %3407 = vmatpush.bf16.msrb.mxu2 %v4703_v52  ;;  %3429 = vmatpush.bf16.msrb.mxu0 %v5023_v2  ;;  %v4736_v52 = vld [vmem:[#allocation17 + $0x58] sm:$0xf0]  ;;  %v5605_v2 = vld [vmem:[#allocation17 + $0x2cc] sm:$0xf]  ;;  %v5107_v33 = vor.u32 %v5617_v61, %v5104_v62 }
 0x53a   : > { %v4739_v17 = vor.u32 %v5525_v51, %v4736_v52  ;;  %v5659_v53 = vld [vmem:[#allocation18 + $0x78] sm:$0xff]  ;;  %v5654_v51 = vld [vmem:[#allocation18 + $0x50] sm:$0xff] }
 0x53b   : > { %3466 = vmatpush.bf16.msra.mxu3 %v4931_v1  ;;  %3444 = vmatpush.bf16.msrb.mxu1 %v5119_v10  ;;  %v4755_v1 = vor.u32 %v5529_v20, %v4752_v29  ;;  %v5629_v10 = vld [vmem:[#allocation17 + $0x38c] sm:$0xf]  ;;  %v5666_v52 = vld [vmem:[#allocation18 + $0xb0] sm:$0xff] }
 0x53c   : > { %3382 = vmatmul.bf16.vlgmr.msra.gmra.mxu0 %v6912_v31  ;;  %3408 = vmatmul.bf16.vlgmr.msrb.gmra.mxu2 %v6903_v43  ;;  %v5581_v29 = vld [vmem:[#allocation17 + $0x20c] sm:$0xf] }
 0x53d   : > { %3452 = vmatpush.bf16.msra.mxu2 %v4819_v6  ;;  %3430 = vmatpush.bf16.msrb.mxu0 %v5007_v24  ;;  %v5171_v6 = vor.u32 %v5633_v0, %v5168_v58  ;;  %v5601_v24 = vld [vmem:[#allocation17 + $0x2ac] sm:$0xf]  ;;  %v4963_v46 = vor.u32 %v5581_v29, %v4960_v30  ;;  %v5670_v30 = vld [vmem:[#allocation18 + $0xd0] sm:$0xff] }
 0x53e   : > { %v5043_v12 = vor.u32 %v5601_v24, %v5040_v25  ;;  %v5645_v0 = vld [vmem:[#allocation18 + $0x8] sm:$0xff]  ;;  %v5662_v25 = vld [vmem:[#allocation18 + $0x90] sm:$0xff] }
 0x53f   : > { %3467 = vmatpush.bf16.msra.mxu3 %v4915_v9  ;;  %3445 = vmatpush.bf16.msrb.mxu1 %v5103_v5  ;;  %v5059_v9 = vor.u32 %v5605_v2, %v5056_v3  ;;  %v4723_v5 = vor.u32 %v5521_v22, %v4720_v23  ;;  %v5657_v58 = vld [vmem:[#allocation18 + $0x68] sm:$0xff] }
 0x540   : > { %v5653_v3 = vld [vmem:[#allocation18 + $0x48] sm:$0xff] }
 0x541   : > { %3453 = vmatpush.bf16.msra.mxu2 %v4803_v27  ;;  %3431 = vmatpush.bf16.msrb.mxu0 %v4991_v38  ;;  %v5155_v27 = vor.u32 %v5629_v10, %v5152_v11  ;;  %v5621_v38 = vld [vmem:[#allocation17 + $0x34c] sm:$0xf]  ;;  %v5664_v10 = vld [vmem:[#allocation18 + $0xa0] sm:$0xff] }
 0x543   : > { %3468 = vmatpush.bf16.msra.mxu3 %v4899_v34  ;;  %3446 = vmatpush.bf16.msrb.mxu1 %v5087_v60  ;;  %v4704_v34 = vld [vmem:[#allocation17 + $0x18] sm:$0xf0]  ;;  %v5123_v60 = vor.u32 %v5621_v38, %v5120_v39 }
 0x544   : > { %v4707_v41 = vor.u32 %v5517_v32, %v4704_v34 }
 0x545   : > { %3454 = vmatpush.bf16.msra.mxu2 %v4787_v48  ;;  %3432 = vmatpush.bf16.msrb.mxu0 %v4975_v54  ;;  %v5593_v48 = vld [vmem:[#allocation17 + $0x26c] sm:$0xf]  ;;  %v5650_v54 = vld [vmem:[#allocation18 + $0x30] sm:$0xff] }
 0x546   : > { %3447 = vmatmul.bf16.vlgmr.msrb.gmra.mxu1 %v6908_v57 }
 0x547   : > { %3469 = vmatpush.bf16.msra.mxu3 %v4883_v44  ;;  %3491 = vmatpush.bf16.msra.mxu1 %v5203_v49  ;;  %v5011_v44 = vor.u32 %v5593_v48, %v5008_v50  ;;  %v5589_v49 = vld [vmem:[#allocation17 + $0x24c] sm:$0xf]  ;;  %v5674_v48 = vld [vmem:[#allocation18 + $0xf0] sm:$0xff] }
 0x548   : > { %v4995_v14 = vor.u32 %v5589_v49, %v4992_v40 }
 0x549   : > { %3455 = vmatpush.bf16.msra.mxu2 %v4771_v15  ;;  %3433 = vmatpush.bf16.msrb.mxu0 %v4959_v56  ;;  %v5585_v15 = vld [vmem:[#allocation17 + $0x22c] sm:$0xf]  ;;  %v5646_v56 = vld [vmem:[#allocation18 + $0x10] sm:$0xff] }
 0x54a   : > { %v4979_v20 = vor.u32 %v5585_v15, %v4976_v16 }
 0x54b   : > { %3470 = vmatpush.bf16.msra.mxu3 %v4867_v47  ;;  %3492 = vmatpush.bf16.msra.mxu1 %v5187_v63  ;;  %v5648_v47 = vld [vmem:[#allocation18 + $0x20] sm:$0xff]  ;;  %v5647_v63 = vld [vmem:[#allocation18 + $0x18] sm:$0xff] }
 0x54c   : > { %3434 = vmatmul.bf16.vlgmr.msrb.gmra.mxu0 %v6912_v31 }
 0x54d   : > { %3456 = vmatpush.bf16.msra.mxu2 %v4755_v1  ;;  %3478 = vmatpush.bf16.msra.mxu0 %v5075_v45  ;;  %v5656_v1 = vld [vmem:[#allocation18 + $0x60] sm:$0xff]  ;;  %v5667_v45 = vld [vmem:[#allocation18 + $0xb8] sm:$0xff] }
 0x54f   : > { %3471 = vmatpush.bf16.msra.mxu3 %v4851_v4  ;;  %3493 = vmatpush.bf16.msra.mxu1 %v5171_v6  ;;  %v5665_v4 = vld [vmem:[#allocation18 + $0xa8] sm:$0xff]  ;;  %v6929_v6 = vld [vmem:[%s6965_s10] sm:$0xf] }
 0x550   : > { %v2648_v11 = vperm.slane %v6929_v6, 0  ;;  %v2649_v39 = vperm.slane %v6929_v6, 1 }
 0x551   : > { %3457 = vmatpush.bf16.msra.mxu2 %v4739_v17  ;;  %3479 = vmatpush.bf16.msra.mxu0 %v5059_v9  ;;  %v5663_v9 = vld [vmem:[#allocation18 + $0x98] sm:$0xff] }
 0x553   : > { %3472 = vmatpush.bf16.msra.mxu3 %v4835_v26  ;;  %3494 = vmatpush.bf16.msra.mxu1 %v5155_v27 }
 0x555   : > { %3458 = vmatpush.bf16.msra.mxu2 %v4723_v5  ;;  %3480 = vmatpush.bf16.msra.mxu0 %v5043_v12  ;;  %v5661_v5 = vld [vmem:[#allocation18 + $0x88] sm:$0xff] }
 0x556   : > { %3473 = vmatmul.bf16.vlgmr.msra.gmra.mxu3 %v6900_v21  ;;  %v5088_v21 = vld [vmem:[#allocation17 + $0x318] sm:$0xf0] }
 0x557   : > { %3495 = vmatpush.bf16.msra.mxu1 %v5139_v37  ;;  %v5091_v19 = vor.u32 %v5613_v13, %v5088_v21  ;;  %3720 = vmatpush.bf16.msrb.mxu3 %v5659_v53 }
 0x559   : > { %3459 = vmatpush.bf16.msra.mxu2 %v4707_v41  ;;  %3481 = vmatpush.bf16.msra.mxu0 %v5027_v42 }
 0x55b   : > { %3496 = vmatpush.bf16.msra.mxu1 %v5123_v60  ;;  %3721 = vmatpush.bf16.msrb.mxu3 %v5658_v55  ;;  %v5673_v60 = vld [vmem:[#allocation18 + $0xe8] sm:$0xff]  ;;  %v5668_v55 = vld [vmem:[#allocation18 + $0xc0] sm:$0xff] }
 0x55c   : > { %3460 = vmatmul.bf16.vlgmr.msra.gmra.mxu2 %v6903_v43  ;;  %v5649_v43 = vld [vmem:[#allocation18 + $0x28] sm:$0xff] }
 0x55d   : > { %3707 = vmatpush.bf16.msrb.mxu2 %v5651_v59  ;;  %3482 = vmatpush.bf16.msra.mxu0 %v5011_v44 }
 0x55f   : > { %3497 = vmatpush.bf16.msra.mxu1 %v5107_v33  ;;  %3722 = vmatpush.bf16.msrb.mxu3 %v5657_v58 }
 0x561   : > { %3708 = vmatpush.bf16.msrb.mxu2 %v5650_v54  ;;  %3483 = vmatpush.bf16.msra.mxu0 %v4995_v14  ;;  %v5672_v54 = vld [vmem:[#allocation18 + $0xe0] sm:$0xff]  ;;  %v5671_v14 = vld [vmem:[#allocation18 + $0xd8] sm:$0xff] }
 0x563   : > { %3498 = vmatpush.bf16.msra.mxu1 %v5091_v19  ;;  %3723 = vmatpush.bf16.msrb.mxu3 %v5656_v1  ;;  %v2650_v19 = vperm.slane %v6929_v6, 2 }
 0x565   : > { %3484 = vmatpush.bf16.msra.mxu0 %v4979_v20  ;;  %3709 = vmatpush.bf16.msrb.mxu2 %v5649_v43 }
 0x566   : > { %3499 = vmatmul.bf16.vlgmr.msra.gmra.mxu1 %v6908_v57  ;;  %v5644_v57 = vld [vmem:[#allocation18] sm:$0xff] }
 0x567   : > { %3746 = vmatpush.bf16.msrb.mxu1 %v5675_v36 }
 0x569   : > { %3485 = vmatpush.bf16.msra.mxu0 %v4963_v46  ;;  %3710 = vmatpush.bf16.msrb.mxu2 %v5648_v47  ;;  %v5669_v47 = vld [vmem:[#allocation18 + $0xc8] sm:$0xff] }
 0x56b   : > { %3747 = vmatpush.bf16.msrb.mxu1 %v5674_v48 }
 0x56c   : > { %3486 = vmatmul.bf16.vlgmr.msra.gmra.mxu0 %v6912_v31  ;;  %v5655_v31 = vld [vmem:[#allocation18 + $0x58] sm:$0xff] }
 0x56d   : > { %3711 = vmatpush.bf16.msrb.mxu2 %v5647_v63  ;;  %3724 = vmatpush.bf16.msrb.mxu3 %v5655_v31 }
 0x56e   : > { %3733 = vmatpush.bf16.msrb.mxu0 %v5667_v45 }
 0x56f   : > { %3748 = vmatpush.bf16.msrb.mxu1 %v5673_v60 }
 0x571   : > { %3712 = vmatpush.bf16.msrb.mxu2 %v5646_v56  ;;  %3725 = vmatpush.bf16.msrb.mxu3 %v5654_v51 }
 0x572   : > { %3734 = vmatpush.bf16.msrb.mxu0 %v5666_v52 }
 0x573   : > { %3749 = vmatpush.bf16.msrb.mxu1 %v5672_v54 }
 0x575   : > { %3713 = vmatpush.bf16.msrb.mxu2 %v5645_v0  ;;  %3726 = vmatpush.bf16.msrb.mxu3 %v5653_v3 }
 0x576   : > { %3735 = vmatpush.bf16.msrb.mxu0 %v5665_v4 }
 0x577   : > { %3750 = vmatpush.bf16.msrb.mxu1 %v5671_v14 }
 0x579   : > { %3714 = vmatpush.bf16.msrb.mxu2 %v5644_v57  ;;  %3727 = vmatpush.bf16.msrb.mxu3 %v5652_v8 }
 0x57a   : > { %3736 = vmatpush.bf16.msrb.mxu0 %v5664_v10 }
 0x57b   : > { %3751 = vmatpush.bf16.msrb.mxu1 %v5670_v30 }
 0x57e   : > { %3737 = vmatpush.bf16.msrb.mxu0 %v5663_v9 }
 0x57f   : > { %3752 = vmatpush.bf16.msrb.mxu1 %v5669_v47 }
 0x582   : > { %3738 = vmatpush.bf16.msrb.mxu0 %v5662_v25 }
 0x583   : > { %3753 = vmatpush.bf16.msrb.mxu1 %v5668_v55 }
 0x586   : > { %3739 = vmatpush.bf16.msrb.mxu0 %v5661_v5 }
 0x58a   : > { %3740 = vmatpush.bf16.msrb.mxu0 %v5660_v35 }
 0x599   : > { %v3318_v2 = vpop.f32.mrf.mxu3 }
 0x59e   : > { %v3305_v7 = vpop.f32.mrf.mxu2 }
 0x59f   : > { %v3306_v23 = vadd.f32 %v3305_v7, %v2648_v11 }
 0x5a1   : > { %v3320_v17 = vpop.f32.mrf.mxu3  ;;  %v3319_v26 = vadd.f32 %v3318_v2, %v3306_v23  ;;  %v2651_v2 = vperm.slane %v6929_v6, 3  ;;  %v5811_v6 = vld [vmem:[%s7008_s22] ss:$0 sm:$0xff] }
 0x5a3   : > { %v3344_v22 = vpop.f32.mrf.mxu1 }
 0x5a6   : > { %v3307_v24 = vpop.f32.mrf.mxu2 }
 0x5a9   : > { %v3331_v27 = vpop.f32.mrf.mxu0  ;;  %v3370_v28 = vpop.f32.mrf.mxu3 }
 0x5aa   : > { %v3332_v18 = vadd.f32 %v3331_v27, %v3319_v26 }
 0x5ab   : > { %v3346_v12 = vpop.f32.mrf.mxu1 }
 0x5ac   : > { %v3345_v32 = vadd.f32 %v3344_v22, %v3332_v18 }
 0x5ae   : > { %v3504_v34 = vmax.f32 %v3345_v32, 0.0 }
 0x5af   : > { %v3357_v37 = vpop.f32.mrf.mxu2 }
 0x5b0   : > { %v3508_v38 = vpack.c.bf16 %v3504_v34, %v3504_v34  ;;  %v3358_v59 = vadd.f32 %v3357_v37, %v2649_v39 }
 0x5b1   : > { %v3333_v41 = vpop.f32.mrf.mxu0  ;;  %v3372_v42 = vpop.f32.mrf.mxu3 }
 0x5b2   : > { %3715 = vmatmul.bf16.vlgmr.msrb.gmra.mxu2 %v3508_v38  ;;  %v3371_v62 = vadd.f32 %v3370_v28, %v3358_v59 }
 0x5b3   : > { %v3396_v50 = vpop.f32.mrf.mxu1 }
 0x5b7   : > { %v3359_v61 = vpop.f32.mrf.mxu2 }
 0x5b9   : > { %v3383_v44 = vpop.f32.mrf.mxu0  ;;  %v3422_v49 = vpop.f32.mrf.mxu3 }
 0x5ba   : > { %v3384_v40 = vadd.f32 %v3383_v44, %v3371_v62 }
 0x5bb   : > { %v3398_v33 = vpop.f32.mrf.mxu1 }
 0x5bc   : > { %v3397_v13 = vadd.f32 %v3396_v50, %v3384_v40  ;;  %v3759_v50 = vlaneseq }
 0x5be   : > { %v3505_v21 = vmax.f32 %v3397_v13, 0.0  ;;  %v3760_v61 = vand.u32 127, %v3759_v50 }
 0x5bf   : > { %v3409_v16 = vpop.f32.mrf.mxu2 }
 0x5c0   : > { %v3509_v15 = vpack.c.bf16 %v3505_v21, %v3505_v21  ;;  %v3410_v43 = vadd.f32 %v3409_v16, %v2650_v19  ;;  %vm3761_vm3 = vcmp.lt.s32.totalorder %v3760_v61, 4 }
 0x5c1   : > { %v3385_v20 = vpop.f32.mrf.mxu0  ;;  %v3424_v29 = vpop.f32.mrf.mxu3 }
 0x5c2   : > { %3728 = vmatmul.bf16.vlgmr.msrb.gmra.mxu3 %v3509_v15  ;;  %v3423_v53 = vadd.f32 %v3422_v49, %v3410_v43 }
 0x5c3   : > { %v3448_v46 = vpop.f32.mrf.mxu1 }
 0x5c7   : > { %v3411_v63 = vpop.f32.mrf.mxu2 }
 0x5c9   : > { %v3435_v56 = vpop.f32.mrf.mxu0 }
 0x5ca   : > { %v3436_v0 = vadd.f32 %v3435_v56, %v3423_v53 }
 0x5cb   : > { %v3450_v58 = vpop.f32.mrf.mxu1 }
 0x5cc   : > { %v3449_v57 = vadd.f32 %v3448_v46, %v3436_v0 }
 0x5ce   : > { %v3506_v1 = vmax.f32 %v3449_v57, 0.0 }
 0x5d0   : > { %v3510_v31 = vpack.c.bf16 %v3506_v1, %v3506_v1 }
 0x5d1   : > { %v3437_v45 = vpop.f32.mrf.mxu0 }
 0x5d2   : > { %3741 = vmatmul.bf16.vlgmr.msrb.gmra.mxu0 %v3510_v31 }
 0x5d9   : > { %v3474_v51 = vpop.f32.mrf.mxu3 }
 0x5df   : > { %v3461_v52 = vpop.f32.mrf.mxu2 }
 0x5e0   : > { %v3462_v7 = vadd.f32 %v3461_v52, %v2651_v2 }
 0x5e1   : > { %v3476_v3 = vpop.f32.mrf.mxu3 }
 0x5e2   : > { %v3475_v10 = vadd.f32 %v3474_v51, %v3462_v7 }
 0x5e3   : > { %v3500_v4 = vpop.f32.mrf.mxu1 }
 0x5e7   : > { %v3463_v8 = vpop.f32.mrf.mxu2 }
 0x5e9   : > { %v3487_v11 = vpop.f32.mrf.mxu0 }
 0x5ea   : > { %v3488_v17 = vadd.f32 %v3487_v11, %v3475_v10 }
 0x5eb   : > { %v3502_v9 = vpop.f32.mrf.mxu1 }
 0x5ec   : > { %v3501_v22 = vadd.f32 %v3500_v4, %v3488_v17 }
 0x5ee   : > { %v3507_v23 = vmax.f32 %v3501_v22, 0.0 }
 0x5f0   : > { %v3511_v24 = vpack.c.bf16 %v3507_v23, %v3507_v23 }
 0x5f1   : > { %v3489_v25 = vpop.f32.mrf.mxu0 }
 0x5f2   : > { %3754 = vmatmul.bf16.vlgmr.msrb.gmra.mxu1 %v3511_v24 }
 0x635   : > { %v3716_v26 = vpop.f32.mrf.mxu2 }
 0x636   : > { %v3717_v32 = vadd.f32 %v5811_v6, %v3716_v26 }
 0x63d   : > { %v3718_v27 = vpop.f32.mrf.mxu2 }
 0x645   : > { %v3729_v28 = vpop.f32.mrf.mxu3 }
 0x646   : > { %v3730_v34 = vadd.f32 %v3729_v28, %v3717_v32 }
 0x64d   : > { %v3731_v18 = vpop.f32.mrf.mxu3 }
 0x64f   : > { %v3742_v5 = vpop.f32.mrf.mxu0 }
 0x650   : > { %v3743_v35 = vadd.f32 %v3742_v5, %v3730_v34 }
 0x657   : > { %v3744_v12 = vpop.f32.mrf.mxu0 }
 0x66f   : > { %v3755_v36 = vpop.f32.mrf.mxu1 }
 0x670   : > { %v3756_v37 = vadd.f32 %v3755_v36, %v3743_v35 }
 0x672   : > { %v5332_v38 = vmul.f32 -1.442695, %v3756_v37 }
 0x674   : > { %5820 = vpow2.f32 %v5332_v38 }
 0x677   : > { %v3757_v39 = vpop.f32.mrf.mxu1 }
 0x67a   : > { %v5821_v41 = vpop.eup %5820 }
 0x67b   : > { %v3765_v42 = vadd.f32 1.0, %v5821_v41 }
 0x67d   : > { %5822 = vrcp.f32 %v3765_v42  ;;  %v3777_v62 = vand.u32 2147483648, %v3765_v42  ;;  %v3775_v49 = vand.u32 2147483647, %v3765_v42  ;;  %vm3771_vm2 = vweird.f32 %v3765_v42 }
 0x67f   : > { %v3778_v54 = vor.u32 1.1754944e-38, %v3777_v62  ;;  %vm3776_vm5 = vcmp.eq.f32.partialorder %v3775_v49, 8.507059e+37 }
 0x683   : > { %v5823_v48 = vpop.eup %5822 }
 0x684   : > { %v3767_v59 = vmul.f32 %v5823_v48, %v3765_v42  ;;  %vm3772_vm1 = vweird.f32 %v5823_v48 }
 0x685   : > { %vm3773_vm4 = vmor %vm3771_vm2, %vm3772_vm1 }
 0x686   : > { %v3768_v60 = vsub.f32 1.0, %v3767_v59 }
 0x688   : > { %v3769_v44 = vmul.f32 %v5823_v48, %v3768_v60 }
 0x68a   : > { %v3770_v40 = vadd.f32 %v5823_v48, %v3769_v44 }
 0x68c   : > { %v3774_v33 = vsel %vm3773_vm4, %v5823_v48, %v3770_v40 }
 0x68d   : > { %v3779_v13 = vsel %vm3776_vm5, %v3778_v54, %v3774_v33 }
 0x68e   : > { %v3781_v21 = vsel %vm3761_vm3, %v3779_v13, %v3756_v37 }
 0x68f   : > { %3782 = vst [vmem:[#allocation20] sm:$0xff] %v3781_v21 }
 0x690 PF: > { %p5761_p3 = scmp.eq.s32.totalorder %s6326_s15, 3  ;;  %s6231_s6 = smov [#allocation20]  }
 0x691   : > { %s3789_s9 = sshll.u32 %s6231_s6, 4  ;;  %s7009_s25 = sld [smem:[#allocation40_spill]]  ;;  %s3790_s9 = int_to_ptr.vmem [resolvable:$true] %s3789_s9 }
 0x697   : > { %s3791_s28 = sshll.u32 %s7009_s25, 4  ;;  %s3792_s28 = int_to_ptr.hbm [resolvable:$true] %s3791_s28 }
 0x698   : > { %5711 = dma.vmem_to_hbm [thread:$0]  (%p5761_p3), %s3790_s9, 128, %s3792_s28, [#allocation5]  }
 0x699   : > { %6197 = dma.done.wait (%p5761_p3), [#allocation5], 128  }
 0x69a   : > { %6199 = vsyncadd (%p5761_p3), [#allocation5], 4294967168 }
 0x69b PF: > { %s7010_s28 = sld [smem:[#allocation30_spill]]  ;;  %s7013_s25 = smov %s6206_s26 }
 0x69c   : > { %s7011_s4 = sld [smem:[#allocation29_spill]] }
 0x69d   : > { %s7012_s27 = sld [smem:[#allocation31_spill]] }
 0x6a1   : > { %p31_p4 = scmp.ge.s32.totalorder %s7010_s28, 6  }
 0x6a2   : > { %s7014_s26 = smov %s7011_s4 }
 0x6a3   :  { %33 = sbr.rel (!%p31_p4) target bundleno = 20 (0x14), region = 170 }
 0x6a8   :  { %3805 = vsyncpa [#allocation4], 1 }
 0x6a9   :  { %3807 = vsyncpa [#allocation4 + $0x1], 1 }
 0x6aa   :  { %3808 = vsyncpa [#allocation7], 1 }
 0x6ab   :  { %3810 = vsyncpa [#allocation7 + $0x1], 1 }
 0x6ac   :  { %3811 = vsyncpa [#allocation10], 1 }
 0x6ad   :  { %3813 = vsyncpa [#allocation10 + $0x1], 1 }
 0x6ae   :  { %3814 = vsyncpa [#allocation13], 1 }
 0x6af   :  { %3815 = vsyncpa [#allocation16], 1 }
 0x6b0   :  { %3816 = vsyncpa [#allocation19], 1 }
 0x6b1   :  { %3817 = vsyncpa [#allocation5], 1 }
 0x6b2   :  { %3819 = vsyncpa [#allocation5 + $0x1], 1 }

</bundles_post_ra>
